<compile_context>
chip_gen: v7x
topology: tpu7x:2x2x1
jax: 0.10.0
libtpu: 0.0.40
codegen_flags: <defaults>
</compile_context>

<pallas_src>
import functools
import math

import jax
import jax.numpy as jnp
from jax import lax
from jax.experimental import pallas as pl

# The global 'highest' default only governs the one-time weight prep, the wrapper-side f32
# math and the plain-JAX reference (ground truth).  Every dot inside the Pallas kernel uses
# bf16 operands with an explicit precision=DEFAULT, so it is NOT affected by this config.
jax.config.update("jax_default_matmul_precision", "highest")

NEG = -1e9          # large-negative instead of -inf for attention masking (no NaN corner cases)
LN_EPS = 1e-5


def _full_spec(shape):
    # whole-array single block (no grid)
    return pl.BlockSpec(shape, lambda: (0,) * len(shape))


def _layer_norm(x, g, b):
    m = jnp.mean(x, axis=-1, keepdims=True)
    c = x - m
    v = jnp.mean(c * c, axis=-1, keepdims=True)
    return c * lax.rsqrt(v + LN_EPS) * g + b


def _mxu(a, w):
    """MXU matmul: f32 activations cast to bf16, bf16 weights, f32 accumulation (1 pass)."""
    return jnp.dot(a.astype(jnp.bfloat16), w, preferred_element_type=jnp.float32,
                   precision=lax.Precision.DEFAULT)


def _group_decoder_kernel(xin_ref, w_in_ref, b_in_ref, cross_ref, bias_ref,
                          wqkv_ref, bqkv_ref, wos_ref, bos_ref, ln_ref,
                          wff1_ref, bff1_ref, wff2_ref, bff2_ref,
                          fln_ref, wh1_ref, bh1_ref, wl2_ref, bl2_ref,
                          out_ref, *, n_heads):
    # TODO(synk): dropout (train-mode randomness) not implemented; eval-mode semantics only.
    N, G, _ = bias_ref.shape
    R = N * G
    D = w_in_ref.shape[1]
    L = wqkv_ref.shape[0]
    Hl = wl2_ref.shape[0]
    bout = wh1_ref.shape[1] - Hl
    lpad = wl2_ref.shape[1]
    H = n_heads
    Dh = D // H
    bf16 = jnp.bfloat16
    f32 = jnp.float32

    # fused (group_label_embed | box-embedding gather | proj_cat_tgt) input projection
    tgt = _mxu(xin_ref[...], w_in_ref[...]) + b_in_ref[...]          # (R, D), f32
    bias = bias_ref[...]                                              # (N, G, G) additive mask

    for l in range(L):
        lp = ln_ref[l]                                                # (6, D): ln1/2/3 gamma,beta

        # ---- masked multi-head self-attention: batched over N, static loop over H heads ----
        qkv = _mxu(tgt, wqkv_ref[l]) + bqkv_ref[l]                    # (R, 3D); q already scaled
        q = qkv[:, :D].astype(bf16).reshape(N, G, D)
        k = qkv[:, D:2 * D].astype(bf16).reshape(N, G, D)
        v = qkv[:, 2 * D:].astype(bf16).reshape(N, G, D)
        heads = []
        for h in range(H):
            c0 = h * Dh
            s = jnp.einsum('bqd,bkd->bqk', q[:, :, c0:c0 + Dh], k[:, :, c0:c0 + Dh],
                           preferred_element_type=f32,
                           precision=lax.Precision.DEFAULT) + bias    # (N, G, G)
            s = s - jnp.max(s, axis=-1, keepdims=True)
            e = jnp.exp(s)
            p = e * pl.reciprocal(jnp.sum(e, axis=-1, keepdims=True), approx=True)
            oh = jnp.einsum('bqk,bkd->bqd', p.astype(bf16), v[:, :, c0:c0 + Dh],
                            preferred_element_type=f32,
                            precision=lax.Precision.DEFAULT)          # (N, G, Dh)
            heads.append(oh.reshape(R, Dh))
        attn = jnp.concatenate(heads, axis=-1)                        # (R, D), registers only
        attn = _mxu(attn, wos_ref[l]) + bos_ref[l]
        tgt = _layer_norm(tgt + attn, lp[0:1], lp[1:2])

        # ---- cross-attention to z (length-1 memory): precomputed in the wrapper ----
        tgt = _layer_norm(tgt + cross_ref[l], lp[2:3], lp[3:4])

        # ---- feed-forward (relu) ----
        ff = jnp.maximum(_mxu(tgt, wff1_ref[l]) + bff1_ref[l], 0.0)
        ff = _mxu(ff, wff2_ref[l]) + bff2_ref[l]
        tgt = _layer_norm(tgt + ff, lp[4:5], lp[5:6])

    # final decoder LayerNorm
    dec = _layer_norm(tgt, fln_ref[0:1], fln_ref[1:2])

    # ---- heads: box_fcn linear and label_fcn's first linear fused into one matmul ----
    h1 = _mxu(dec, wh1_ref[...]) + bh1_ref[...]
    rec_box = jnp.maximum(h1[:, :bout], 0.0)
    rec_lab = jnp.maximum(_mxu(h1[:, bout:], wl2_ref[...]) + bl2_ref[...], 0.0)

    # single lane-dense packed output: [decoder_out | rec_box | rec_label (padded to 128)]
    out_ref[:, 0:D] = dec
    out_ref[:, D:D + bout] = rec_box
    out_ref[:, D + bout:D + bout + lpad] = rec_lab


def prepare_params(params, n_heads):
    """One-time weight fusion / stacking / bf16 cast (hoisted out of the per-call path)."""
    f32 = jnp.float32
    bf16 = jnp.bfloat16
    D = params["W_proj"].shape[1]
    grid_sz = params["E_box"].shape[0]
    L = len(params["layers"])
    Dh = D // n_heads
    scale = 1.0 / math.sqrt(Dh)

    # fold label-embedding, box-embedding (gather-as-matmul) and proj_cat_tgt into ONE matrix
    W_projL = params["W_proj"][:128]
    W_projB = params["W_proj"][128:]
    W_box_blk = jnp.zeros((4 * grid_sz, 4 * 128), f32)
    for c in range(4):
        W_box_blk = W_box_blk.at[c * grid_sz:(c + 1) * grid_sz,
                                 c * 128:(c + 1) * 128].set(params["E_box"])
    W_in = jnp.concatenate([params["W_le"] @ W_projL, W_box_blk @ W_projB], axis=0)
    b_in = (params["b_le"] @ W_projL + params["b_proj"]).reshape(1, D)

    layers = params["layers"]

    def stk(name):
        return jnp.stack([layers[l][name] for l in range(L)], axis=0)

    W_qkv = stk("W_qkv")
    b_qkv = stk("b_qkv").reshape(L, 1, -1)
    # fold the 1/sqrt(Dh) attention scale into the q columns (removes a per-layer VPU multiply)
    W_qkv = W_qkv.at[:, :, :D].multiply(scale)
    b_qkv = b_qkv.at[:, :, :D].multiply(scale)
    W_os = stk("W_os")
    b_os = stk("b_os").reshape(L, 1, -1)
    # memory length 1 => cross-attn == out_proj(v_proj(z)); fold both projections per layer
    W_cx = jnp.stack([layers[l]["W_v_x"] @ layers[l]["W_o_x"] for l in range(L)], 0)
    b_cx = jnp.stack([layers[l]["b_v_x"] @ layers[l]["W_o_x"] + layers[l]["b_o_x"]
                      for l in range(L)], 0).reshape(L, 1, -1)
    ln = jnp.stack([jnp.stack([layers[l][k] for k in
                               ("ln1_g", "ln1_b", "ln2_g", "ln2_b", "ln3_g", "ln3_b")], 0)
                    for l in range(L)], 0)                            # (L, 6, D)
    W_ff1 = stk("W_ff1")
    b_ff1 = stk("b_ff1").reshape(L, 1, -1)
    W_ff2 = stk("W_ff2")
    b_ff2 = stk("b_ff2").reshape(L, 1, -1)
    fln = jnp.stack([params["fln_g"], params["fln_b"]], 0)            # (2, D)

    # heads: fuse box_fcn linear and label_fcn first linear; zero-pad the (128 -> Lc) label
    # linear to 128 output lanes so the packed store stays lane-dense.
    Lc = params["W_l2"].shape[1]
    Hl = params["W_l1"].shape[1]
    LPAD = 128
    W_h1 = jnp.concatenate([params["W_box"], params["W_l1"]], axis=1)
    b_h1 = jnp.concatenate([params["b_box"], params["b_l1"]], 0).reshape(1, -1)
    W_l2p = jnp.zeros((Hl, LPAD), f32).at[:, :Lc].set(params["W_l2"])
    b_l2p = jnp.zeros((1, LPAD), f32).at[0, :Lc].set(params["b_l2"])

    # matmul weights live in VMEM as bf16 (native single MXU pass); biases / LN / cross stay f32
    return dict(
        W_in=W_in.astype(bf16), b_in=b_in,
        W_qkv=W_qkv.astype(bf16), b_qkv=b_qkv,
        W_os=W_os.astype(bf16), b_os=b_os,
        W_cx=W_cx, b_cx=b_cx, ln=ln,
        W_ff1=W_ff1.astype(bf16), b_ff1=b_ff1,
        W_ff2=W_ff2.astype(bf16), b_ff2=b_ff2,
        fln=fln,
        W_h1=W_h1.astype(bf16), b_h1=b_h1,
        W_l2p=W_l2p.astype(bf16), b_l2p=b_l2p,
    )


@functools.partial(jax.jit, static_argnames=("n_heads",))
def group_decoder_forward(prep, label, box, z, mask, *, n_heads):
    """Pallas implementation of GroupDecoder.forward(label, box, z, mask)."""
    G, N, Lc = label.shape
    f32 = jnp.float32
    D = prep["W_in"].shape[1]
    L = prep["W_qkv"].shape[0]
    grid_sz = (prep["W_in"].shape[0] - Lc) // 4
    Hl = prep["W_l2p"].shape[0]
    LPAD = prep["W_l2p"].shape[1]
    Bout = prep["W_h1"].shape[1] - Hl
    R = N * G
    assert z.shape[0] == 1, "decoder memory z is (1, N, E) per the module docstring"
    # TODO(synk): memory length > 1 would need full cross-attention (q/k proj + softmax);
    # with a single memory token softmax == 1 so the q/k projections cancel exactly.

    # per-call, input-dependent prep (cheap; all weight fusion lives in prepare_params)
    lab2d = jnp.transpose(label, (1, 0, 2)).reshape(R, Lc).astype(f32)     # batch-major rows
    box2d = jnp.transpose(box, (1, 0, 2)).reshape(R, 4)
    box_oh = jax.nn.one_hot(box2d, grid_sz, dtype=f32).reshape(R, 4 * grid_sz)
    x_in = jnp.concatenate([lab2d, box_oh], axis=-1)                       # (R, Lc + 4*grid)

    # additive attention bias = causal (square subsequent) mask + key-padding mask
    idx = jnp.arange(G)
    causal = jnp.where(idx[None, :] > idx[:, None], NEG, 0.0).astype(f32)  # (G, G)
    kp = jnp.where(mask == 0, NEG, 0.0).astype(f32)                        # (N, G)
    attn_bias = causal[None, :, :] + kp[:, None, :]                        # (N, G, G)

    # cross-attention hoisted out of the kernel (does not depend on tgt; exact for len-1 memory)
    z2d = z[0].astype(f32)                                                 # (N, D)
    cross = jnp.einsum('nd,lde->lne', z2d, prep["W_cx"]) + prep["b_cx"]    # (L, N, D)
    cross_rows = jnp.broadcast_to(cross[:, :, None, :], (L, N, G, D)).reshape(L, R, D)

    inputs = (x_in, prep["W_in"], prep["b_in"], cross_rows, attn_bias,
              prep["W_qkv"], prep["b_qkv"], prep["W_os"], prep["b_os"], prep["ln"],
              prep["W_ff1"], prep["b_ff1"], prep["W_ff2"], prep["b_ff2"],
              prep["fln"], prep["W_h1"], prep["b_h1"], prep["W_l2p"], prep["b_l2p"])

    out_w = D + Bout + LPAD
    # Tiny problem (R = N*G rows): single block, no grid, so per-grid-step overhead is paid
    # once and all intermediates stay in VMEM (~1 MB, safe on every generation).  For larger
    # batch on v7x: add a grid over the batch-major row dim with dimension_semantics=
    # ("parallel",) and constant index maps for the resident weights.
    out_pack = pl.pallas_call(
        functools.partial(_group_decoder_kernel, n_heads=n_heads),
        out_shape=jax.ShapeDtypeStruct((R, out_w), f32),
        in_specs=[_full_spec(a.shape) for a in inputs],
        out_specs=_full_spec((R, out_w)),
    )(*inputs)

    dec = out_pack[:, :D].reshape(N, G, D).transpose(1, 0, 2)                       # (G, N, D)
    rec_box = out_pack[:, D:D + Bout].reshape(N, G, Bout).transpose(1, 0, 2)        # (G, N, 4*grid)
    rec_label = out_pack[:, D + Bout:D + Bout + Lc].reshape(N, G, Lc).transpose(1, 0, 2)
    return dec[:G - 2], rec_box, rec_label                                          # out = out[:-2]


def _reference_forward(params, label, box, z, mask, *, n_heads):
    """Plain-JAX f32 reference (unfused weights, full cross-attention formula)."""
    G, N, Lc = label.shape
    D = params["W_proj"].shape[1]
    H = n_heads
    Dh = D // H
    scale = 1.0 / math.sqrt(Dh)

    def ln(x, g, b):
        m = x.mean(-1, keepdims=True)
        c = x - m
        v = (c * c).mean(-1, keepdims=True)
        return c * lax.rsqrt(v + LN_EPS) * g + b

    lab_vec = label @ params["W_le"] + params["b_le"]                        # (G, N, 128)
    box_vec = params["E_box"][box].reshape(G, N, 4 * 128)                    # (G, N, 512)
    tgt = jnp.concatenate([lab_vec, box_vec], -1) @ params["W_proj"] + params["b_proj"]

    idx = jnp.arange(G)
    causal = jnp.where(idx[None, :] > idx[:, None], NEG, 0.0)
    kp = jnp.where(mask == 0, NEG, 0.0)                                      # (N, G)

    x = tgt
    for lyr in params["layers"]:
        qkv = x @ lyr["W_qkv"] + lyr["b_qkv"]
        q = qkv[..., :D] * scale
        k = qkv[..., D:2 * D]
        v = qkv[..., 2 * D:]
        qh, kh, vh = (t.reshape(G, N, H, Dh) for t in (q, k, v))
        s = jnp.einsum('inhd,jnhd->nhij', qh, kh) + causal[None, None] + kp[:, None, None, :]
        a = jax.nn.softmax(s, -1)
        o = jnp.einsum('nhij,jnhd->inhd', a, vh).reshape(G, N, D)
        o = o @ lyr["W_os"] + lyr["b_os"]
        x = ln(x + o, lyr["ln1_g"], lyr["ln1_b"])

        # full cross-attention formula (memory length 1 -> softmax is identically 1)
        qx = (x @ lyr["W_q_x"] + lyr["b_q_x"]) * scale
        kx = z @ lyr["W_k_x"] + lyr["b_k_x"]
        vx = z @ lyr["W_v_x"] + lyr["b_v_x"]
        qxh = qx.reshape(G, N, H, Dh)
        kxh = kx.reshape(1, N, H, Dh)
        vxh = vx.reshape(1, N, H, Dh)
        sx = jnp.einsum('inhd,jnhd->nhij', qxh, kxh)
        ax = jax.nn.softmax(sx, -1)
        ox = jnp.einsum('nhij,jnhd->inhd', ax, vxh).reshape(G, N, D)
        ox = ox @ lyr["W_o_x"] + lyr["b_o_x"]
        x = ln(x + ox, lyr["ln2_g"], lyr["ln2_b"])

        f = jnp.maximum(x @ lyr["W_ff1"] + lyr["b_ff1"], 0.0)
        f = f @ lyr["W_ff2"] + lyr["b_ff2"]
        x = ln(x + f, lyr["ln3_g"], lyr["ln3_b"])

    dec = ln(x, params["fln_g"], params["fln_b"])
    rec_box = jnp.maximum(dec @ params["W_box"] + params["b_box"], 0.0)
    rec_label = jnp.maximum((dec @ params["W_l1"] + params["b_l1"]) @ params["W_l2"]
                            + params["b_l2"], 0.0)
    return dec[:-2], rec_box, rec_label


if __name__ == "__main__":
    # small cfg consistent with the module
    d_model, n_heads, dim_ff, n_layers = 128, 4, 256, 2
    num_labels = 6                     # -> label dim = num_labels + 2 = 8
    grid = 32                          # discrete_x_grid = discrete_y_grid -> box head = 4*32 = 128
    max_num_elements = 6               # -> G = max_num_elements + 2 = 8
    G, N = max_num_elements + 2, 2
    Lc = num_labels + 2
    Bout = 4 * grid

    keys = iter(jax.random.split(jax.random.PRNGKey(0), 256))

    def rnd(shape, s=0.06):
        return s * jax.random.normal(next(keys), shape, dtype=jnp.float32)

    def layer_params():
        return dict(
            W_qkv=rnd((d_model, 3 * d_model)), b_qkv=rnd((3 * d_model,), 0.01),
            W_os=rnd((d_model, d_model)), b_os=rnd((d_model,), 0.01),
            W_q_x=rnd((d_model, d_model)), b_q_x=rnd((d_model,), 0.01),
            W_k_x=rnd((d_model, d_model)), b_k_x=rnd((d_model,), 0.01),
            W_v_x=rnd((d_model, d_model)), b_v_x=rnd((d_model,), 0.01),
            W_o_x=rnd((d_model, d_model)), b_o_x=rnd((d_model,), 0.01),
            ln1_g=jnp.ones((d_model,), jnp.float32), ln1_b=jnp.zeros((d_model,), jnp.float32),
            ln2_g=jnp.ones((d_model,), jnp.float32), ln2_b=jnp.zeros((d_model,), jnp.float32),
            ln3_g=jnp.ones((d_model,), jnp.float32), ln3_b=jnp.zeros((d_model,), jnp.float32),
            W_ff1=rnd((d_model, dim_ff)), b_ff1=rnd((dim_ff,), 0.01),
            W_ff2=rnd((dim_ff, d_model)), b_ff2=rnd((d_model,), 0.01),
        )

    # weights stored in x @ W orientation (PyTorch Linear weights would be transposed)
    params = dict(
        W_le=rnd((Lc, 128), 0.1), b_le=rnd((128,), 0.01),        # layout_embd.group_label_embed
        E_box=rnd((grid, 128), 0.1),                             # layout_embd box embedding table
        W_proj=rnd((5 * 128, d_model), 0.05), b_proj=rnd((d_model,), 0.01),   # proj_cat_tgt
        layers=[layer_params() for _ in range(n_layers)],
        fln_g=jnp.ones((d_model,), jnp.float32), fln_b=jnp.zeros((d_model,), jnp.float32),
        W_box=rnd((d_model, Bout)), b_box=rnd((Bout,), 0.01),    # box_fcn
        W_l1=rnd((d_model, 128)), b_l1=rnd((128,), 0.01),        # label_fcn[0]
        W_l2=rnd((128, Lc)), b_l2=rnd((Lc,), 0.01),              # label_fcn[1]
    )

    # one-time fused/stacked weights (NOT recomputed per forward call)
    prep = prepare_params(params, n_heads=n_heads)
    prep = jax.block_until_ready(prep)

    # inputs: label (G,N,num_labels+2) multi-hot, box (G,N,4) discrete, z (1,N,E), mask (N,G)
    label = (jax.random.uniform(next(keys), (G, N, Lc)) < 0.3).astype(jnp.float32)
    box = jax.random.randint(next(keys), (G, N, 4), 0, grid)
    z = 0.5 * jax.random.normal(next(keys), (1, N, d_model), dtype=jnp.float32)
    mask = jnp.array([[1] * G, [1] * (G - 2) + [0] * 2], dtype=jnp.int32)   # batch 1: 2 padded groups

    out, rec_box, rec_label = group_decoder_forward(prep, label, box, z, mask, n_heads=n_heads)
    jax.block_until_ready((out, rec_box, rec_label))

    out_r, box_r, lab_r = _reference_forward(params, label, box, z, mask, n_heads=n_heads)

    assert out.shape == (G - 2, N, d_model)
    assert rec_box.shape == (G, N, Bout)
    assert rec_label.shape == (G, N, Lc)
    # Tolerance reflects single-pass bf16 MXU operands in the kernel vs. the f32 ('highest')
    # reference, amplified through the post-norm LayerNorms; structure/semantics are exact.
    TOL = 4e-2
    assert bool(jnp.allclose(out, out_r, atol=TOL, rtol=TOL))
    assert bool(jnp.allclose(rec_box, box_r, atol=TOL, rtol=TOL))
    assert bool(jnp.allclose(rec_label, lab_r, atol=TOL, rtol=TOL))
    assert float(jnp.mean(jnp.abs(out - out_r))) < 1.5e-2

    print("KERNEL_OK")
</pallas_src>

<mosaic_0001>
module attributes {stable_mosaic.version = 11 : i64} {
  func.func @_group_decoder_kernel(%arg0: memref<16x136xf32, #tpu.memory_space<vmem>>, %arg1: memref<136x128xbf16, #tpu.memory_space<vmem>>, %arg2: memref<1x128xf32, #tpu.memory_space<vmem>>, %arg3: memref<2x16x128xf32, #tpu.memory_space<vmem>>, %arg4: memref<2x8x8xf32, #tpu.memory_space<vmem>>, %arg5: memref<2x128x384xbf16, #tpu.memory_space<vmem>>, %arg6: memref<2x1x384xf32, #tpu.memory_space<vmem>>, %arg7: memref<2x128x128xbf16, #tpu.memory_space<vmem>>, %arg8: memref<2x1x128xf32, #tpu.memory_space<vmem>>, %arg9: memref<2x6x128xf32, #tpu.memory_space<vmem>>, %arg10: memref<2x128x256xbf16, #tpu.memory_space<vmem>>, %arg11: memref<2x1x256xf32, #tpu.memory_space<vmem>>, %arg12: memref<2x256x128xbf16, #tpu.memory_space<vmem>>, %arg13: memref<2x1x128xf32, #tpu.memory_space<vmem>>, %arg14: memref<2x128xf32, #tpu.memory_space<vmem>>, %arg15: memref<128x256xbf16, #tpu.memory_space<vmem>>, %arg16: memref<1x256xf32, #tpu.memory_space<vmem>>, %arg17: memref<128x128xbf16, #tpu.memory_space<vmem>>, %arg18: memref<1x128xf32, #tpu.memory_space<vmem>>, %arg19: memref<16x384xf32, #tpu.memory_space<vmem>>) attributes {dimension_semantics = [], scalar_prefetch = 0 : i64, scratch_operands = 0 : i64, tpu.core_type = #tpu.core_type<tc>} {
    %c0 = arith.constant 0 : index
    %c0_0 = arith.constant 0 : index
    %0 = vector.load %arg0[%c0, %c0_0] : memref<16x136xf32, #tpu.memory_space<vmem>>, vector<16x136xf32>
    %c0_1 = arith.constant 0 : index
    %c0_2 = arith.constant 0 : index
    %1 = vector.load %arg1[%c0_1, %c0_2] : memref<136x128xbf16, #tpu.memory_space<vmem>>, vector<136x128xbf16>
    %2 = arith.truncf %0 : vector<16x136xf32> to vector<16x136xbf16>
    %cst = arith.constant dense<0.000000e+00> : vector<16x128xf32>
    %3 = tpu.matmul %2, %1, %cst {dimension_numbers = #tpu.dot_dimension_numbers<[1], [0], [0], [1], [0, 0, 1, 1], [], []>} : vector<16x136xbf16>, vector<136x128xbf16>, vector<16x128xf32> -> vector<16x128xf32>
    %c0_3 = arith.constant 0 : index
    %c0_4 = arith.constant 0 : index
    %4 = vector.load %arg2[%c0_3, %c0_4] : memref<1x128xf32, #tpu.memory_space<vmem>>, vector<1x128xf32>
    %5 = vector.broadcast %4 : vector<1x128xf32> to vector<16x128xf32>
    %6 = arith.addf %3, %5 : vector<16x128xf32>
    %c0_5 = arith.constant 0 : index
    %c0_6 = arith.constant 0 : index
    %c0_7 = arith.constant 0 : index
    %7 = vector.load %arg4[%c0_5, %c0_6, %c0_7] : memref<2x8x8xf32, #tpu.memory_space<vmem>>, vector<2x8x8xf32>
    %c0_8 = arith.constant 0 : index
    %c0_9 = arith.constant 0 : index
    %c0_10 = arith.constant 0 : index
    %8 = vector.load %arg9[%c0_8, %c0_9, %c0_10] : memref<2x6x128xf32, #tpu.memory_space<vmem>>, vector<1x6x128xf32>
    %9 = vector.shape_cast %8 : vector<1x6x128xf32> to vector<6x128xf32>
    %c0_11 = arith.constant 0 : index
    %c0_12 = arith.constant 0 : index
    %c0_13 = arith.constant 0 : index
    %10 = vector.load %arg5[%c0_11, %c0_12, %c0_13] : memref<2x128x384xbf16, #tpu.memory_space<vmem>>, vector<1x128x384xbf16>
    %11 = vector.shape_cast %10 : vector<1x128x384xbf16> to vector<128x384xbf16>
    %12 = arith.truncf %6 : vector<16x128xf32> to vector<16x128xbf16>
    %cst_14 = arith.constant dense<0.000000e+00> : vector<16x384xf32>
    %13 = tpu.matmul %12, %11, %cst_14 {dimension_numbers = #tpu.dot_dimension_numbers<[1], [0], [0], [1], [0, 0, 1, 1], [], []>} : vector<16x128xbf16>, vector<128x384xbf16>, vector<16x384xf32> -> vector<16x384xf32>
    %c0_15 = arith.constant 0 : index
    %c0_16 = arith.constant 0 : index
    %c0_17 = arith.constant 0 : index
    %14 = vector.load %arg6[%c0_15, %c0_16, %c0_17] : memref<2x1x384xf32, #tpu.memory_space<vmem>>, vector<1x1x384xf32>
    %15 = vector.shape_cast %14 : vector<1x1x384xf32> to vector<1x384xf32>
    %16 = vector.broadcast %15 : vector<1x384xf32> to vector<16x384xf32>
    %17 = arith.addf %13, %16 : vector<16x384xf32>
    %18 = vector.extract_strided_slice %17 {offsets = [0, 0], sizes = [16, 128], strides = [1, 1]} : vector<16x384xf32> to vector<16x128xf32>
    %19 = arith.truncf %18 : vector<16x128xf32> to vector<16x128xbf16>
    %20 = vector.shape_cast %19 : vector<16x128xbf16> to vector<2x8x128xbf16>
    %21 = vector.extract_strided_slice %17 {offsets = [0, 128], sizes = [16, 128], strides = [1, 1]} : vector<16x384xf32> to vector<16x128xf32>
    %22 = arith.truncf %21 : vector<16x128xf32> to vector<16x128xbf16>
    %23 = vector.shape_cast %22 : vector<16x128xbf16> to vector<2x8x128xbf16>
    %24 = vector.extract_strided_slice %17 {offsets = [0, 256], sizes = [16, 128], strides = [1, 1]} : vector<16x384xf32> to vector<16x128xf32>
    %25 = arith.truncf %24 : vector<16x128xf32> to vector<16x128xbf16>
    %26 = vector.shape_cast %25 : vector<16x128xbf16> to vector<2x8x128xbf16>
    %27 = vector.extract_strided_slice %20 {offsets = [0, 0, 0], sizes = [2, 8, 32], strides = [1, 1, 1]} : vector<2x8x128xbf16> to vector<2x8x32xbf16>
    %28 = vector.extract_strided_slice %23 {offsets = [0, 0, 0], sizes = [2, 8, 32], strides = [1, 1, 1]} : vector<2x8x128xbf16> to vector<2x8x32xbf16>
    "tpu.trace_start"() <{level = 10 : i32, message = "bqd,bkd->bqk"}> : () -> ()
    %cst_18 = arith.constant dense<0.000000e+00> : vector<2x8x8xf32>
    %29 = tpu.matmul %27, %28, %cst_18 {dimension_numbers = #tpu.dot_dimension_numbers<[2], [2], [1], [1], [0, 0, 0, 1, 1, 1], [0], [0]>} : vector<2x8x32xbf16>, vector<2x8x32xbf16>, vector<2x8x8xf32> -> vector<2x8x8xf32>
    "tpu.trace_stop"() : () -> ()
    %30 = arith.addf %29, %7 : vector<2x8x8xf32>
    %cst_19 = arith.constant dense<0xFF800000> : vector<2x8xf32>
    %31 = vector.multi_reduction <maximumf>, %30, %cst_19 [2] : vector<2x8x8xf32> to vector<2x8xf32>
    %32 = vector.shape_cast %31 : vector<2x8xf32> to vector<2x8x1xf32>
    %33 = vector.broadcast %32 : vector<2x8x1xf32> to vector<2x8x8xf32>
    %34 = arith.subf %30, %33 : vector<2x8x8xf32>
    %35 = math.exp %34 : vector<2x8x8xf32>
    %cst_20 = arith.constant dense<0.000000e+00> : vector<2x8xf32>
    %36 = vector.multi_reduction <add>, %35, %cst_20 [2] : vector<2x8x8xf32> to vector<2x8xf32>
    %37 = vector.shape_cast %36 : vector<2x8xf32> to vector<2x8x1xf32>
    %38 = tpu.reciprocal %37 {approx = true} : vector<2x8x1xf32> -> vector<2x8x1xf32>
    %39 = vector.broadcast %38 : vector<2x8x1xf32> to vector<2x8x8xf32>
    %40 = arith.mulf %35, %39 : vector<2x8x8xf32>
    %41 = arith.truncf %40 : vector<2x8x8xf32> to vector<2x8x8xbf16>
    %42 = vector.extract_strided_slice %26 {offsets = [0, 0, 0], sizes = [2, 8, 32], strides = [1, 1, 1]} : vector<2x8x128xbf16> to vector<2x8x32xbf16>
    "tpu.trace_start"() <{level = 10 : i32, message = "bqk,bkd->bqd"}> : () -> ()
    %cst_21 = arith.constant dense<0.000000e+00> : vector<2x8x32xf32>
    %43 = tpu.matmul %41, %42, %cst_21 {dimension_numbers = #tpu.dot_dimension_numbers<[2], [1], [1], [2], [0, 0, 0, 1, 1, 2], [0], [0]>} : vector<2x8x8xbf16>, vector<2x8x32xbf16>, vector<2x8x32xf32> -> vector<2x8x32xf32>
    "tpu.trace_stop"() : () -> ()
    %44 = vector.shape_cast %43 : vector<2x8x32xf32> to vector<16x32xf32>
    %45 = vector.extract_strided_slice %20 {offsets = [0, 0, 32], sizes = [2, 8, 32], strides = [1, 1, 1]} : vector<2x8x128xbf16> to vector<2x8x32xbf16>
    %46 = vector.extract_strided_slice %23 {offsets = [0, 0, 32], sizes = [2, 8, 32], strides = [1, 1, 1]} : vector<2x8x128xbf16> to vector<2x8x32xbf16>
    "tpu.trace_start"() <{level = 10 : i32, message = "bqd,bkd->bqk"}> : () -> ()
    %cst_22 = arith.constant dense<0.000000e+00> : vector<2x8x8xf32>
    %47 = tpu.matmul %45, %46, %cst_22 {dimension_numbers = #tpu.dot_dimension_numbers<[2], [2], [1], [1], [0, 0, 0, 1, 1, 1], [0], [0]>} : vector<2x8x32xbf16>, vector<2x8x32xbf16>, vector<2x8x8xf32> -> vector<2x8x8xf32>
    "tpu.trace_stop"() : () -> ()
    %48 = arith.addf %47, %7 : vector<2x8x8xf32>
    %cst_23 = arith.constant dense<0xFF800000> : vector<2x8xf32>
    %49 = vector.multi_reduction <maximumf>, %48, %cst_23 [2] : vector<2x8x8xf32> to vector<2x8xf32>
    %50 = vector.shape_cast %49 : vector<2x8xf32> to vector<2x8x1xf32>
    %51 = vector.broadcast %50 : vector<2x8x1xf32> to vector<2x8x8xf32>
    %52 = arith.subf %48, %51 : vector<2x8x8xf32>
    %53 = math.exp %52 : vector<2x8x8xf32>
    %cst_24 = arith.constant dense<0.000000e+00> : vector<2x8xf32>
    %54 = vector.multi_reduction <add>, %53, %cst_24 [2] : vector<2x8x8xf32> to vector<2x8xf32>
    %55 = vector.shape_cast %54 : vector<2x8xf32> to vector<2x8x1xf32>
    %56 = tpu.reciprocal %55 {approx = true} : vector<2x8x1xf32> -> vector<2x8x1xf32>
    %57 = vector.broadcast %56 : vector<2x8x1xf32> to vector<2x8x8xf32>
    %58 = arith.mulf %53, %57 : vector<2x8x8xf32>
    %59 = arith.truncf %58 : vector<2x8x8xf32> to vector<2x8x8xbf16>
    %60 = vector.extract_strided_slice %26 {offsets = [0, 0, 32], sizes = [2, 8, 32], strides = [1, 1, 1]} : vector<2x8x128xbf16> to vector<2x8x32xbf16>
    "tpu.trace_start"() <{level = 10 : i32, message = "bqk,bkd->bqd"}> : () -> ()
    %cst_25 = arith.constant dense<0.000000e+00> : vector<2x8x32xf32>
    %61 = tpu.matmul %59, %60, %cst_25 {dimension_numbers = #tpu.dot_dimension_numbers<[2], [1], [1], [2], [0, 0, 0, 1, 1, 2], [0], [0]>} : vector<2x8x8xbf16>, vector<2x8x32xbf16>, vector<2x8x32xf32> -> vector<2x8x32xf32>
    "tpu.trace_stop"() : () -> ()
    %62 = vector.shape_cast %61 : vector<2x8x32xf32> to vector<16x32xf32>
    %63 = vector.extract_strided_slice %20 {offsets = [0, 0, 64], sizes = [2, 8, 32], strides = [1, 1, 1]} : vector<2x8x128xbf16> to vector<2x8x32xbf16>
    %64 = vector.extract_strided_slice %23 {offsets = [0, 0, 64], sizes = [2, 8, 32], strides = [1, 1, 1]} : vector<2x8x128xbf16> to vector<2x8x32xbf16>
    "tpu.trace_start"() <{level = 10 : i32, message = "bqd,bkd->bqk"}> : () -> ()
    %cst_26 = arith.constant dense<0.000000e+00> : vector<2x8x8xf32>
    %65 = tpu.matmul %63, %64, %cst_26 {dimension_numbers = #tpu.dot_dimension_numbers<[2], [2], [1], [1], [0, 0, 0, 1, 1, 1], [0], [0]>} : vector<2x8x32xbf16>, vector<2x8x32xbf16>, vector<2x8x8xf32> -> vector<2x8x8xf32>
    "tpu.trace_stop"() : () -> ()
    %66 = arith.addf %65, %7 : vector<2x8x8xf32>
    %cst_27 = arith.constant dense<0xFF800000> : vector<2x8xf32>
    %67 = vector.multi_reduction <maximumf>, %66, %cst_27 [2] : vector<2x8x8xf32> to vector<2x8xf32>
    %68 = vector.shape_cast %67 : vector<2x8xf32> to vector<2x8x1xf32>
    %69 = vector.broadcast %68 : vector<2x8x1xf32> to vector<2x8x8xf32>
    %70 = arith.subf %66, %69 : vector<2x8x8xf32>
    %71 = math.exp %70 : vector<2x8x8xf32>
    %cst_28 = arith.constant dense<0.000000e+00> : vector<2x8xf32>
    %72 = vector.multi_reduction <add>, %71, %cst_28 [2] : vector<2x8x8xf32> to vector<2x8xf32>
    %73 = vector.shape_cast %72 : vector<2x8xf32> to vector<2x8x1xf32>
    %74 = tpu.reciprocal %73 {approx = true} : vector<2x8x1xf32> -> vector<2x8x1xf32>
    %75 = vector.broadcast %74 : vector<2x8x1xf32> to vector<2x8x8xf32>
    %76 = arith.mulf %71, %75 : vector<2x8x8xf32>
    %77 = arith.truncf %76 : vector<2x8x8xf32> to vector<2x8x8xbf16>
    %78 = vector.extract_strided_slice %26 {offsets = [0, 0, 64], sizes = [2, 8, 32], strides = [1, 1, 1]} : vector<2x8x128xbf16> to vector<2x8x32xbf16>
    "tpu.trace_start"() <{level = 10 : i32, message = "bqk,bkd->bqd"}> : () -> ()
    %cst_29 = arith.constant dense<0.000000e+00> : vector<2x8x32xf32>
    %79 = tpu.matmul %77, %78, %cst_29 {dimension_numbers = #tpu.dot_dimension_numbers<[2], [1], [1], [2], [0, 0, 0, 1, 1, 2], [0], [0]>} : vector<2x8x8xbf16>, vector<2x8x32xbf16>, vector<2x8x32xf32> -> vector<2x8x32xf32>
    "tpu.trace_stop"() : () -> ()
    %80 = vector.shape_cast %79 : vector<2x8x32xf32> to vector<16x32xf32>
    %81 = vector.extract_strided_slice %20 {offsets = [0, 0, 96], sizes = [2, 8, 32], strides = [1, 1, 1]} : vector<2x8x128xbf16> to vector<2x8x32xbf16>
    %82 = vector.extract_strided_slice %23 {offsets = [0, 0, 96], sizes = [2, 8, 32], strides = [1, 1, 1]} : vector<2x8x128xbf16> to vector<2x8x32xbf16>
    "tpu.trace_start"() <{level = 10 : i32, message = "bqd,bkd->bqk"}> : () -> ()
    %cst_30 = arith.constant dense<0.000000e+00> : vector<2x8x8xf32>
    %83 = tpu.matmul %81, %82, %cst_30 {dimension_numbers = #tpu.dot_dimension_numbers<[2], [2], [1], [1], [0, 0, 0, 1, 1, 1], [0], [0]>} : vector<2x8x32xbf16>, vector<2x8x32xbf16>, vector<2x8x8xf32> -> vector<2x8x8xf32>
    "tpu.trace_stop"() : () -> ()
    %84 = arith.addf %83, %7 : vector<2x8x8xf32>
    %cst_31 = arith.constant dense<0xFF800000> : vector<2x8xf32>
    %85 = vector.multi_reduction <maximumf>, %84, %cst_31 [2] : vector<2x8x8xf32> to vector<2x8xf32>
    %86 = vector.shape_cast %85 : vector<2x8xf32> to vector<2x8x1xf32>
    %87 = vector.broadcast %86 : vector<2x8x1xf32> to vector<2x8x8xf32>
    %88 = arith.subf %84, %87 : vector<2x8x8xf32>
    %89 = math.exp %88 : vector<2x8x8xf32>
    %cst_32 = arith.constant dense<0.000000e+00> : vector<2x8xf32>
    %90 = vector.multi_reduction <add>, %89, %cst_32 [2] : vector<2x8x8xf32> to vector<2x8xf32>
    %91 = vector.shape_cast %90 : vector<2x8xf32> to vector<2x8x1xf32>
    %92 = tpu.reciprocal %91 {approx = true} : vector<2x8x1xf32> -> vector<2x8x1xf32>
    %93 = vector.broadcast %92 : vector<2x8x1xf32> to vector<2x8x8xf32>
    %94 = arith.mulf %89, %93 : vector<2x8x8xf32>
    %95 = arith.truncf %94 : vector<2x8x8xf32> to vector<2x8x8xbf16>
    %96 = vector.extract_strided_slice %26 {offsets = [0, 0, 96], sizes = [2, 8, 32], strides = [1, 1, 1]} : vector<2x8x128xbf16> to vector<2x8x32xbf16>
    "tpu.trace_start"() <{level = 10 : i32, message = "bqk,bkd->bqd"}> : () -> ()
    %cst_33 = arith.constant dense<0.000000e+00> : vector<2x8x32xf32>
    %97 = tpu.matmul %95, %96, %cst_33 {dimension_numbers = #tpu.dot_dimension_numbers<[2], [1], [1], [2], [0, 0, 0, 1, 1, 2], [0], [0]>} : vector<2x8x8xbf16>, vector<2x8x32xbf16>, vector<2x8x32xf32> -> vector<2x8x32xf32>
    "tpu.trace_stop"() : () -> ()
    %98 = vector.shape_cast %97 : vector<2x8x32xf32> to vector<16x32xf32>
    %99 = tpu.concatenate %44, %62, %80, %98 in 1 : vector<16x32xf32>, vector<16x32xf32>, vector<16x32xf32>, vector<16x32xf32> -> vector<16x128xf32>
    %c0_34 = arith.constant 0 : index
    %c0_35 = arith.constant 0 : index
    %c0_36 = arith.constant 0 : index
    %100 = vector.load %arg7[%c0_34, %c0_35, %c0_36] : memref<2x128x128xbf16, #tpu.memory_space<vmem>>, vector<1x128x128xbf16>
    %101 = vector.shape_cast %100 : vector<1x128x128xbf16> to vector<128x128xbf16>
    %102 = arith.truncf %99 : vector<16x128xf32> to vector<16x128xbf16>
    %cst_37 = arith.constant dense<0.000000e+00> : vector<16x128xf32>
    %103 = tpu.matmul %102, %101, %cst_37 {dimension_numbers = #tpu.dot_dimension_numbers<[1], [0], [0], [1], [0, 0, 1, 1], [], []>} : vector<16x128xbf16>, vector<128x128xbf16>, vector<16x128xf32> -> vector<16x128xf32>
    %c0_38 = arith.constant 0 : index
    %c0_39 = arith.constant 0 : index
    %c0_40 = arith.constant 0 : index
    %104 = vector.load %arg8[%c0_38, %c0_39, %c0_40] : memref<2x1x128xf32, #tpu.memory_space<vmem>>, vector<1x1x128xf32>
    %105 = vector.shape_cast %104 : vector<1x1x128xf32> to vector<1x128xf32>
    %106 = vector.broadcast %105 : vector<1x128xf32> to vector<16x128xf32>
    %107 = arith.addf %103, %106 : vector<16x128xf32>
    %108 = arith.addf %6, %107 : vector<16x128xf32>
    %109 = vector.extract_strided_slice %9 {offsets = [0, 0], sizes = [1, 128], strides = [1, 1]} : vector<6x128xf32> to vector<1x128xf32>
    %110 = vector.extract_strided_slice %9 {offsets = [1, 0], sizes = [1, 128], strides = [1, 1]} : vector<6x128xf32> to vector<1x128xf32>
    %cst_41 = arith.constant dense<0.000000e+00> : vector<16xf32>
    %111 = vector.multi_reduction <add>, %108, %cst_41 [1] : vector<16x128xf32> to vector<16xf32>
    %112 = vector.shape_cast %111 : vector<16xf32> to vector<16x1xf32>
    %cst_42 = arith.constant 1.280000e+02 : f32
    %113 = vector.broadcast %cst_42 : f32 to vector<16x1xf32>
    %114 = arith.divf %112, %113 : vector<16x1xf32>
    %115 = vector.broadcast %114 : vector<16x1xf32> to vector<16x128xf32>
    %116 = arith.subf %108, %115 : vector<16x128xf32>
    %117 = arith.mulf %116, %116 : vector<16x128xf32>
    %cst_43 = arith.constant dense<0.000000e+00> : vector<16xf32>
    %118 = vector.multi_reduction <add>, %117, %cst_43 [1] : vector<16x128xf32> to vector<16xf32>
    %119 = vector.shape_cast %118 : vector<16xf32> to vector<16x1xf32>
    %cst_44 = arith.constant 1.280000e+02 : f32
    %120 = vector.broadcast %cst_44 : f32 to vector<16x1xf32>
    %121 = arith.divf %119, %120 : vector<16x1xf32>
    %cst_45 = arith.constant 9.99999974E-6 : f32
    %122 = vector.broadcast %cst_45 : f32 to vector<16x1xf32>
    %123 = arith.addf %121, %122 : vector<16x1xf32>
    %124 = math.rsqrt %123 : vector<16x1xf32>
    %125 = vector.broadcast %124 : vector<16x1xf32> to vector<16x128xf32>
    %126 = arith.mulf %116, %125 : vector<16x128xf32>
    %127 = vector.broadcast %109 : vector<1x128xf32> to vector<16x128xf32>
    %128 = arith.mulf %126, %127 : vector<16x128xf32>
    %129 = vector.broadcast %110 : vector<1x128xf32> to vector<16x128xf32>
    %130 = arith.addf %128, %129 : vector<16x128xf32>
    %c0_46 = arith.constant 0 : index
    %c0_47 = arith.constant 0 : index
    %c0_48 = arith.constant 0 : index
    %131 = vector.load %arg3[%c0_46, %c0_47, %c0_48] : memref<2x16x128xf32, #tpu.memory_space<vmem>>, vector<1x16x128xf32>
    %132 = vector.shape_cast %131 : vector<1x16x128xf32> to vector<16x128xf32>
    %133 = arith.addf %130, %132 : vector<16x128xf32>
    %134 = vector.extract_strided_slice %9 {offsets = [2, 0], sizes = [1, 128], strides = [1, 1]} : vector<6x128xf32> to vector<1x128xf32>
    %135 = vector.extract_strided_slice %9 {offsets = [3, 0], sizes = [1, 128], strides = [1, 1]} : vector<6x128xf32> to vector<1x128xf32>
    %cst_49 = arith.constant dense<0.000000e+00> : vector<16xf32>
    %136 = vector.multi_reduction <add>, %133, %cst_49 [1] : vector<16x128xf32> to vector<16xf32>
    %137 = vector.shape_cast %136 : vector<16xf32> to vector<16x1xf32>
    %cst_50 = arith.constant 1.280000e+02 : f32
    %138 = vector.broadcast %cst_50 : f32 to vector<16x1xf32>
    %139 = arith.divf %137, %138 : vector<16x1xf32>
    %140 = vector.broadcast %139 : vector<16x1xf32> to vector<16x128xf32>
    %141 = arith.subf %133, %140 : vector<16x128xf32>
    %142 = arith.mulf %141, %141 : vector<16x128xf32>
    %cst_51 = arith.constant dense<0.000000e+00> : vector<16xf32>
    %143 = vector.multi_reduction <add>, %142, %cst_51 [1] : vector<16x128xf32> to vector<16xf32>
    %144 = vector.shape_cast %143 : vector<16xf32> to vector<16x1xf32>
    %cst_52 = arith.constant 1.280000e+02 : f32
    %145 = vector.broadcast %cst_52 : f32 to vector<16x1xf32>
    %146 = arith.divf %144, %145 : vector<16x1xf32>
    %cst_53 = arith.constant 9.99999974E-6 : f32
    %147 = vector.broadcast %cst_53 : f32 to vector<16x1xf32>
    %148 = arith.addf %146, %147 : vector<16x1xf32>
    %149 = math.rsqrt %148 : vector<16x1xf32>
    %150 = vector.broadcast %149 : vector<16x1xf32> to vector<16x128xf32>
    %151 = arith.mulf %141, %150 : vector<16x128xf32>
    %152 = vector.broadcast %134 : vector<1x128xf32> to vector<16x128xf32>
    %153 = arith.mulf %151, %152 : vector<16x128xf32>
    %154 = vector.broadcast %135 : vector<1x128xf32> to vector<16x128xf32>
    %155 = arith.addf %153, %154 : vector<16x128xf32>
    %c0_54 = arith.constant 0 : index
    %c0_55 = arith.constant 0 : index
    %c0_56 = arith.constant 0 : index
    %156 = vector.load %arg10[%c0_54, %c0_55, %c0_56] : memref<2x128x256xbf16, #tpu.memory_space<vmem>>, vector<1x128x256xbf16>
    %157 = vector.shape_cast %156 : vector<1x128x256xbf16> to vector<128x256xbf16>
    %158 = arith.truncf %155 : vector<16x128xf32> to vector<16x128xbf16>
    %cst_57 = arith.constant dense<0.000000e+00> : vector<16x256xf32>
    %159 = tpu.matmul %158, %157, %cst_57 {dimension_numbers = #tpu.dot_dimension_numbers<[1], [0], [0], [1], [0, 0, 1, 1], [], []>} : vector<16x128xbf16>, vector<128x256xbf16>, vector<16x256xf32> -> vector<16x256xf32>
    %c0_58 = arith.constant 0 : index
    %c0_59 = arith.constant 0 : index
    %c0_60 = arith.constant 0 : index
    %160 = vector.load %arg11[%c0_58, %c0_59, %c0_60] : memref<2x1x256xf32, #tpu.memory_space<vmem>>, vector<1x1x256xf32>
    %161 = vector.shape_cast %160 : vector<1x1x256xf32> to vector<1x256xf32>
    %162 = vector.broadcast %161 : vector<1x256xf32> to vector<16x256xf32>
    %163 = arith.addf %159, %162 : vector<16x256xf32>
    %cst_61 = arith.constant 0.000000e+00 : f32
    %164 = vector.broadcast %cst_61 : f32 to vector<16x256xf32>
    %165 = arith.maximumf %163, %164 : vector<16x256xf32>
    %c0_62 = arith.constant 0 : index
    %c0_63 = arith.constant 0 : index
    %c0_64 = arith.constant 0 : index
    %166 = vector.load %arg12[%c0_62, %c0_63, %c0_64] : memref<2x256x128xbf16, #tpu.memory_space<vmem>>, vector<1x256x128xbf16>
    %167 = vector.shape_cast %166 : vector<1x256x128xbf16> to vector<256x128xbf16>
    %168 = arith.truncf %165 : vector<16x256xf32> to vector<16x256xbf16>
    %cst_65 = arith.constant dense<0.000000e+00> : vector<16x128xf32>
    %169 = tpu.matmul %168, %167, %cst_65 {dimension_numbers = #tpu.dot_dimension_numbers<[1], [0], [0], [1], [0, 0, 1, 1], [], []>} : vector<16x256xbf16>, vector<256x128xbf16>, vector<16x128xf32> -> vector<16x128xf32>
    %c0_66 = arith.constant 0 : index
    %c0_67 = arith.constant 0 : index
    %c0_68 = arith.constant 0 : index
    %170 = vector.load %arg13[%c0_66, %c0_67, %c0_68] : memref<2x1x128xf32, #tpu.memory_space<vmem>>, vector<1x1x128xf32>
    %171 = vector.shape_cast %170 : vector<1x1x128xf32> to vector<1x128xf32>
    %172 = vector.broadcast %171 : vector<1x128xf32> to vector<16x128xf32>
    %173 = arith.addf %169, %172 : vector<16x128xf32>
    %174 = arith.addf %155, %173 : vector<16x128xf32>
    %175 = vector.extract_strided_slice %9 {offsets = [4, 0], sizes = [1, 128], strides = [1, 1]} : vector<6x128xf32> to vector<1x128xf32>
    %176 = vector.extract_strided_slice %9 {offsets = [5, 0], sizes = [1, 128], strides = [1, 1]} : vector<6x128xf32> to vector<1x128xf32>
    %cst_69 = arith.constant dense<0.000000e+00> : vector<16xf32>
    %177 = vector.multi_reduction <add>, %174, %cst_69 [1] : vector<16x128xf32> to vector<16xf32>
    %178 = vector.shape_cast %177 : vector<16xf32> to vector<16x1xf32>
    %cst_70 = arith.constant 1.280000e+02 : f32
    %179 = vector.broadcast %cst_70 : f32 to vector<16x1xf32>
    %180 = arith.divf %178, %179 : vector<16x1xf32>
    %181 = vector.broadcast %180 : vector<16x1xf32> to vector<16x128xf32>
    %182 = arith.subf %174, %181 : vector<16x128xf32>
    %183 = arith.mulf %182, %182 : vector<16x128xf32>
    %cst_71 = arith.constant dense<0.000000e+00> : vector<16xf32>
    %184 = vector.multi_reduction <add>, %183, %cst_71 [1] : vector<16x128xf32> to vector<16xf32>
    %185 = vector.shape_cast %184 : vector<16xf32> to vector<16x1xf32>
    %cst_72 = arith.constant 1.280000e+02 : f32
    %186 = vector.broadcast %cst_72 : f32 to vector<16x1xf32>
    %187 = arith.divf %185, %186 : vector<16x1xf32>
    %cst_73 = arith.constant 9.99999974E-6 : f32
    %188 = vector.broadcast %cst_73 : f32 to vector<16x1xf32>
    %189 = arith.addf %187, %188 : vector<16x1xf32>
    %190 = math.rsqrt %189 : vector<16x1xf32>
    %191 = vector.broadcast %190 : vector<16x1xf32> to vector<16x128xf32>
    %192 = arith.mulf %182, %191 : vector<16x128xf32>
    %193 = vector.broadcast %175 : vector<1x128xf32> to vector<16x128xf32>
    %194 = arith.mulf %192, %193 : vector<16x128xf32>
    %195 = vector.broadcast %176 : vector<1x128xf32> to vector<16x128xf32>
    %196 = arith.addf %194, %195 : vector<16x128xf32>
    %c1 = arith.constant 1 : index
    %c0_74 = arith.constant 0 : index
    %c0_75 = arith.constant 0 : index
    %197 = vector.load %arg9[%c1, %c0_74, %c0_75] : memref<2x6x128xf32, #tpu.memory_space<vmem>>, vector<1x6x128xf32>
    %198 = vector.shape_cast %197 : vector<1x6x128xf32> to vector<6x128xf32>
    %c1_76 = arith.constant 1 : index
    %c0_77 = arith.constant 0 : index
    %c0_78 = arith.constant 0 : index
    %199 = vector.load %arg5[%c1_76, %c0_77, %c0_78] : memref<2x128x384xbf16, #tpu.memory_space<vmem>>, vector<1x128x384xbf16>
    %200 = vector.shape_cast %199 : vector<1x128x384xbf16> to vector<128x384xbf16>
    %201 = arith.truncf %196 : vector<16x128xf32> to vector<16x128xbf16>
    %cst_79 = arith.constant dense<0.000000e+00> : vector<16x384xf32>
    %202 = tpu.matmul %201, %200, %cst_79 {dimension_numbers = #tpu.dot_dimension_numbers<[1], [0], [0], [1], [0, 0, 1, 1], [], []>} : vector<16x128xbf16>, vector<128x384xbf16>, vector<16x384xf32> -> vector<16x384xf32>
    %c1_80 = arith.constant 1 : index
    %c0_81 = arith.constant 0 : index
    %c0_82 = arith.constant 0 : index
    %203 = vector.load %arg6[%c1_80, %c0_81, %c0_82] : memref<2x1x384xf32, #tpu.memory_space<vmem>>, vector<1x1x384xf32>
    %204 = vector.shape_cast %203 : vector<1x1x384xf32> to vector<1x384xf32>
    %205 = vector.broadcast %204 : vector<1x384xf32> to vector<16x384xf32>
    %206 = arith.addf %202, %205 : vector<16x384xf32>
    %207 = vector.extract_strided_slice %206 {offsets = [0, 0], sizes = [16, 128], strides = [1, 1]} : vector<16x384xf32> to vector<16x128xf32>
    %208 = arith.truncf %207 : vector<16x128xf32> to vector<16x128xbf16>
    %209 = vector.shape_cast %208 : vector<16x128xbf16> to vector<2x8x128xbf16>
    %210 = vector.extract_strided_slice %206 {offsets = [0, 128], sizes = [16, 128], strides = [1, 1]} : vector<16x384xf32> to vector<16x128xf32>
    %211 = arith.truncf %210 : vector<16x128xf32> to vector<16x128xbf16>
    %212 = vector.shape_cast %211 : vector<16x128xbf16> to vector<2x8x128xbf16>
    %213 = vector.extract_strided_slice %206 {offsets = [0, 256], sizes = [16, 128], strides = [1, 1]} : vector<16x384xf32> to vector<16x128xf32>
    %214 = arith.truncf %213 : vector<16x128xf32> to vector<16x128xbf16>
    %215 = vector.shape_cast %214 : vector<16x128xbf16> to vector<2x8x128xbf16>
    %216 = vector.extract_strided_slice %209 {offsets = [0, 0, 0], sizes = [2, 8, 32], strides = [1, 1, 1]} : vector<2x8x128xbf16> to vector<2x8x32xbf16>
    %217 = vector.extract_strided_slice %212 {offsets = [0, 0, 0], sizes = [2, 8, 32], strides = [1, 1, 1]} : vector<2x8x128xbf16> to vector<2x8x32xbf16>
    "tpu.trace_start"() <{level = 10 : i32, message = "bqd,bkd->bqk"}> : () -> ()
    %cst_83 = arith.constant dense<0.000000e+00> : vector<2x8x8xf32>
    %218 = tpu.matmul %216, %217, %cst_83 {dimension_numbers = #tpu.dot_dimension_numbers<[2], [2], [1], [1], [0, 0, 0, 1, 1, 1], [0], [0]>} : vector<2x8x32xbf16>, vector<2x8x32xbf16>, vector<2x8x8xf32> -> vector<2x8x8xf32>
    "tpu.trace_stop"() : () -> ()
    %219 = arith.addf %218, %7 : vector<2x8x8xf32>
    %cst_84 = arith.constant dense<0xFF800000> : vector<2x8xf32>
    %220 = vector.multi_reduction <maximumf>, %219, %cst_84 [2] : vector<2x8x8xf32> to vector<2x8xf32>
    %221 = vector.shape_cast %220 : vector<2x8xf32> to vector<2x8x1xf32>
    %222 = vector.broadcast %221 : vector<2x8x1xf32> to vector<2x8x8xf32>
    %223 = arith.subf %219, %222 : vector<2x8x8xf32>
    %224 = math.exp %223 : vector<2x8x8xf32>
    %cst_85 = arith.constant dense<0.000000e+00> : vector<2x8xf32>
    %225 = vector.multi_reduction <add>, %224, %cst_85 [2] : vector<2x8x8xf32> to vector<2x8xf32>
    %226 = vector.shape_cast %225 : vector<2x8xf32> to vector<2x8x1xf32>
    %227 = tpu.reciprocal %226 {approx = true} : vector<2x8x1xf32> -> vector<2x8x1xf32>
    %228 = vector.broadcast %227 : vector<2x8x1xf32> to vector<2x8x8xf32>
    %229 = arith.mulf %224, %228 : vector<2x8x8xf32>
    %230 = arith.truncf %229 : vector<2x8x8xf32> to vector<2x8x8xbf16>
    %231 = vector.extract_strided_slice %215 {offsets = [0, 0, 0], sizes = [2, 8, 32], strides = [1, 1, 1]} : vector<2x8x128xbf16> to vector<2x8x32xbf16>
    "tpu.trace_start"() <{level = 10 : i32, message = "bqk,bkd->bqd"}> : () -> ()
    %cst_86 = arith.constant dense<0.000000e+00> : vector<2x8x32xf32>
    %232 = tpu.matmul %230, %231, %cst_86 {dimension_numbers = #tpu.dot_dimension_numbers<[2], [1], [1], [2], [0, 0, 0, 1, 1, 2], [0], [0]>} : vector<2x8x8xbf16>, vector<2x8x32xbf16>, vector<2x8x32xf32> -> vector<2x8x32xf32>
    "tpu.trace_stop"() : () -> ()
    %233 = vector.shape_cast %232 : vector<2x8x32xf32> to vector<16x32xf32>
    %234 = vector.extract_strided_slice %209 {offsets = [0, 0, 32], sizes = [2, 8, 32], strides = [1, 1, 1]} : vector<2x8x128xbf16> to vector<2x8x32xbf16>
    %235 = vector.extract_strided_slice %212 {offsets = [0, 0, 32], sizes = [2, 8, 32], strides = [1, 1, 1]} : vector<2x8x128xbf16> to vector<2x8x32xbf16>
    "tpu.trace_start"() <{level = 10 : i32, message = "bqd,bkd->bqk"}> : () -> ()
    %cst_87 = arith.constant dense<0.000000e+00> : vector<2x8x8xf32>
    %236 = tpu.matmul %234, %235, %cst_87 {dimension_numbers = #tpu.dot_dimension_numbers<[2], [2], [1], [1], [0, 0, 0, 1, 1, 1], [0], [0]>} : vector<2x8x32xbf16>, vector<2x8x32xbf16>, vector<2x8x8xf32> -> vector<2x8x8xf32>
    "tpu.trace_stop"() : () -> ()
    %237 = arith.addf %236, %7 : vector<2x8x8xf32>
    %cst_88 = arith.constant dense<0xFF800000> : vector<2x8xf32>
    %238 = vector.multi_reduction <maximumf>, %237, %cst_88 [2] : vector<2x8x8xf32> to vector<2x8xf32>
    %239 = vector.shape_cast %238 : vector<2x8xf32> to vector<2x8x1xf32>
    %240 = vector.broadcast %239 : vector<2x8x1xf32> to vector<2x8x8xf32>
    %241 = arith.subf %237, %240 : vector<2x8x8xf32>
    %242 = math.exp %241 : vector<2x8x8xf32>
    %cst_89 = arith.constant dense<0.000000e+00> : vector<2x8xf32>
    %243 = vector.multi_reduction <add>, %242, %cst_89 [2] : vector<2x8x8xf32> to vector<2x8xf32>
    %244 = vector.shape_cast %243 : vector<2x8xf32> to vector<2x8x1xf32>
    %245 = tpu.reciprocal %244 {approx = true} : vector<2x8x1xf32> -> vector<2x8x1xf32>
    %246 = vector.broadcast %245 : vector<2x8x1xf32> to vector<2x8x8xf32>
    %247 = arith.mulf %242, %246 : vector<2x8x8xf32>
    %248 = arith.truncf %247 : vector<2x8x8xf32> to vector<2x8x8xbf16>
    %249 = vector.extract_strided_slice %215 {offsets = [0, 0, 32], sizes = [2, 8, 32], strides = [1, 1, 1]} : vector<2x8x128xbf16> to vector<2x8x32xbf16>
    "tpu.trace_start"() <{level = 10 : i32, message = "bqk,bkd->bqd"}> : () -> ()
    %cst_90 = arith.constant dense<0.000000e+00> : vector<2x8x32xf32>
    %250 = tpu.matmul %248, %249, %cst_90 {dimension_numbers = #tpu.dot_dimension_numbers<[2], [1], [1], [2], [0, 0, 0, 1, 1, 2], [0], [0]>} : vector<2x8x8xbf16>, vector<2x8x32xbf16>, vector<2x8x32xf32> -> vector<2x8x32xf32>
    "tpu.trace_stop"() : () -> ()
    %251 = vector.shape_cast %250 : vector<2x8x32xf32> to vector<16x32xf32>
    %252 = vector.extract_strided_slice %209 {offsets = [0, 0, 64], sizes = [2, 8, 32], strides = [1, 1, 1]} : vector<2x8x128xbf16> to vector<2x8x32xbf16>
    %253 = vector.extract_strided_slice %212 {offsets = [0, 0, 64], sizes = [2, 8, 32], strides = [1, 1, 1]} : vector<2x8x128xbf16> to vector<2x8x32xbf16>
    "tpu.trace_start"() <{level = 10 : i32, message = "bqd,bkd->bqk"}> : () -> ()
    %cst_91 = arith.constant dense<0.000000e+00> : vector<2x8x8xf32>
    %254 = tpu.matmul %252, %253, %cst_91 {dimension_numbers = #tpu.dot_dimension_numbers<[2], [2], [1], [1], [0, 0, 0, 1, 1, 1], [0], [0]>} : vector<2x8x32xbf16>, vector<2x8x32xbf16>, vector<2x8x8xf32> -> vector<2x8x8xf32>
    "tpu.trace_stop"() : () -> ()
    %255 = arith.addf %254, %7 : vector<2x8x8xf32>
    %cst_92 = arith.constant dense<0xFF800000> : vector<2x8xf32>
    %256 = vector.multi_reduction <maximumf>, %255, %cst_92 [2] : vector<2x8x8xf32> to vector<2x8xf32>
    %257 = vector.shape_cast %256 : vector<2x8xf32> to vector<2x8x1xf32>
    %258 = vector.broadcast %257 : vector<2x8x1xf32> to vector<2x8x8xf32>
    %259 = arith.subf %255, %258 : vector<2x8x8xf32>
    %260 = math.exp %259 : vector<2x8x8xf32>
    %cst_93 = arith.constant dense<0.000000e+00> : vector<2x8xf32>
    %261 = vector.multi_reduction <add>, %260, %cst_93 [2] : vector<2x8x8xf32> to vector<2x8xf32>
    %262 = vector.shape_cast %261 : vector<2x8xf32> to vector<2x8x1xf32>
    %263 = tpu.reciprocal %262 {approx = true} : vector<2x8x1xf32> -> vector<2x8x1xf32>
    %264 = vector.broadcast %263 : vector<2x8x1xf32> to vector<2x8x8xf32>
    %265 = arith.mulf %260, %264 : vector<2x8x8xf32>
    %266 = arith.truncf %265 : vector<2x8x8xf32> to vector<2x8x8xbf16>
    %267 = vector.extract_strided_slice %215 {offsets = [0, 0, 64], sizes = [2, 8, 32], strides = [1, 1, 1]} : vector<2x8x128xbf16> to vector<2x8x32xbf16>
    "tpu.trace_start"() <{level = 10 : i32, message = "bqk,bkd->bqd"}> : () -> ()
    %cst_94 = arith.constant dense<0.000000e+00> : vector<2x8x32xf32>
    %268 = tpu.matmul %266, %267, %cst_94 {dimension_numbers = #tpu.dot_dimension_numbers<[2], [1], [1], [2], [0, 0, 0, 1, 1, 2], [0], [0]>} : vector<2x8x8xbf16>, vector<2x8x32xbf16>, vector<2x8x32xf32> -> vector<2x8x32xf32>
    "tpu.trace_stop"() : () -> ()
    %269 = vector.shape_cast %268 : vector<2x8x32xf32> to vector<16x32xf32>
    %270 = vector.extract_strided_slice %209 {offsets = [0, 0, 96], sizes = [2, 8, 32], strides = [1, 1, 1]} : vector<2x8x128xbf16> to vector<2x8x32xbf16>
    %271 = vector.extract_strided_slice %212 {offsets = [0, 0, 96], sizes = [2, 8, 32], strides = [1, 1, 1]} : vector<2x8x128xbf16> to vector<2x8x32xbf16>
    "tpu.trace_start"() <{level = 10 : i32, message = "bqd,bkd->bqk"}> : () -> ()
    %cst_95 = arith.constant dense<0.000000e+00> : vector<2x8x8xf32>
    %272 = tpu.matmul %270, %271, %cst_95 {dimension_numbers = #tpu.dot_dimension_numbers<[2], [2], [1], [1], [0, 0, 0, 1, 1, 1], [0], [0]>} : vector<2x8x32xbf16>, vector<2x8x32xbf16>, vector<2x8x8xf32> -> vector<2x8x8xf32>
    "tpu.trace_stop"() : () -> ()
    %273 = arith.addf %272, %7 : vector<2x8x8xf32>
    %cst_96 = arith.constant dense<0xFF800000> : vector<2x8xf32>
    %274 = vector.multi_reduction <maximumf>, %273, %cst_96 [2] : vector<2x8x8xf32> to vector<2x8xf32>
    %275 = vector.shape_cast %274 : vector<2x8xf32> to vector<2x8x1xf32>
    %276 = vector.broadcast %275 : vector<2x8x1xf32> to vector<2x8x8xf32>
    %277 = arith.subf %273, %276 : vector<2x8x8xf32>
    %278 = math.exp %277 : vector<2x8x8xf32>
    %cst_97 = arith.constant dense<0.000000e+00> : vector<2x8xf32>
    %279 = vector.multi_reduction <add>, %278, %cst_97 [2] : vector<2x8x8xf32> to vector<2x8xf32>
    %280 = vector.shape_cast %279 : vector<2x8xf32> to vector<2x8x1xf32>
    %281 = tpu.reciprocal %280 {approx = true} : vector<2x8x1xf32> -> vector<2x8x1xf32>
    %282 = vector.broadcast %281 : vector<2x8x1xf32> to vector<2x8x8xf32>
    %283 = arith.mulf %278, %282 : vector<2x8x8xf32>
    %284 = arith.truncf %283 : vector<2x8x8xf32> to vector<2x8x8xbf16>
    %285 = vector.extract_strided_slice %215 {offsets = [0, 0, 96], sizes = [2, 8, 32], strides = [1, 1, 1]} : vector<2x8x128xbf16> to vector<2x8x32xbf16>
    "tpu.trace_start"() <{level = 10 : i32, message = "bqk,bkd->bqd"}> : () -> ()
    %cst_98 = arith.constant dense<0.000000e+00> : vector<2x8x32xf32>
    %286 = tpu.matmul %284, %285, %cst_98 {dimension_numbers = #tpu.dot_dimension_numbers<[2], [1], [1], [2], [0, 0, 0, 1, 1, 2], [0], [0]>} : vector<2x8x8xbf16>, vector<2x8x32xbf16>, vector<2x8x32xf32> -> vector<2x8x32xf32>
    "tpu.trace_stop"() : () -> ()
    %287 = vector.shape_cast %286 : vector<2x8x32xf32> to vector<16x32xf32>
    %288 = tpu.concatenate %233, %251, %269, %287 in 1 : vector<16x32xf32>, vector<16x32xf32>, vector<16x32xf32>, vector<16x32xf32> -> vector<16x128xf32>
    %c1_99 = arith.constant 1 : index
    %c0_100 = arith.constant 0 : index
    %c0_101 = arith.constant 0 : index
    %289 = vector.load %arg7[%c1_99, %c0_100, %c0_101] : memref<2x128x128xbf16, #tpu.memory_space<vmem>>, vector<1x128x128xbf16>
    %290 = vector.shape_cast %289 : vector<1x128x128xbf16> to vector<128x128xbf16>
    %291 = arith.truncf %288 : vector<16x128xf32> to vector<16x128xbf16>
    %cst_102 = arith.constant dense<0.000000e+00> : vector<16x128xf32>
    %292 = tpu.matmul %291, %290, %cst_102 {dimension_numbers = #tpu.dot_dimension_numbers<[1], [0], [0], [1], [0, 0, 1, 1], [], []>} : vector<16x128xbf16>, vector<128x128xbf16>, vector<16x128xf32> -> vector<16x128xf32>
    %c1_103 = arith.constant 1 : index
    %c0_104 = arith.constant 0 : index
    %c0_105 = arith.constant 0 : index
    %293 = vector.load %arg8[%c1_103, %c0_104, %c0_105] : memref<2x1x128xf32, #tpu.memory_space<vmem>>, vector<1x1x128xf32>
    %294 = vector.shape_cast %293 : vector<1x1x128xf32> to vector<1x128xf32>
    %295 = vector.broadcast %294 : vector<1x128xf32> to vector<16x128xf32>
    %296 = arith.addf %292, %295 : vector<16x128xf32>
    %297 = arith.addf %196, %296 : vector<16x128xf32>
    %298 = vector.extract_strided_slice %198 {offsets = [0, 0], sizes = [1, 128], strides = [1, 1]} : vector<6x128xf32> to vector<1x128xf32>
    %299 = vector.extract_strided_slice %198 {offsets = [1, 0], sizes = [1, 128], strides = [1, 1]} : vector<6x128xf32> to vector<1x128xf32>
    %cst_106 = arith.constant dense<0.000000e+00> : vector<16xf32>
    %300 = vector.multi_reduction <add>, %297, %cst_106 [1] : vector<16x128xf32> to vector<16xf32>
    %301 = vector.shape_cast %300 : vector<16xf32> to vector<16x1xf32>
    %cst_107 = arith.constant 1.280000e+02 : f32
    %302 = vector.broadcast %cst_107 : f32 to vector<16x1xf32>
    %303 = arith.divf %301, %302 : vector<16x1xf32>
    %304 = vector.broadcast %303 : vector<16x1xf32> to vector<16x128xf32>
    %305 = arith.subf %297, %304 : vector<16x128xf32>
    %306 = arith.mulf %305, %305 : vector<16x128xf32>
    %cst_108 = arith.constant dense<0.000000e+00> : vector<16xf32>
    %307 = vector.multi_reduction <add>, %306, %cst_108 [1] : vector<16x128xf32> to vector<16xf32>
    %308 = vector.shape_cast %307 : vector<16xf32> to vector<16x1xf32>
    %cst_109 = arith.constant 1.280000e+02 : f32
    %309 = vector.broadcast %cst_109 : f32 to vector<16x1xf32>
    %310 = arith.divf %308, %309 : vector<16x1xf32>
    %cst_110 = arith.constant 9.99999974E-6 : f32
    %311 = vector.broadcast %cst_110 : f32 to vector<16x1xf32>
    %312 = arith.addf %310, %311 : vector<16x1xf32>
    %313 = math.rsqrt %312 : vector<16x1xf32>
    %314 = vector.broadcast %313 : vector<16x1xf32> to vector<16x128xf32>
    %315 = arith.mulf %305, %314 : vector<16x128xf32>
    %316 = vector.broadcast %298 : vector<1x128xf32> to vector<16x128xf32>
    %317 = arith.mulf %315, %316 : vector<16x128xf32>
    %318 = vector.broadcast %299 : vector<1x128xf32> to vector<16x128xf32>
    %319 = arith.addf %317, %318 : vector<16x128xf32>
    %c1_111 = arith.constant 1 : index
    %c0_112 = arith.constant 0 : index
    %c0_113 = arith.constant 0 : index
    %320 = vector.load %arg3[%c1_111, %c0_112, %c0_113] : memref<2x16x128xf32, #tpu.memory_space<vmem>>, vector<1x16x128xf32>
    %321 = vector.shape_cast %320 : vector<1x16x128xf32> to vector<16x128xf32>
    %322 = arith.addf %319, %321 : vector<16x128xf32>
    %323 = vector.extract_strided_slice %198 {offsets = [2, 0], sizes = [1, 128], strides = [1, 1]} : vector<6x128xf32> to vector<1x128xf32>
    %324 = vector.extract_strided_slice %198 {offsets = [3, 0], sizes = [1, 128], strides = [1, 1]} : vector<6x128xf32> to vector<1x128xf32>
    %cst_114 = arith.constant dense<0.000000e+00> : vector<16xf32>
    %325 = vector.multi_reduction <add>, %322, %cst_114 [1] : vector<16x128xf32> to vector<16xf32>
    %326 = vector.shape_cast %325 : vector<16xf32> to vector<16x1xf32>
    %cst_115 = arith.constant 1.280000e+02 : f32
    %327 = vector.broadcast %cst_115 : f32 to vector<16x1xf32>
    %328 = arith.divf %326, %327 : vector<16x1xf32>
    %329 = vector.broadcast %328 : vector<16x1xf32> to vector<16x128xf32>
    %330 = arith.subf %322, %329 : vector<16x128xf32>
    %331 = arith.mulf %330, %330 : vector<16x128xf32>
    %cst_116 = arith.constant dense<0.000000e+00> : vector<16xf32>
    %332 = vector.multi_reduction <add>, %331, %cst_116 [1] : vector<16x128xf32> to vector<16xf32>
    %333 = vector.shape_cast %332 : vector<16xf32> to vector<16x1xf32>
    %cst_117 = arith.constant 1.280000e+02 : f32
    %334 = vector.broadcast %cst_117 : f32 to vector<16x1xf32>
    %335 = arith.divf %333, %334 : vector<16x1xf32>
    %cst_118 = arith.constant 9.99999974E-6 : f32
    %336 = vector.broadcast %cst_118 : f32 to vector<16x1xf32>
    %337 = arith.addf %335, %336 : vector<16x1xf32>
    %338 = math.rsqrt %337 : vector<16x1xf32>
    %339 = vector.broadcast %338 : vector<16x1xf32> to vector<16x128xf32>
    %340 = arith.mulf %330, %339 : vector<16x128xf32>
    %341 = vector.broadcast %323 : vector<1x128xf32> to vector<16x128xf32>
    %342 = arith.mulf %340, %341 : vector<16x128xf32>
    %343 = vector.broadcast %324 : vector<1x128xf32> to vector<16x128xf32>
    %344 = arith.addf %342, %343 : vector<16x128xf32>
    %c1_119 = arith.constant 1 : index
    %c0_120 = arith.constant 0 : index
    %c0_121 = arith.constant 0 : index
    %345 = vector.load %arg10[%c1_119, %c0_120, %c0_121] : memref<2x128x256xbf16, #tpu.memory_space<vmem>>, vector<1x128x256xbf16>
    %346 = vector.shape_cast %345 : vector<1x128x256xbf16> to vector<128x256xbf16>
    %347 = arith.truncf %344 : vector<16x128xf32> to vector<16x128xbf16>
    %cst_122 = arith.constant dense<0.000000e+00> : vector<16x256xf32>
    %348 = tpu.matmul %347, %346, %cst_122 {dimension_numbers = #tpu.dot_dimension_numbers<[1], [0], [0], [1], [0, 0, 1, 1], [], []>} : vector<16x128xbf16>, vector<128x256xbf16>, vector<16x256xf32> -> vector<16x256xf32>
    %c1_123 = arith.constant 1 : index
    %c0_124 = arith.constant 0 : index
    %c0_125 = arith.constant 0 : index
    %349 = vector.load %arg11[%c1_123, %c0_124, %c0_125] : memref<2x1x256xf32, #tpu.memory_space<vmem>>, vector<1x1x256xf32>
    %350 = vector.shape_cast %349 : vector<1x1x256xf32> to vector<1x256xf32>
    %351 = vector.broadcast %350 : vector<1x256xf32> to vector<16x256xf32>
    %352 = arith.addf %348, %351 : vector<16x256xf32>
    %cst_126 = arith.constant 0.000000e+00 : f32
    %353 = vector.broadcast %cst_126 : f32 to vector<16x256xf32>
    %354 = arith.maximumf %352, %353 : vector<16x256xf32>
    %c1_127 = arith.constant 1 : index
    %c0_128 = arith.constant 0 : index
    %c0_129 = arith.constant 0 : index
    %355 = vector.load %arg12[%c1_127, %c0_128, %c0_129] : memref<2x256x128xbf16, #tpu.memory_space<vmem>>, vector<1x256x128xbf16>
    %356 = vector.shape_cast %355 : vector<1x256x128xbf16> to vector<256x128xbf16>
    %357 = arith.truncf %354 : vector<16x256xf32> to vector<16x256xbf16>
    %cst_130 = arith.constant dense<0.000000e+00> : vector<16x128xf32>
    %358 = tpu.matmul %357, %356, %cst_130 {dimension_numbers = #tpu.dot_dimension_numbers<[1], [0], [0], [1], [0, 0, 1, 1], [], []>} : vector<16x256xbf16>, vector<256x128xbf16>, vector<16x128xf32> -> vector<16x128xf32>
    %c1_131 = arith.constant 1 : index
    %c0_132 = arith.constant 0 : index
    %c0_133 = arith.constant 0 : index
    %359 = vector.load %arg13[%c1_131, %c0_132, %c0_133] : memref<2x1x128xf32, #tpu.memory_space<vmem>>, vector<1x1x128xf32>
    %360 = vector.shape_cast %359 : vector<1x1x128xf32> to vector<1x128xf32>
    %361 = vector.broadcast %360 : vector<1x128xf32> to vector<16x128xf32>
    %362 = arith.addf %358, %361 : vector<16x128xf32>
    %363 = arith.addf %344, %362 : vector<16x128xf32>
    %364 = vector.extract_strided_slice %198 {offsets = [4, 0], sizes = [1, 128], strides = [1, 1]} : vector<6x128xf32> to vector<1x128xf32>
    %365 = vector.extract_strided_slice %198 {offsets = [5, 0], sizes = [1, 128], strides = [1, 1]} : vector<6x128xf32> to vector<1x128xf32>
    %cst_134 = arith.constant dense<0.000000e+00> : vector<16xf32>
    %366 = vector.multi_reduction <add>, %363, %cst_134 [1] : vector<16x128xf32> to vector<16xf32>
    %367 = vector.shape_cast %366 : vector<16xf32> to vector<16x1xf32>
    %cst_135 = arith.constant 1.280000e+02 : f32
    %368 = vector.broadcast %cst_135 : f32 to vector<16x1xf32>
    %369 = arith.divf %367, %368 : vector<16x1xf32>
    %370 = vector.broadcast %369 : vector<16x1xf32> to vector<16x128xf32>
    %371 = arith.subf %363, %370 : vector<16x128xf32>
    %372 = arith.mulf %371, %371 : vector<16x128xf32>
    %cst_136 = arith.constant dense<0.000000e+00> : vector<16xf32>
    %373 = vector.multi_reduction <add>, %372, %cst_136 [1] : vector<16x128xf32> to vector<16xf32>
    %374 = vector.shape_cast %373 : vector<16xf32> to vector<16x1xf32>
    %cst_137 = arith.constant 1.280000e+02 : f32
    %375 = vector.broadcast %cst_137 : f32 to vector<16x1xf32>
    %376 = arith.divf %374, %375 : vector<16x1xf32>
    %cst_138 = arith.constant 9.99999974E-6 : f32
    %377 = vector.broadcast %cst_138 : f32 to vector<16x1xf32>
    %378 = arith.addf %376, %377 : vector<16x1xf32>
    %379 = math.rsqrt %378 : vector<16x1xf32>
    %380 = vector.broadcast %379 : vector<16x1xf32> to vector<16x128xf32>
    %381 = arith.mulf %371, %380 : vector<16x128xf32>
    %382 = vector.broadcast %364 : vector<1x128xf32> to vector<16x128xf32>
    %383 = arith.mulf %381, %382 : vector<16x128xf32>
    %384 = vector.broadcast %365 : vector<1x128xf32> to vector<16x128xf32>
    %385 = arith.addf %383, %384 : vector<16x128xf32>
    %c0_139 = arith.constant 0 : index
    %c0_140 = arith.constant 0 : index
    %386 = vector.load %arg14[%c0_139, %c0_140] : memref<2x128xf32, #tpu.memory_space<vmem>>, vector<1x128xf32>
    %c1_141 = arith.constant 1 : index
    %c0_142 = arith.constant 0 : index
    %387 = vector.load %arg14[%c1_141, %c0_142] : memref<2x128xf32, #tpu.memory_space<vmem>>, vector<1x128xf32>
    %cst_143 = arith.constant dense<0.000000e+00> : vector<16xf32>
    %388 = vector.multi_reduction <add>, %385, %cst_143 [1] : vector<16x128xf32> to vector<16xf32>
    %389 = vector.shape_cast %388 : vector<16xf32> to vector<16x1xf32>
    %cst_144 = arith.constant 1.280000e+02 : f32
    %390 = vector.broadcast %cst_144 : f32 to vector<16x1xf32>
    %391 = arith.divf %389, %390 : vector<16x1xf32>
    %392 = vector.broadcast %391 : vector<16x1xf32> to vector<16x128xf32>
    %393 = arith.subf %385, %392 : vector<16x128xf32>
    %394 = arith.mulf %393, %393 : vector<16x128xf32>
    %cst_145 = arith.constant dense<0.000000e+00> : vector<16xf32>
    %395 = vector.multi_reduction <add>, %394, %cst_145 [1] : vector<16x128xf32> to vector<16xf32>
    %396 = vector.shape_cast %395 : vector<16xf32> to vector<16x1xf32>
    %cst_146 = arith.constant 1.280000e+02 : f32
    %397 = vector.broadcast %cst_146 : f32 to vector<16x1xf32>
    %398 = arith.divf %396, %397 : vector<16x1xf32>
    %cst_147 = arith.constant 9.99999974E-6 : f32
    %399 = vector.broadcast %cst_147 : f32 to vector<16x1xf32>
    %400 = arith.addf %398, %399 : vector<16x1xf32>
    %401 = math.rsqrt %400 : vector<16x1xf32>
    %402 = vector.broadcast %401 : vector<16x1xf32> to vector<16x128xf32>
    %403 = arith.mulf %393, %402 : vector<16x128xf32>
    %404 = vector.broadcast %386 : vector<1x128xf32> to vector<16x128xf32>
    %405 = arith.mulf %403, %404 : vector<16x128xf32>
    %406 = vector.broadcast %387 : vector<1x128xf32> to vector<16x128xf32>
    %407 = arith.addf %405, %406 : vector<16x128xf32>
    %c0_148 = arith.constant 0 : index
    %c0_149 = arith.constant 0 : index
    %408 = vector.load %arg15[%c0_148, %c0_149] : memref<128x256xbf16, #tpu.memory_space<vmem>>, vector<128x256xbf16>
    %409 = arith.truncf %407 : vector<16x128xf32> to vector<16x128xbf16>
    %cst_150 = arith.constant dense<0.000000e+00> : vector<16x256xf32>
    %410 = tpu.matmul %409, %408, %cst_150 {dimension_numbers = #tpu.dot_dimension_numbers<[1], [0], [0], [1], [0, 0, 1, 1], [], []>} : vector<16x128xbf16>, vector<128x256xbf16>, vector<16x256xf32> -> vector<16x256xf32>
    %c0_151 = arith.constant 0 : index
    %c0_152 = arith.constant 0 : index
    %411 = vector.load %arg16[%c0_151, %c0_152] : memref<1x256xf32, #tpu.memory_space<vmem>>, vector<1x256xf32>
    %412 = vector.broadcast %411 : vector<1x256xf32> to vector<16x256xf32>
    %413 = arith.addf %410, %412 : vector<16x256xf32>
    %414 = vector.extract_strided_slice %413 {offsets = [0, 0], sizes = [16, 128], strides = [1, 1]} : vector<16x256xf32> to vector<16x128xf32>
    %cst_153 = arith.constant 0.000000e+00 : f32
    %415 = vector.broadcast %cst_153 : f32 to vector<16x128xf32>
    %416 = arith.maximumf %414, %415 : vector<16x128xf32>
    %417 = vector.extract_strided_slice %413 {offsets = [0, 128], sizes = [16, 128], strides = [1, 1]} : vector<16x256xf32> to vector<16x128xf32>
    %c0_154 = arith.constant 0 : index
    %c0_155 = arith.constant 0 : index
    %418 = vector.load %arg17[%c0_154, %c0_155] : memref<128x128xbf16, #tpu.memory_space<vmem>>, vector<128x128xbf16>
    %419 = arith.truncf %417 : vector<16x128xf32> to vector<16x128xbf16>
    %cst_156 = arith.constant dense<0.000000e+00> : vector<16x128xf32>
    %420 = tpu.matmul %419, %418, %cst_156 {dimension_numbers = #tpu.dot_dimension_numbers<[1], [0], [0], [1], [0, 0, 1, 1], [], []>} : vector<16x128xbf16>, vector<128x128xbf16>, vector<16x128xf32> -> vector<16x128xf32>
    %c0_157 = arith.constant 0 : index
    %c0_158 = arith.constant 0 : index
    %421 = vector.load %arg18[%c0_157, %c0_158] : memref<1x128xf32, #tpu.memory_space<vmem>>, vector<1x128xf32>
    %422 = vector.broadcast %421 : vector<1x128xf32> to vector<16x128xf32>
    %423 = arith.addf %420, %422 : vector<16x128xf32>
    %cst_159 = arith.constant 0.000000e+00 : f32
    %424 = vector.broadcast %cst_159 : f32 to vector<16x128xf32>
    %425 = arith.maximumf %423, %424 : vector<16x128xf32>
    %c0_160 = arith.constant 0 : index
    %c0_161 = arith.constant 0 : index
    %426 = vector.load %arg19[%c0_160, %c0_161] : memref<16x384xf32, #tpu.memory_space<vmem>>, vector<16x128xf32>
    tpu.vector_store %arg19[%c0_160, %c0_161], %407 {strides = array<i32>} : memref<16x384xf32, #tpu.memory_space<vmem>>, vector<16x128xf32>,
    %c0_162 = arith.constant 0 : index
    %c128 = arith.constant 128 : index
    %427 = vector.load %arg19[%c0_162, %c128] : memref<16x384xf32, #tpu.memory_space<vmem>>, vector<16x128xf32>
    tpu.vector_store %arg19[%c0_162, %c128], %416 {strides = array<i32>} : memref<16x384xf32, #tpu.memory_space<vmem>>, vector<16x128xf32>,
    %c0_163 = arith.constant 0 : index
    %c256 = arith.constant 256 : index
    %428 = vector.load %arg19[%c0_163, %c256] : memref<16x384xf32, #tpu.memory_space<vmem>>, vector<16x128xf32>
    tpu.vector_store %arg19[%c0_163, %c256], %425 {strides = array<i32>} : memref<16x384xf32, #tpu.memory_space<vmem>>, vector<16x128xf32>,
    return
  }
}

</mosaic_0001>

<bundles_post_ra>
// kernel: group_decoder_forward.1
= control target key start
LH: loop header
LB: loop body
LE: loop exit
PB: predicated region body
PF: predicated region fallthrough
CT: control target
= control target key end

     0   :  { %s6670_s0 = inlined_call_operand.vmem [shape: f32[16,136], index: 0, kind: input, shape index: {}]   ;;  %s6671_s1 = inlined_call_operand.vmem [shape: bf16[136,128], index: 1, kind: input, shape index: {}]   ;;  %s6672_s2 = inlined_call_operand.hbm [shape: f32[1,128], index: 2, kind: input, shape index: {}]   ;;  %s6673_s3 = inlined_call_operand.vmem [shape: f32[2,16,128], index: 3, kind: input, shape index: {}]   ;;  %s6674_s4 = inlined_call_operand.vmem [shape: f32[2,8,8], index: 4, kind: input, shape index: {}]   ;;  %s6675_s5 = inlined_call_operand.vmem [shape: bf16[2,128,384], index: 5, kind: input, shape index: {}]   ;;  %s6676_s6 = inlined_call_operand.hbm [shape: f32[2,1,384], index: 6, kind: input, shape index: {}]   ;;  %s6677_s7 = inlined_call_operand.hbm [shape: bf16[2,128,128], index: 7, kind: input, shape index: {}]   ;;  %s6678_s8 = inlined_call_operand.hbm [shape: f32[2,1,128], index: 8, kind: input, shape index: {}]   ;;  %s6679_s9 = inlined_call_operand.vmem [shape: f32[2,6,128], index: 9, kind: input, shape index: {}]   ;;  %s6680_s10 = inlined_call_operand.vmem [shape: bf16[2,128,256], index: 10, kind: input, shape index: {}]   ;;  %s6681_s11 = inlined_call_operand.hbm [shape: f32[2,1,256], index: 11, kind: input, shape index: {}]   ;;  %s6682_s12 = inlined_call_operand.hbm [shape: bf16[2,256,128], index: 12, kind: input, shape index: {}]   ;;  %s6683_s13 = inlined_call_operand.hbm [shape: f32[2,1,128], index: 13, kind: input, shape index: {}]   ;;  %s6684_s14 = inlined_call_operand.hbm [shape: f32[2,128], index: 14, kind: input, shape index: {}]   ;;  %s6685_s15 = inlined_call_operand.hbm [shape: bf16[128,256], index: 15, kind: input, shape index: {}]   ;;  %s6686_s16 = inlined_call_operand.hbm [shape: f32[1,256], index: 16, kind: input, shape index: {}]   ;;  %s6687_s17 = inlined_call_operand.hbm [shape: bf16[128,128], index: 17, kind: input, shape index: {}]   ;;  %s6688_s18 = inlined_call_operand.hbm [shape: f32[1,128], index: 18, kind: input, shape index: {}]   ;;  %s6689_s19 = inlined_call_operand.vmem [shape: f32[16,384], index: 19, kind: output, shape index: {}]  }
   0x1   :  { %6694 = sst [smem:[#allocation28_spill]] %s6670_s0 }
   0x2   :  { %6695 = sst [smem:[#allocation29_spill]] %s6671_s1 }
   0x3   :  { %6696 = sst [smem:[#allocation30_spill]] %s6672_s2 }
   0x4   :  { %6697 = sst [smem:[#allocation31_spill]] %s6673_s3 }
   0x5   :  { %24 = vsyncpa [#allocation3], 0 }
   0x6   :  { %25 = vsyncpa [#allocation5], 0 }
   0x7   :  { %26 = vsyncpa [#allocation8], 0 }
   0x8   :  { %27 = vsyncpa [#allocation11], 0 }
   0x9   :  { %28 = vsyncpa [#allocation14], 0 }
   0xa   :  { %29 = vsyncpa [#allocation17], 0 }
   0xb   :  { %30 = vsyncpa [#allocation20], 0  ;;  %s5509_s0 = smov [#allocation4]   ;;  %s5231_s1 = scalar_lea.hbm %s6676_s6, 96 }
   0xc   :  { %s56_s30 = sshll.u32 %s5509_s0, 4  ;;  %p5232_p0 = scmp.ne.s32.totalorder %s6676_s6, %s5231_s1  ;;  %s57_s30 = int_to_ptr.vmem [resolvable:$true] %s56_s30 }
   0xd   :  { %p5235_p1 = scmp.lt.u32.totalorder %s5231_s1, %s6676_s6 }
   0xf   :  { %p5237_p2 = pnand %p5235_p1, %p5232_p0 }
  0x11   :  { %5240 = shalt.err (!%p5237_p2)
}
  0x12   :  { %s5241_s25 = scalar_lea.vmem %s57_s30, 96  ;;  %p5246_p4 = scmp.lt.s32.totalorder %s57_s30, %s57_s30 }
  0x13   :  { %p5242_p3 = scmp.ne.s32.totalorder %s57_s30, %s5241_s25  ;;  %p5247_p5 = scmp.lt.s32.totalorder %s5241_s25, %s5241_s25 }
  0x15   :  { %p5248_p6 = por %p5247_p5, %p5246_p4 }
  0x17   :  { %p5249_p7 = pnand %p5248_p6, %p5242_p3 }
  0x19   :  { %5252 = shalt.err (!%p5249_p7)
}
  0x1a   :  { %s5510_s3 = smov 48   ;;  %s5511_s26 = smov 3  }
  0x1b   :  { %62 = dma.hbm_to_vmem [thread:$0]  %s6676_s6, 96, %s57_s30, [#allocation5], %s5510_s3, %s5510_s3, %s5511_s26  }
  0x1c   :  { %s5512_s29 = smov [#allocation7]   ;;  %s5253_s1 = scalar_lea.hbm %s6678_s8, 32 }
  0x1d   :  { %s80_s0 = sshll.u32 %s5512_s29, 4  ;;  %p5254_p8 = scmp.ne.s32.totalorder %s6678_s8, %s5253_s1  ;;  %s81_s0 = int_to_ptr.vmem [resolvable:$true] %s80_s0 }
  0x1e   :  { %p5257_p9 = scmp.lt.u32.totalorder %s5253_s1, %s6678_s8 }
  0x20   :  { %p5259_p10 = pnand %p5257_p9, %p5254_p8 }
  0x22   :  { %5262 = shalt.err (!%p5259_p10)
}
  0x23   :  { %s5263_s25 = scalar_lea.vmem %s81_s0, 32  ;;  %p5268_p12 = scmp.lt.s32.totalorder %s81_s0, %s81_s0 }
  0x24   :  { %p5264_p11 = scmp.ne.s32.totalorder %s81_s0, %s5263_s25  ;;  %p5269_p13 = scmp.lt.s32.totalorder %s5263_s25, %s5263_s25 }
  0x26   :  { %p5270_p0 = por %p5269_p13, %p5268_p12 }
  0x28   :  { %p5271_p1 = pnand %p5270_p0, %p5264_p11 }
  0x2a   :  { %5274 = shalt.err (!%p5271_p1)
}
  0x2b   :  { %s5513_s6 = smov 16   ;;  %s5514_s30 = smov 1  }
  0x2c   :  { %86 = dma.hbm_to_vmem [thread:$0]  %s6678_s8, 32, %s81_s0, [#allocation8], %s5513_s6, %s5513_s6, %s5514_s30  }
  0x2d   :  { %s5515_s27 = smov [#allocation10]   ;;  %s5516_s29 = smov [#allocation13]  }
  0x2e   :  { %s108_s28 = sshll.u32 %s5515_s27, 4  ;;  %s133_s20 = sshll.u32 %s5516_s29, 4  ;;  %s109_s28 = int_to_ptr.vmem [resolvable:$true] %s108_s28  ;;  %s134_s20 = int_to_ptr.vmem [resolvable:$true] %s133_s20 }
  0x2f   :  { %s5275_s22 = scalar_lea.hbm %s6682_s12, 4096 }
  0x30   :  { %p5276_p2 = scmp.ne.s32.totalorder %s6682_s12, %s5275_s22  ;;  %p5279_p3 = scmp.lt.u32.totalorder %s5275_s22, %s6682_s12 }
  0x32   :  { %p5281_p4 = pnand %p5279_p3, %p5276_p2 }
  0x34   :  { %5284 = shalt.err (!%p5281_p4)
}
  0x35   :  { %s5285_s8 = scalar_lea.vmem %s109_s28, 4096  ;;  %p5290_p6 = scmp.lt.s32.totalorder %s109_s28, %s109_s28 }
  0x36   :  { %p5286_p5 = scmp.ne.s32.totalorder %s109_s28, %s5285_s8  ;;  %p5291_p7 = scmp.lt.s32.totalorder %s5285_s8, %s5285_s8 }
  0x38   :  { %p5292_p8 = por %p5291_p7, %p5290_p6 }
  0x3a   :  { %p5293_p9 = pnand %p5292_p8, %p5286_p5 }
  0x3c   :  { %5296 = shalt.err (!%p5293_p9)
}
  0x3d   :  { %s5517_s0 = smov 64   ;;  %s5518_s3 = smov 4  }
  0x3e   :  { %114 = dma.hbm_to_vmem [thread:$0]  %s6682_s12, 4096, %s109_s28, [#allocation11], %s5517_s0, %s5517_s0, %s5518_s3  }
  0x3f   :  { %s5297_s1 = scalar_lea.hbm %s6684_s14, 32 }
  0x40   :  { %p5298_p10 = scmp.ne.s32.totalorder %s6684_s14, %s5297_s1  ;;  %p5301_p11 = scmp.lt.u32.totalorder %s5297_s1, %s6684_s14 }
  0x42   :  { %p5303_p12 = pnand %p5301_p11, %p5298_p10 }
  0x44   :  { %5306 = shalt.err (!%p5303_p12)
}
  0x45   :  { %s5307_s25 = scalar_lea.vmem %s134_s20, 32  ;;  %p5312_p0 = scmp.lt.s32.totalorder %s134_s20, %s134_s20 }
  0x46   :  { %p5308_p13 = scmp.ne.s32.totalorder %s134_s20, %s5307_s25  ;;  %p5313_p1 = scmp.lt.s32.totalorder %s5307_s25, %s5307_s25 }
  0x48   :  { %p5314_p2 = por %p5313_p1, %p5312_p0 }
  0x4a   :  { %p5315_p3 = pnand %p5314_p2, %p5308_p13 }
  0x4c   :  { %5318 = shalt.err (!%p5315_p3)
}
  0x4d   :  { %136 = dma.hbm_to_vmem [thread:$0]  %s6684_s14, 32, %s134_s20, [#allocation14]  }
  0x4e   :  { %s5519_s8 = smov [#allocation16]   ;;  %s5520_s27 = smov [#allocation2]  }
  0x4f   :  { %s155_s26 = sshll.u32 %s5519_s8, 4  ;;  %s41_s29 = sshll.u32 %s5520_s27, 4  ;;  %s156_s26 = int_to_ptr.vmem [resolvable:$true] %s155_s26  ;;  %s42_s29 = int_to_ptr.vmem [resolvable:$true] %s41_s29 }
  0x50   :  { %s5319_s22 = scalar_lea.hbm %s6686_s16, 32 }
  0x51   :  { %p5320_p4 = scmp.ne.s32.totalorder %s6686_s16, %s5319_s22  ;;  %p5323_p5 = scmp.lt.u32.totalorder %s5319_s22, %s6686_s16 }
  0x53   :  { %p5325_p6 = pnand %p5323_p5, %p5320_p4 }
  0x55   :  { %5328 = shalt.err (!%p5325_p6)
}
  0x56   :  { %s5329_s14 = scalar_lea.vmem %s156_s26, 32  ;;  %p5334_p8 = scmp.lt.s32.totalorder %s156_s26, %s156_s26 }
  0x57   :  { %p5330_p7 = scmp.ne.s32.totalorder %s156_s26, %s5329_s14  ;;  %p5335_p9 = scmp.lt.s32.totalorder %s5329_s14, %s5329_s14 }
  0x59   :  { %p5336_p10 = por %p5335_p9, %p5334_p8 }
  0x5b   :  { %p5337_p11 = pnand %p5336_p10, %p5330_p7 }
  0x5d   :  { %5340 = shalt.err (!%p5337_p11)
}
  0x5e   :  { %158 = dma.hbm_to_vmem [thread:$0]  %s6686_s16, 32, %s156_s26, [#allocation17]  }
  0x5f   :  { %s6698_s27 = sld [smem:[#allocation30_spill]] }
  0x65   :  { %s5341_s21 = scalar_lea.hbm %s6698_s27, 16 }
  0x66   :  { %p5342_p12 = scmp.ne.s32.totalorder %s6698_s27, %s5341_s21  ;;  %p5345_p13 = scmp.lt.u32.totalorder %s5341_s21, %s6698_s27 }
  0x68   :  { %p5347_p0 = pnand %p5345_p13, %p5342_p12 }
  0x6a   :  { %5350 = shalt.err (!%p5347_p0)
}
  0x6b   :  { %s5351_s24 = scalar_lea.vmem %s42_s29, 16  ;;  %s5355_s25 = scalar_lea.vmem %s42_s29, 32 }
  0x6c   :  { %p5352_p1 = scmp.ne.s32.totalorder %s42_s29, %s5351_s24  ;;  %p5356_p2 = scmp.lt.s32.totalorder %s42_s29, %s42_s29 }
  0x6d   :  { %p5357_p3 = scmp.lt.s32.totalorder %s5355_s25, %s5351_s24 }
  0x6f   :  { %p5358_p4 = por %p5357_p3, %p5356_p2 }
  0x71   :  { %p5359_p5 = pnand %p5358_p4, %p5352_p1 }
  0x73   :  { %5362 = shalt.err (!%p5359_p5)
}
  0x74   :  { %44 = dma.hbm_to_vmem [thread:$0]  %s6698_s27, 16, %s42_s29, [#allocation3]  }
  0x75   :  { %s5521_s14 = smov [#allocation6]   ;;  %s5522_s12 = smov [#allocation9]  }
  0x76   :  { %s68_s20 = sshll.u32 %s5521_s14, 4  ;;  %s96_s28 = sshll.u32 %s5522_s12, 4  ;;  %s69_s20 = int_to_ptr.vmem [resolvable:$true] %s68_s20  ;;  %s5713_s28 = int_to_ptr.vmem [resolvable:$true] %s96_s28 }
  0x77   :  { %s5363_s1 = scalar_lea.hbm %s6677_s7, 2048 }
  0x78   :  { %p5364_p6 = scmp.ne.s32.totalorder %s6677_s7, %s5363_s1  ;;  %p5367_p7 = scmp.lt.u32.totalorder %s5363_s1, %s6677_s7 }
  0x7a   :  { %p5369_p8 = pnand %p5367_p7, %p5364_p6 }
  0x7c   :  { %5372 = shalt.err (!%p5369_p8)
}
  0x7d   :  { %s5373_s29 = scalar_lea.vmem %s69_s20, 2048  ;;  %p5378_p10 = scmp.lt.s32.totalorder %s69_s20, %s69_s20 }
  0x7e   :  { %p5374_p9 = scmp.ne.s32.totalorder %s69_s20, %s5373_s29  ;;  %p5379_p11 = scmp.lt.s32.totalorder %s5373_s29, %s5373_s29 }
  0x80   :  { %p5380_p12 = por %p5379_p11, %p5378_p10 }
  0x82   :  { %p5381_p13 = pnand %p5380_p12, %p5374_p9 }
  0x84   :  { %5384 = shalt.err (!%p5381_p13)
}
  0x85   :  { %74 = dma.hbm_to_vmem [thread:$0]  %s6677_s7, 2048, %s69_s20, [#allocation5], %s5517_s0, %s5517_s0, %s5518_s3  }
  0x86   :  { %s5385_s14 = scalar_lea.hbm %s6681_s11, 64 }
  0x87   :  { %p5386_p0 = scmp.ne.s32.totalorder %s6681_s11, %s5385_s14  ;;  %p5389_p1 = scmp.lt.u32.totalorder %s5385_s14, %s6681_s11 }
  0x89   :  { %p5391_p2 = pnand %p5389_p1, %p5386_p0 }
  0x8b   :  { %5394 = shalt.err (!%p5391_p2)
}
  0x8c   :  { %s5395_s2 = scalar_lea.vmem %s5713_s28, 64  ;;  %p5400_p4 = scmp.lt.s32.totalorder %s5713_s28, %s5713_s28 }
  0x8d   :  { %p5396_p3 = scmp.ne.s32.totalorder %s5713_s28, %s5395_s2  ;;  %p5401_p5 = scmp.lt.s32.totalorder %s5395_s2, %s5395_s2 }
  0x8f   :  { %p5402_p6 = por %p5401_p5, %p5400_p4 }
  0x91   :  { %p5403_p7 = pnand %p5402_p6, %p5396_p3 }
  0x93   :  { %5406 = shalt.err (!%p5403_p7)
}
  0x94   :  { %s5523_s7 = smov 32   ;;  %s5524_s20 = smov 2  }
  0x95   :  { %102 = dma.hbm_to_vmem [thread:$0]  %s6681_s11, 64, %s5713_s28, [#allocation8], %s5523_s7, %s5523_s7, %s5524_s20  }
  0x96   :  { %s5525_s24 = smov [#allocation12]   ;;  %s5526_s27 = smov [#allocation15]  }
  0x97   :  { %s120_s29 = sshll.u32 %s5525_s24, 4  ;;  %s142_s25 = sshll.u32 %s5526_s27, 4  ;;  %s121_s29 = int_to_ptr.vmem [resolvable:$true] %s120_s29  ;;  %s5749_s25 = int_to_ptr.vmem [resolvable:$true] %s142_s25 }
  0x98   :  { %s5407_s14 = scalar_lea.hbm %s6683_s13, 32 }
  0x99   :  { %p5408_p8 = scmp.ne.s32.totalorder %s6683_s13, %s5407_s14  ;;  %p5411_p9 = scmp.lt.u32.totalorder %s5407_s14, %s6683_s13 }
  0x9b   :  { %p5413_p10 = pnand %p5411_p9, %p5408_p8 }
  0x9d   :  { %5416 = shalt.err (!%p5413_p10)
}
  0x9e   :  { %s5417_s11 = scalar_lea.vmem %s121_s29, 32  ;;  %p5422_p12 = scmp.lt.s32.totalorder %s121_s29, %s121_s29 }
  0x9f   :  { %p5418_p11 = scmp.ne.s32.totalorder %s121_s29, %s5417_s11  ;;  %p5423_p13 = scmp.lt.s32.totalorder %s5417_s11, %s5417_s11 }
  0xa1   :  { %p5424_p0 = por %p5423_p13, %p5422_p12 }
  0xa3   :  { %p5425_p1 = pnand %p5424_p0, %p5418_p11 }
  0xa5   :  { %5428 = shalt.err (!%p5425_p1)
}
  0xa6   :  { %126 = dma.hbm_to_vmem [thread:$0]  %s6683_s13, 32, %s121_s29, [#allocation11], %s5513_s6, %s5513_s6, %s5514_s30  }
  0xa7   :  { %s5429_s23 = scalar_lea.hbm %s6685_s15, 2048 }
  0xa8   :  { %p5430_p2 = scmp.ne.s32.totalorder %s6685_s15, %s5429_s23  ;;  %p5433_p3 = scmp.lt.u32.totalorder %s5429_s23, %s6685_s15 }
  0xaa   :  { %p5435_p4 = pnand %p5433_p3, %p5430_p2 }
  0xac   :  { %5438 = shalt.err (!%p5435_p4)
}
  0xad   :  { %s5439_s14 = scalar_lea.vmem %s5749_s25, 2048  ;;  %p5444_p6 = scmp.lt.s32.totalorder %s5749_s25, %s5749_s25 }
  0xae   :  { %p5440_p5 = scmp.ne.s32.totalorder %s5749_s25, %s5439_s14  ;;  %p5445_p7 = scmp.lt.s32.totalorder %s5439_s14, %s5439_s14 }
  0xb0   :  { %p5446_p8 = por %p5445_p7, %p5444_p6 }
  0xb2   :  { %p5447_p9 = pnand %p5446_p8, %p5440_p5 }
  0xb4   :  { %5450 = shalt.err (!%p5447_p9)
}
  0xb5   :  { %s5527_s13 = smov 128   ;;  %s5528_s6 = smov 8  }
  0xb6   :  { %148 = dma.hbm_to_vmem [thread:$0]  %s6685_s15, 2048, %s5749_s25, [#allocation14], %s5527_s13, %s5527_s13, %s5528_s6  }
  0xb7   :  { %s5529_s12 = smov [#allocation18]   ;;  %s5530_s21 = smov [#allocation19]  }
  0xb8   :  { %s164_s8 = sshll.u32 %s5529_s12, 4  ;;  %s177_s1 = sshll.u32 %s5530_s21, 4  ;;  %s165_s8 = int_to_ptr.vmem [resolvable:$true] %s164_s8  ;;  %s178_s1 = int_to_ptr.vmem [resolvable:$true] %s177_s1 }
  0xb9   :  { %s5451_s2 = scalar_lea.hbm %s6687_s17, 1024 }
  0xba   :  { %p5452_p10 = scmp.ne.s32.totalorder %s6687_s17, %s5451_s2  ;;  %p5455_p11 = scmp.lt.u32.totalorder %s5451_s2, %s6687_s17 }
  0xbc   :  { %p5457_p12 = pnand %p5455_p11, %p5452_p10 }
  0xbe   :  { %5460 = shalt.err (!%p5457_p12)
}
  0xbf   :  { %s5461_s15 = scalar_lea.vmem %s165_s8, 1024  ;;  %p5466_p0 = scmp.lt.s32.totalorder %s165_s8, %s165_s8 }
  0xc0   :  { %p5462_p13 = scmp.ne.s32.totalorder %s165_s8, %s5461_s15  ;;  %p5467_p1 = scmp.lt.s32.totalorder %s5461_s15, %s5461_s15 }
  0xc2   :  { %p5468_p2 = por %p5467_p1, %p5466_p0 }
  0xc4   :  { %p5469_p3 = pnand %p5468_p2, %p5462_p13 }
  0xc6   :  { %5472 = shalt.err (!%p5469_p3)
}
  0xc7   :  { %170 = dma.hbm_to_vmem [thread:$0]  %s6687_s17, 1024, %s165_s8, [#allocation17], %s5517_s0, %s5517_s0, %s5518_s3  }
  0xc8   :  { %s5473_s14 = scalar_lea.hbm %s6688_s18, 16 }
  0xc9   :  { %p5474_p4 = scmp.ne.s32.totalorder %s6688_s18, %s5473_s14  ;;  %p5477_p5 = scmp.lt.u32.totalorder %s5473_s14, %s6688_s18 }
  0xcb   :  { %p5479_p6 = pnand %p5477_p5, %p5474_p4 }
  0xcd   :  { %5482 = shalt.err (!%p5479_p6)
}
  0xce   :  { %s5483_s12 = scalar_lea.vmem %s178_s1, 16  ;;  %s5487_s21 = scalar_lea.vmem %s178_s1, 32 }
  0xcf   :  { %p5484_p7 = scmp.ne.s32.totalorder %s178_s1, %s5483_s12  ;;  %p5488_p8 = scmp.lt.s32.totalorder %s178_s1, %s178_s1 }
  0xd0   :  { %p5489_p9 = scmp.lt.s32.totalorder %s5487_s21, %s5483_s12 }
  0xd2   :  { %p5490_p10 = por %p5489_p9, %p5488_p8 }
  0xd4   :  { %p5491_p11 = pnand %p5490_p10, %p5484_p7 }
  0xd6   :  { %5494 = shalt.err (!%p5491_p11)
}
  0xd7   :  { %180 = dma.hbm_to_vmem [thread:$0]  %s6688_s18, 16, %s178_s1, [#allocation20]  }
  0xd8   :  { %5495 = dma.done.wait [#allocation3], 16  }
  0xd9   :  { %5496 = vsyncadd [#allocation3], 4294967280 }
  0xda   :  { %5497 = dma.done.wait [#allocation5], 2144  }
  0xdb   :  { %5498 = vsyncadd [#allocation5], 4294965152 }
  0xdc   :  { %5499 = dma.done.wait [#allocation8], 96  }
  0xdd   :  { %5500 = vsyncadd [#allocation8], 4294967200 }
  0xde   :  { %5501 = dma.done.wait [#allocation11], 4128  }
  0xdf   :  { %5502 = vsyncadd [#allocation11], 4294963168 }
  0xe0   :  { %5503 = dma.done.wait [#allocation14], 2080  }
  0xe1   :  { %5504 = vsyncadd [#allocation14], 4294965216 }
  0xe2   :  { %5505 = dma.done.wait [#allocation17], 1056  }
  0xe3   :  { %5506 = vsyncadd [#allocation17], 4294966240 }
  0xe4   :  { %5507 = dma.done.wait [#allocation20], 16  }
  0xe5   :  { %5508 = vsyncadd [#allocation20], 4294967280  ;;  %v5531_v0 = vmov 0   ;;  %s6699_s1 = sld [smem:[#allocation29_spill]]  ;;  %s6700_s24 = sld [smem:[#allocation28_spill]]  ;;  %vm299_vm0 = vcmask 64512   ;;  %v386_v50 = vlaneseq }
  0xe6   :  { %307 = vmatprep.subr.bf16.mxu0 %v5531_v0  ;;  %561 = vmatprep.mubr.bf16.mxu1 %v5531_v0  ;;  %v4945_v8 = vld [vmem:[%s6675_s5 + $0x4] ss:$12 sps:$4 sm:$0xff]   ;;  %v4947_v9 = vld [vmem:[%s6675_s5] ss:$12 sps:$4 sm:$0xff]   ;;  %v4948_v10 = vld [vmem:[%s6675_s5 + $0x1c] ss:$12 sps:$4 sm:$0xff]  }
  0xe7   :  { %529 = vmatprep.subr.bf16.mxu1 %v4945_v8  ;;  %v4950_v12 = vld [vmem:[%s6675_s5 + $0x18] ss:$12 sps:$4 sm:$0xff]   ;;  %v4951_v13 = vld [vmem:[%s6675_s5 + $0x34] ss:$12 sps:$4 sm:$0xff]   ;;  %v4953_v15 = vld [vmem:[%s6675_s5 + $0x30] ss:$12 sps:$4 sm:$0xff]  }
  0xe8   :  { %530 = vmatpush1.bf16.msra.mxu1 %v4947_v9  ;;  %v4954_v16 = vld [vmem:[%s6675_s5 + $0x4c] ss:$12 sps:$4 sm:$0xff]   ;;  %v4956_v17 = vld [vmem:[%s6675_s5 + $0x48] ss:$12 sps:$4 sm:$0xff]   ;;  %vm303_vm1 = vcmask 1043456   ;;  %v5532_v33 = vmov 0.0  }
  0xe9   :  { %531 = vmatprep.subr.bf16.mxu1 %v4948_v10  ;;  %v4957_v19 = vld [vmem:[%s6675_s5 + $0x64] ss:$12 sps:$4 sm:$0xff]   ;;  %v4959_v20 = vld [vmem:[%s6675_s5 + $0x60] ss:$12 sps:$4 sm:$0xff]   ;;  %v4960_v22 = vld [vmem:[%s6675_s5 + $0x7c] ss:$12 sps:$4 sm:$0xff]  }
  0xea   :  { %v4962_v24 = vld [vmem:[%s6675_s5 + $0x78] ss:$12 sps:$4 sm:$0xff]   ;;  %v4963_v27 = vld [vmem:[%s6675_s5 + $0x94] ss:$12 sps:$4 sm:$0xff]   ;;  %v4965_v29 = vld [vmem:[%s6675_s5 + $0x90] ss:$12 sps:$4 sm:$0xff]  }
  0xeb   :  { %v4936_v1 = vld [vmem:[%s6699_s1] sm:$0xff]   ;;  %v4937_v2 = vld [vmem:[%s6699_s1 + $0x8] sm:$0xff]   ;;  %v4938_v3 = vld [vmem:[%s6699_s1 + $0x10] sm:$0xff]   ;;  %vm5533_vm2 = vmmov 0   ;;  %v5955_v51 = vshrl.u32 %v386_v50, 7  ;;  %vm631_vm3 = vcmask 261120  }
  0xec   :  { %308 = vmatpush1.bf16.msra.mxu0 %v4936_v1  ;;  %v219_v4 = vld [vmem:[%s6700_s24 + $0x8] sm:$0xff]  ;;  %v4939_v5 = vld [vmem:[%s6699_s1 + $0x18] sm:$0xff]   ;;  %v4940_v11 = vld [vmem:[%s6699_s1 + $0x20] sm:$0xff]   ;;  %532 = vmatpush1.bf16.msra.mxu1 %v4950_v12  ;;  %vm1526_vm4 = vcmask 523264   ;;  %vm1529_vm5 = vcmask 785408   ;;  %s6701_s14 = sld [smem:[#allocation31_spill]] }
  0xed   :  { %309 = vmatprep.subr.bf16.mxu0 %v5531_v0  ;;  %v221_v6 = vld [vmem:[%s6700_s24 + $0x18] sm:$0xff]  ;;  %v4941_v14 = vld [vmem:[%s6699_s1 + $0x28] sm:$0xff]   ;;  %533 = vmatprep.subr.bf16.mxu1 %v4951_v13  ;;  %v4942_v18 = vld [vmem:[%s6699_s1 + $0x30] sm:$0xff]   ;;  %v5958_v52 = vsub.s32 1, %v5955_v51  ;;  %v5962_v55 = vsub.s32 0, %v5955_v51  ;;  %v5988_v8 = vsub.s32 2, %v5955_v51 }
  0xee   :  { %v240_v7 = vpack.c.bf16 %v221_v6, %v219_v4  ;;  %v4943_v21 = vld [vmem:[%s6699_s1 + $0x38] sm:$0xff]   ;;  %v4944_v23 = vld [vmem:[%s6699_s1 + $0x40] ss:$0 sps:$4 sm:$0xff]   ;;  %v220_v26 = vld [vmem:[%s6700_s24 + $0x10] sm:$0xff] }
  0xef   :  { %v218_v25 = vld [vmem:[%s6700_s24] sm:$0xff]  ;;  %v305_v28 = vsel %vm303_vm1, %v4944_v23, 0  ;;  %v4966_v31 = vld [vmem:[%s6675_s5 + $0xac] ss:$12 sps:$4 sm:$0xff]   ;;  %v4968_v32 = vld [vmem:[%s6675_s5 + $0xa8] ss:$12 sps:$4 sm:$0xff]  }
  0xf0   :  { %310 = vmatpush1.bf16.msra.mxu0 %v4937_v2  ;;  %4168 = vmatprep.mubr.msk.bf16.mxu0 %vm299_vm0, %v240_v7  ;;  %v239_v30 = vpack.c.bf16 %v220_v26, %v218_v25  ;;  %v4158_v34 = vld [vmem:[#allocation2] ss:$0 sm:$0xff]  ;;  %v4969_v41 = vld [vmem:[%s6675_s5 + $0x8] ss:$12 sps:$4 sm:$0xff]   ;;  %v4971_v44 = vld [vmem:[%s6675_s5 + $0x38] ss:$12 sps:$4 sm:$0xff]  }
  0xf1   :  { %311 = vmatprep.subr.bf16.mxu0 %v5531_v0  ;;  %534 = vmatpush1.bf16.msra.mxu1 %v4953_v15  ;;  %v4970_v43 = vld [vmem:[%s6675_s5 + $0x20] ss:$12 sps:$4 sm:$0xff]   ;;  %v4972_v45 = vld [vmem:[%s6675_s5 + $0x50] ss:$12 sps:$4 sm:$0xff]   ;;  %v4973_v46 = vld [vmem:[%s6675_s5 + $0x68] ss:$12 sps:$4 sm:$0xff]  }
  0xf2   :  { %535 = vmatprep.subr.bf16.mxu1 %v4954_v16  ;;  %v4974_v47 = vld [vmem:[%s6675_s5 + $0x80] ss:$12 sps:$4 sm:$0xff]   ;;  %v4975_v48 = vld [vmem:[%s6675_s5 + $0x98] ss:$12 sps:$4 sm:$0xff]   ;;  %v4976_v49 = vld [vmem:[%s6675_s5 + $0xb0] ss:$12 sps:$4 sm:$0xff]  }
  0xf3   :  { %v384_v53 = vld [vmem:[#allocation4] sm:$0x7]  ;;  %v6006_v25 = vld [vmem:[%s6674_s4 + $0x8] sm:$0xff]  ;;  %s5534_s24 = smov 96  }
  0xf4   :  { %312 = vmatpush1.bf16.msra.mxu0 %v4938_v3  ;;  %v393_v54 = vrot.slane %v384_v53, %v5958_v52  ;;  %v389_v61 = vrot.slane %v384_v53, %v5962_v55  ;;  %v397_v9 = vrot.slane %v384_v53, %v5988_v8 }
  0xf5   :  { %313 = vmatprep.subr.bf16.mxu0 %v5531_v0  ;;  %536 = vmatpush1.bf16.msra.mxu1 %v4956_v17 }
  0xf6   :  { %537 = vmatprep.subr.bf16.mxu1 %v4957_v19 }
  0xf8   :  { %314 = vmatpush1.bf16.msra.mxu0 %v4939_v5 }
  0xf9   :  { %315 = vmatprep.subr.bf16.mxu0 %v5531_v0  ;;  %538 = vmatpush1.bf16.msra.mxu1 %v4959_v20 }
  0xfa   :  { %539 = vmatprep.subr.bf16.mxu1 %v4960_v22 }
  0xfc   :  { %316 = vmatpush1.bf16.msra.mxu0 %v4940_v11 }
  0xfd   :  { %317 = vmatprep.subr.bf16.mxu0 %v5531_v0  ;;  %540 = vmatpush1.bf16.msra.mxu1 %v4962_v24 }
  0xfe   :  { %541 = vmatprep.subr.bf16.mxu1 %v4963_v27 }
 0x100   :  { %318 = vmatpush1.bf16.msra.mxu0 %v4941_v14 }
 0x101   :  { %319 = vmatprep.subr.bf16.mxu0 %v5531_v0  ;;  %542 = vmatpush1.bf16.msra.mxu1 %v4965_v29 }
 0x102   :  { %543 = vmatprep.subr.bf16.mxu1 %v4966_v31 }
 0x104   :  { %320 = vmatpush1.bf16.msra.mxu0 %v4942_v18  ;;  %v5999_v18 = vld [vmem:[%s6674_s4] sm:$0xff] }
 0x105   :  { %321 = vmatprep.subr.bf16.mxu0 %v5531_v0  ;;  %544 = vmatpush1.bf16.msra.mxu1 %v4968_v32 }
 0x106   :  { %4588 = vmatprep.subr.bf16.mxu1 %v5532_v33 }
 0x108   :  { %322 = vmatpush1.bf16.msra.mxu0 %v4943_v21 }
 0x109   :  { %323 = vmatprep.subr.bf16.mxu0 %v5531_v0 }
 0x10c   :  { %324 = vmatpush1.bf16.msra.mxu0 %v305_v28 }
 0x10d   :  { %4608 = vmatprep.subr.bf16.mxu0 %v5532_v33 }
 0x10f   :  { %340 = vmatmul.mubr.bf16.vlgmr.msra.gmra.mrb[0].mxu0 %v239_v30 }
 0x110   :  { %4610 = vmatprep.mubr.msk.bf16.mxu0 %vm5533_vm2, %v5532_v33 }
 0x1e2   :  { %v341_v35 = vpop.f32.mrb[0].mxu0 }
 0x1e3   :  { %v343_v36 = vpop.f32.mrb[1].mxu0  ;;  %v5913_v38 = vadd.f32 %v4158_v34, %v341_v35 }
 0x1e4   :  { %v344_v37 = vpop.f32.mrb[2].mxu0 }
 0x1e5   :  { %v5915_v39 = vadd.f32 %v4158_v34, %v344_v37  ;;  %v346_v40 = vpop.f32.mrb[3].mxu0 }
 0x1e7   :  { %v383_v42 = vpack.c.bf16 %v5915_v39, %v5913_v38 }
 0x1e9   :  { %562 = vmatmul.mubr.bf16.vlgmr.msra.gmra.mrb[0].mxu1 %v383_v42 }
 0x1ea   :  { %4589 = vmatpush3.bf16.msra.mxu1 %v4969_v41  ;;  %4604 = vmatprep.mubr.msk.bf16.mxu1 %vm5533_vm2, %v5532_v33 }
 0x1eb   :  { %4590 = vmatprep.subr.bf16.mxu1 %v5532_v33 }
 0x1ee   :  { %4591 = vmatpush3.bf16.msra.mxu1 %v4970_v43 }
 0x1ef   :  { %4592 = vmatprep.subr.bf16.mxu1 %v5532_v33 }
 0x1f2   :  { %4593 = vmatpush3.bf16.msra.mxu1 %v4971_v44 }
 0x1f3   :  { %4594 = vmatprep.subr.bf16.mxu1 %v5532_v33 }
 0x1f6   :  { %4595 = vmatpush3.bf16.msra.mxu1 %v4972_v45 }
 0x1f7   :  { %4596 = vmatprep.subr.bf16.mxu1 %v5532_v33 }
 0x1fa   :  { %4597 = vmatpush3.bf16.msra.mxu1 %v4973_v46 }
 0x1fb   :  { %4598 = vmatprep.subr.bf16.mxu1 %v5532_v33 }
 0x1fe   :  { %4599 = vmatpush3.bf16.msra.mxu1 %v4974_v47 }
 0x1ff   :  { %4600 = vmatprep.subr.bf16.mxu1 %v5532_v33 }
 0x202   :  { %4601 = vmatpush3.bf16.msra.mxu1 %v4975_v48 }
 0x203   :  { %4602 = vmatprep.subr.bf16.mxu1 %v5532_v33 }
 0x206   :  { %4603 = vmatpush3.bf16.msra.mxu1 %v4976_v49 }
 0x207   :  { %4656 = vmatprep.subr.bf16.mxu1 %v5532_v33 }
 0x209   :  { %4605 = vmatmul.mubr.bf16.vlgmr.msra.gmra.mrb[4].mxu1 %v383_v42 }
 0x20a   :  { %4658 = vmatprep.mubr.msk.bf16.mxu1 %vm5533_vm2, %v5532_v33 }
 0x2bc   :  { %v563_v56 = vpop.f32.mrb[0].mxu1 }
 0x2bd   :  { %v565_v57 = vpop.f32.mrb[1].mxu1  ;;  %v564_v2 = vadd.f32 %v563_v56, %v389_v61 }
 0x2be   :  { %v566_v58 = vadd.f32 %v565_v57, %v393_v54  ;;  %v567_v59 = vpop.f32.mrb[2].mxu1 }
 0x2bf   :  { %v569_v60 = vpop.f32.mrb[3].mxu1  ;;  %v5972_v4 = vpack.c.bf16 %v564_v2, %v564_v2  ;;  %v568_v6 = vadd.f32 %v567_v59, %v389_v61 }
 0x2c0   :  { %v5965_v62 = vpack.c.bf16 %v566_v58, %v566_v58  ;;  %v570_v63 = vadd.f32 %v569_v60, %v393_v54 }
 0x2c1   :  { %v5981_v7 = vpack.c.bf16 %v568_v6, %v568_v6 }
 0x2c2   :  { %v636_v1 = vsel %vm631_vm3, %v5965_v62, 0  ;;  %v5970_v3 = vpack.c.bf16 %v570_v63, %v570_v63 }
 0x2c3   :  { %4609 = vmatpush3.bf16.xpose.msra.mxu0 %v636_v1 }
 0x2c4   :  { %4614 = vmatprep.subr.bf16.mxu0 %v5532_v33  ;;  %v682_v5 = vsel %vm631_vm3, %v5970_v3, 0 }
 0x2ca   :  { %4611 = vmatmul.mubr.msk.bf16.vlgmr.msra.gmra.mrb[4].mxu0 %vm631_vm3, %v5972_v4 }
 0x2cb   :  { %4615 = vmatpush3.bf16.xpose.msra.mxu0 %v682_v5  ;;  %4616 = vmatprep.mubr.msk.bf16.mxu0 %vm5533_vm2, %v5532_v33 }
 0x2cc   :  { %4620 = vmatprep.subr.bf16.mxu0 %v5532_v33 }
 0x2d2   :  { %4617 = vmatmul.mubr.msk.bf16.vlgmr.msra.gmra.mrb[8].mxu0 %vm631_vm3, %v5981_v7 }
 0x2d3   :  { %4622 = vmatprep.mubr.msk.bf16.mxu0 %vm5533_vm2, %v5532_v33 }
 0x2dc   :  { %v606_v10 = vpop.f32.mrb[4].mxu1 }
 0x2dd   :  { %v607_v11 = vadd.f32 %v606_v10, %v397_v9  ;;  %v4606_v12 = vpop.f32.mrb[5].mxu1 }
 0x2de   :  { %v609_v13 = vpop.f32.mrb[6].mxu1 }
 0x2df   :  { %v5991_v14 = vpack.c.bf16 %v607_v11, %v607_v11  ;;  %v610_v15 = vadd.f32 %v609_v13, %v397_v9  ;;  %v4607_v16 = vpop.f32.mrb[7].mxu1 }
 0x2e1   :  { %v752_v17 = vsel %vm303_vm1, %v5991_v14, 0  ;;  %v6020_v48 = vpack.c.bf16 %v610_v15, %v610_v15 }
 0x2e2   :  { %4621 = vmatpush3.bf16.msra.mxu0 %v752_v17 }
 0x2e3   :  { %4626 = vmatprep.subr.bf16.mxu0 %v5532_v33  ;;  %v798_v53 = vsel %vm303_vm1, %v6020_v48, 0 }
 0x39d   :  { %v672_v19 = vpop.f32.mrb[4].mxu0 }
 0x39e   :  { %v673_v20 = vadd.f32 %v672_v19, %v5999_v18  ;;  %v4612_v21 = vpop.f32.mrb[5].mxu0 }
 0x39f   :  { %v675_v22 = vpop.f32.mrb[6].mxu0 }
 0x3a0   :  { %v4613_v23 = vpop.f32.mrb[7].mxu0  ;;  %v724_v24 = vsel %vm299_vm0, %v673_v20, -inf }
 0x3a1   :  { %725 = vmax.xlane.f32.xlu0 %v724_v24 }
 0x3a5   :  { %v718_v26 = vpop.f32.mrb[8].mxu0 }
 0x3a6   :  { %v719_v27 = vadd.f32 %v718_v26, %v6006_v25  ;;  %v4618_v28 = vpop.f32.mrb[9].mxu0 }
 0x3a7   :  { %v721_v29 = vpop.f32.mrb[10].mxu0 }
 0x3a8   :  { %v4619_v30 = vpop.f32.mrb[11].mxu0  ;;  %v727_v31 = vsel %vm299_vm0, %v719_v27, -inf }
 0x3a9   :  { %728 = vmax.xlane.f32.xlu0 %v727_v31 }
 0x3bf   :  { %842 = vrot.lane.b32.xlu0 %v5965_v62, %s5534_s24 }
 0x42e   :  { %v726_v32 = vpop.xlane.xlu0 %725 }
 0x42f   :  { %v730_v34 = vsub.f32 %v673_v20, %v726_v32 }
 0x431   :  { %v732_v35 = vmul.f32 1.442695, %v730_v34 }
 0x433   :  { %5137 = vpow2.f32 %v732_v35 }
 0x436   :  { %v729_v36 = vpop.xlane.xlu0 %728 }
 0x437   :  { %v731_v37 = vsub.f32 %v719_v27, %v729_v36 }
 0x439   :  { %v734_v40 = vmul.f32 1.442695, %v731_v37 }
 0x43a   :  { %v843_v57 = vpop.permute.xlu0 %842 }
 0x43b   :  { %5139 = vpow2.f32 %v734_v40  ;;  %v848_v60 = vsel %vm631_vm3, %v843_v57, 0 }
 0x43d   :  { %v5138_v41 = vpop.eup %5137 }
 0x43e   :  { %v736_v42 = vsel %vm299_vm0, %v5138_v41, 0.0 }
 0x43f   :  { %737 = vadd.xlane.f32.xlu1 %v736_v42 }
 0x445   :  { %v5140_v43 = vpop.eup %5139 }
 0x446   :  { %v739_v44 = vsel %vm299_vm0, %v5140_v43, 0.0 }
 0x447   :  { %740 = vadd.xlane.f32.xlu1 %v739_v44 }
 0x458   :  { %840 = vrot.lane.b32.xlu1 %v5972_v4, %s5534_s24 }
 0x45c   :  { %892 = vrot.lane.b32.xlu1 %v5970_v3, %s5534_s24 }
 0x460   :  { %890 = vrot.lane.b32.xlu1 %v5981_v7, %s5534_s24 }
 0x4cc   :  { %v738_v45 = vpop.xlane.xlu1 %737 }
 0x4cd   :  { %5141 = vrcp.f32 %v738_v45 }
 0x4d4   :  { %v741_v46 = vpop.xlane.xlu1 %740 }
 0x4d5   :  { %5143 = vrcp.f32 %v741_v46 }
 0x4d7   :  { %v5142_v47 = vpop.eup %5141 }
 0x4d8   :  { %v744_v49 = vmul.f32 %v5142_v47, %v5138_v41  ;;  %v841_v59 = vpop.permute.xlu1 %840 }
 0x4da   :  { %v746_v50 = vpack.c.bf16 %v744_v49, %v744_v49 }
 0x4dc   :  { %4623 = vmatmul.mubr.msk.bf16.vlgmr.msra.gmra.mrb[12].mxu0 %vm299_vm0, %v746_v50  ;;  %v893_v61 = vpop.permute.xlu1 %892 }
 0x4dd   :  { %4627 = vmatpush3.bf16.msra.mxu0 %v798_v53  ;;  %4628 = vmatprep.mubr.msk.bf16.mxu0 %vm5533_vm2, %v5532_v33  ;;  %v898_v63 = vsel %vm631_vm3, %v893_v61, 0 }
 0x4de   :  { %4632 = vmatprep.subr.bf16.mxu0 %v5532_v33 }
 0x4df   :  { %v5144_v54 = vpop.eup %5143 }
 0x4e0   :  { %v745_v56 = vmul.f32 %v5144_v54, %v5140_v43  ;;  %v891_v1 = vpop.permute.xlu1 %890 }
 0x4e2   :  { %v747_v58 = vpack.c.bf16 %v745_v56, %v745_v56 }
 0x4e4   :  { %4629 = vmatmul.mubr.msk.bf16.vlgmr.msra.gmra.mrb[16].mxu0 %vm299_vm0, %v747_v58 }
 0x4e5   :  { %4634 = vmatprep.mubr.msk.bf16.mxu0 %vm5533_vm2, %v5532_v33 }
 0x4e6   :  { %4633 = vmatpush3.bf16.xpose.msra.mxu0 %v848_v60 }
 0x4e7   :  { %4638 = vmatprep.subr.bf16.mxu0 %v5532_v33 }
 0x4ed   :  { %4635 = vmatmul.mubr.msk.bf16.vlgmr.msra.gmra.mrb[20].mxu0 %vm631_vm3, %v841_v59 }
 0x4ee   :  { %4639 = vmatpush3.bf16.xpose.msra.mxu0 %v898_v63  ;;  %4640 = vmatprep.mubr.msk.bf16.mxu0 %vm5533_vm2, %v5532_v33 }
 0x4ef   :  { %4644 = vmatprep.subr.bf16.mxu0 %v5532_v33 }
 0x4f5   :  { %4641 = vmatmul.mubr.msk.bf16.vlgmr.msra.gmra.mrb[24].mxu0 %vm631_vm3, %v891_v1 }
 0x4f6   :  { %4646 = vmatprep.mubr.msk.bf16.mxu0 %vm5533_vm2, %v5532_v33 }
 0x5af   :  { %v6041_v2 = vpop.f32.mrb[12].mxu0 }
 0x5b0   :  { %v4624_v5 = vpop.f32.mrb[13].mxu0 }
 0x5b1   :  { %v791_v6 = vpop.f32.mrb[14].mxu0 }
 0x5b2   :  { %v4625_v9 = vpop.f32.mrb[15].mxu0 }
 0x5b7   :  { %v6043_v10 = vpop.f32.mrb[16].mxu0 }
 0x5b8   :  { %v4630_v11 = vpop.f32.mrb[17].mxu0 }
 0x5b9   :  { %v837_v12 = vpop.f32.mrb[18].mxu0 }
 0x5ba   :  { %v4631_v13 = vpop.f32.mrb[19].mxu0 }
 0x5c0   :  { %v884_v15 = vpop.f32.mrb[20].mxu0 }
 0x5c1   :  { %v885_v16 = vadd.f32 %v884_v15, %v5999_v18  ;;  %v4636_v17 = vpop.f32.mrb[21].mxu0 }
 0x5c2   :  { %v887_v19 = vpop.f32.mrb[22].mxu0 }
 0x5c3   :  { %v4637_v20 = vpop.f32.mrb[23].mxu0  ;;  %v940_v21 = vsel %vm299_vm0, %v885_v16, -inf }
 0x5c4   :  { %941 = vmax.xlane.f32.xlu0 %v940_v21 }
 0x5c8   :  { %v934_v22 = vpop.f32.mrb[24].mxu0 }
 0x5c9   :  { %v935_v23 = vadd.f32 %v934_v22, %v6006_v25  ;;  %v4642_v24 = vpop.f32.mrb[25].mxu0 }
 0x5ca   :  { %v937_v26 = vpop.f32.mrb[26].mxu0 }
 0x5cb   :  { %v4643_v27 = vpop.f32.mrb[27].mxu0  ;;  %v943_v28 = vsel %vm299_vm0, %v935_v23, -inf }
 0x5cc   :  { %944 = vmax.xlane.f32.xlu1 %v943_v28 }
 0x5dd   :  { %1012 = vrot.lane.b32.xlu1 %v6020_v48, %s5534_s24 }
 0x5e1   :  { %1062 = vrot.lane.b32.xlu1 %v5965_v62, %s5517_s0 }
 0x5e5   :  { %1112 = vrot.lane.b32.xlu1 %v5970_v3, %s5517_s0 }
 0x5e9   :  { %1110 = vrot.lane.b32.xlu1 %v5981_v7, %s5517_s0 }
 0x651   :  { %v942_v29 = vpop.xlane.xlu0 %941 }
 0x652   :  { %v946_v30 = vsub.f32 %v885_v16, %v942_v29 }
 0x654   :  { %v948_v31 = vmul.f32 1.442695, %v946_v30 }
 0x656   :  { %5145 = vpow2.f32 %v948_v31 }
 0x659   :  { %v945_v32 = vpop.xlane.xlu1 %944 }
 0x65a   :  { %v947_v34 = vsub.f32 %v935_v23, %v945_v32 }
 0x65c   :  { %v950_v35 = vmul.f32 1.442695, %v947_v34 }
 0x65d   :  { %v1013_v36 = vpop.permute.xlu1 %1012 }
 0x65e   :  { %5147 = vpow2.f32 %v950_v35  ;;  %v1018_v57 = vsel %vm303_vm1, %v1013_v36, 0 }
 0x660   :  { %v5146_v37 = vpop.eup %5145 }
 0x661   :  { %v1063_v40 = vpop.permute.xlu1 %1062  ;;  %v952_v41 = vsel %vm299_vm0, %v5146_v37, 0.0 }
 0x662   :  { %v1068_v42 = vsel %vm631_vm3, %v1063_v40, 0  ;;  %953 = vadd.xlane.f32.xlu0 %v952_v41 }
 0x663   :  { %4657 = vmatpush3.bf16.xpose.msra.mxu1 %v1068_v42 }
 0x664   :  { %4668 = vmatprep.subr.bf16.mxu1 %v5532_v33 }
 0x665   :  { %v1113_v61 = vpop.permute.xlu1 %1112 }
 0x666   :  { %v1118_v63 = vsel %vm631_vm3, %v1113_v61, 0 }
 0x668   :  { %v5148_v43 = vpop.eup %5147 }
 0x669   :  { %v955_v44 = vsel %vm299_vm0, %v5148_v43, 0.0  ;;  %v1111_v1 = vpop.permute.xlu1 %1110 }
 0x66a   :  { %956 = vadd.xlane.f32.xlu0 %v955_v44 }
 0x680   :  { %964 = vrot.lane.b32.xlu0 %v5991_v14, %s5534_s24 }
 0x684   :  { %1060 = vrot.lane.b32.xlu0 %v5972_v4, %s5517_s0 }
 0x6ef   :  { %v954_v45 = vpop.xlane.xlu0 %953 }
 0x6f0   :  { %5149 = vrcp.f32 %v954_v45 }
 0x6f7   :  { %v957_v46 = vpop.xlane.xlu0 %956 }
 0x6f8   :  { %5151 = vrcp.f32 %v957_v46 }
 0x6fa   :  { %v5150_v47 = vpop.eup %5149 }
 0x6fb   :  { %v960_v49 = vmul.f32 %v5150_v47, %v5146_v37  ;;  %v965_v50 = vpop.permute.xlu0 %964 }
 0x6fc   :  { %v970_v53 = vsel %vm303_vm1, %v965_v50, 0 }
 0x6fd   :  { %4645 = vmatpush3.bf16.msra.mxu0 %v970_v53  ;;  %v962_v54 = vpack.c.bf16 %v960_v49, %v960_v49 }
 0x6fe   :  { %4650 = vmatprep.subr.bf16.mxu0 %v5532_v33 }
 0x6ff   :  { %v1061_v56 = vpop.permute.xlu0 %1060 }
 0x700   :  { %4647 = vmatmul.mubr.msk.bf16.vlgmr.msra.gmra.mrb[28].mxu0 %vm299_vm0, %v962_v54  ;;  %4659 = vmatmul.mubr.msk.bf16.vlgmr.msra.gmra.mrb[8].mxu1 %vm631_vm3, %v1061_v56 }
 0x701   :  { %4651 = vmatpush3.bf16.msra.mxu0 %v1018_v57  ;;  %4652 = vmatprep.mubr.msk.bf16.mxu0 %vm5533_vm2, %v5532_v33 }
 0x702   :  { %v5152_v58 = vpop.eup %5151  ;;  %4662 = vmatprep.subr.bf16.mxu0 %v5532_v33  ;;  %4670 = vmatprep.mubr.msk.bf16.mxu1 %vm5533_vm2, %v5532_v33 }
 0x703   :  { %v961_v59 = vmul.f32 %v5152_v58, %v5148_v43 }
 0x705   :  { %v963_v60 = vpack.c.bf16 %v961_v59, %v961_v59 }
 0x708   :  { %4653 = vmatmul.mubr.msk.bf16.vlgmr.msra.gmra.mrb[32].mxu0 %vm299_vm0, %v963_v60 }
 0x709   :  { %4664 = vmatprep.mubr.msk.bf16.mxu0 %vm5533_vm2, %v5532_v33 }
 0x70a   :  { %4663 = vmatpush3.bf16.xpose.msra.mxu0 %v1118_v63 }
 0x70b   :  { %4674 = vmatprep.subr.bf16.mxu0 %v5532_v33 }
 0x711   :  { %4665 = vmatmul.mubr.msk.bf16.vlgmr.msra.gmra.mrb[36].mxu0 %vm631_vm3, %v1111_v1 }
 0x712   :  { %4676 = vmatprep.mubr.msk.bf16.mxu0 %vm5533_vm2, %v5532_v33 }
 0x7d3   :  { %v6083_v5 = vpop.f32.mrb[28].mxu0  ;;  %v1104_v6 = vpop.f32.mrb[8].mxu1 }
 0x7d4   :  { %v1105_v9 = vadd.f32 %v1104_v6, %v5999_v18  ;;  %v4648_v11 = vpop.f32.mrb[29].mxu0  ;;  %v4660_v12 = vpop.f32.mrb[9].mxu1 }
 0x7d5   :  { %v1009_v13 = vpop.f32.mrb[30].mxu0  ;;  %v1107_v15 = vpop.f32.mrb[10].mxu1 }
 0x7d6   :  { %v4649_v16 = vpop.f32.mrb[31].mxu0  ;;  %v4661_v17 = vpop.f32.mrb[11].mxu1  ;;  %v1160_v19 = vsel %vm299_vm0, %v1105_v9, -inf }
 0x7d7   :  { %1161 = vmax.xlane.f32.xlu0 %v1160_v19 }
 0x7db   :  { %v6087_v20 = vpop.f32.mrb[32].mxu0 }
 0x7dc   :  { %v4906_v21 = vpack.i.bf16 %v6087_v20, %v6083_v5  ;;  %v4654_v22 = vpop.f32.mrb[33].mxu0 }
 0x7dd   :  { %v1057_v23 = vpop.f32.mrb[34].mxu0 }
 0x7de   :  { %v4655_v24 = vpop.f32.mrb[35].mxu0 }
 0x7e4   :  { %v1154_v26 = vpop.f32.mrb[36].mxu0 }
 0x7e5   :  { %v1155_v27 = vadd.f32 %v1154_v26, %v6006_v25  ;;  %v4666_v28 = vpop.f32.mrb[37].mxu0 }
 0x7e6   :  { %v1157_v29 = vpop.f32.mrb[38].mxu0 }
 0x7e7   :  { %v4667_v30 = vpop.f32.mrb[39].mxu0  ;;  %v1163_v31 = vsel %vm299_vm0, %v1155_v27, -inf }
 0x7e8   :  { %1164 = vmax.xlane.f32.xlu1 %v1163_v31 }
 0x7f9   :  { %1232 = vrot.lane.b32.xlu1 %v6020_v48, %s5517_s0 }
 0x7fd   :  { %1282 = vrot.lane.b32.xlu1 %v5965_v62, %s5523_s7 }
 0x801   :  { %1332 = vrot.lane.b32.xlu1 %v5970_v3, %s5523_s7 }
 0x805   :  { %1330 = vrot.lane.b32.xlu1 %v5981_v7, %s5523_s7 }
 0x864   :  { %v1162_v32 = vpop.xlane.xlu0 %1161 }
 0x865   :  { %v1166_v34 = vsub.f32 %v1105_v9, %v1162_v32 }
 0x867   :  { %v1168_v35 = vmul.f32 1.442695, %v1166_v34 }
 0x869   :  { %5153 = vpow2.f32 %v1168_v35 }
 0x873   :  { %v5154_v36 = vpop.eup %5153 }
 0x874   :  { %v1172_v37 = vsel %vm299_vm0, %v5154_v36, 0.0 }
 0x875   :  { %1173 = vadd.xlane.f32.xlu0 %v1172_v37  ;;  %v1165_v40 = vpop.xlane.xlu1 %1164 }
 0x876   :  { %v1167_v41 = vsub.f32 %v1155_v27, %v1165_v40 }
 0x878   :  { %v1170_v42 = vmul.f32 1.442695, %v1167_v41 }
 0x879   :  { %v1233_v43 = vpop.permute.xlu1 %1232 }
 0x87a   :  { %5155 = vpow2.f32 %v1170_v42  ;;  %v1238_v62 = vsel %vm303_vm1, %v1233_v43, 0 }
 0x87b   :  { %4675 = vmatpush3.bf16.msra.mxu0 %v1238_v62 }
 0x87c   :  { %4686 = vmatprep.subr.bf16.mxu0 %v5532_v33 }
 0x87d   :  { %v1283_v53 = vpop.permute.xlu1 %1282 }
 0x87e   :  { %v1288_v58 = vsel %vm631_vm3, %v1283_v53, 0  ;;  %v4978_v53 = vld [vmem:[#allocation6 + $0x8] sm:$0xff]  }
 0x881   :  { %v1333_v57 = vpop.permute.xlu1 %1332 }
 0x882   :  { %v1338_v60 = vsel %vm631_vm3, %v1333_v57, 0  ;;  %v4982_v57 = vld [vmem:[#allocation6 + $0x28] sm:$0xff]  }
 0x884   :  { %v5156_v3 = vpop.eup %5155 }
 0x885   :  { %v1175_v7 = vsel %vm299_vm0, %v5156_v3, 0.0  ;;  %v1331_v63 = vpop.permute.xlu1 %1330 }
 0x886   :  { %1176 = vadd.xlane.f32.xlu0 %v1175_v7 }
 0x89c   :  { %1184 = vrot.lane.b32.xlu0 %v5991_v14, %s5517_s0 }
 0x8a0   :  { %1280 = vrot.lane.b32.xlu0 %v5972_v4, %s5523_s7 }
 0x902   :  { %v1174_v44 = vpop.xlane.xlu0 %1173 }
 0x903   :  { %5157 = vrcp.f32 %v1174_v44 }
 0x90d   :  { %v5158_v45 = vpop.eup %5157 }
 0x90e   :  { %v1180_v47 = vmul.f32 %v5158_v45, %v5154_v36 }
 0x910   :  { %v1182_v54 = vpack.c.bf16 %v1180_v47, %v1180_v47 }
 0x913   :  { %v1177_v46 = vpop.xlane.xlu0 %1176 }
 0x914   :  { %5159 = vrcp.f32 %v1177_v46 }
 0x917   :  { %v1185_v49 = vpop.permute.xlu0 %1184 }
 0x918   :  { %v1190_v50 = vsel %vm303_vm1, %v1185_v49, 0 }
 0x919   :  { %4669 = vmatpush3.bf16.msra.mxu1 %v1190_v50  ;;  %v4977_v50 = vld [vmem:[#allocation6] sm:$0xff]  }
 0x91a   :  { %4680 = vmatprep.subr.bf16.mxu1 %v5532_v33 }
 0x91b   :  { %v1281_v61 = vpop.permute.xlu0 %1280 }
 0x91c   :  { %4671 = vmatmul.mubr.msk.bf16.vlgmr.msra.gmra.mrb[12].mxu1 %vm299_vm0, %v1182_v54  ;;  %v4979_v54 = vld [vmem:[#allocation6 + $0x10] sm:$0xff]  }
 0x91d   :  { %4682 = vmatprep.mubr.msk.bf16.mxu1 %vm5533_vm2, %v5532_v33 }
 0x91e   :  { %v5160_v4 = vpop.eup %5159 }
 0x91f   :  { %v1181_v56 = vmul.f32 %v5160_v4, %v5156_v3  ;;  %v4980_v4 = vld [vmem:[#allocation6 + $0x18] sm:$0xff]  }
 0x921   :  { %v1183_v59 = vpack.c.bf16 %v1181_v56, %v1181_v56  ;;  %v4981_v56 = vld [vmem:[#allocation6 + $0x20] sm:$0xff]  }
 0x922   :  { %4681 = vmatpush3.bf16.xpose.msra.mxu1 %v1288_v58  ;;  %v4983_v58 = vld [vmem:[#allocation6 + $0x30] sm:$0xff]  }
 0x923   :  { %4677 = vmatmul.mubr.msk.bf16.vlgmr.msra.gmra.mrb[40].mxu0 %vm299_vm0, %v1183_v59  ;;  %4692 = vmatprep.subr.bf16.mxu1 %v5532_v33  ;;  %v4984_v59 = vld [vmem:[#allocation6 + $0x38] sm:$0xff]  }
 0x924   :  { %4687 = vmatpush3.bf16.xpose.msra.mxu0 %v1338_v60  ;;  %4688 = vmatprep.mubr.msk.bf16.mxu0 %vm5533_vm2, %v5532_v33 }
 0x925   :  { %4698 = vmatprep.subr.bf16.mxu0 %v5532_v33 }
 0x929   :  { %4683 = vmatmul.mubr.msk.bf16.vlgmr.msra.gmra.mrb[16].mxu1 %vm631_vm3, %v1281_v61 }
 0x92a   :  { %4694 = vmatprep.mubr.msk.bf16.mxu1 %vm5533_vm2, %v5532_v33 }
 0x92b   :  { %4689 = vmatmul.mubr.msk.bf16.vlgmr.msra.gmra.mrb[44].mxu0 %vm631_vm3, %v1331_v63 }
 0x92c   :  { %4700 = vmatprep.mubr.msk.bf16.mxu0 %vm5533_vm2, %v5532_v33 }
 0x9ef   :  { %v1226_v1 = vpop.f32.mrb[12].mxu1 }
 0x9f0   :  { %v4672_v6 = vpop.f32.mrb[13].mxu1 }
 0x9f1   :  { %v1229_v9 = vpop.f32.mrb[14].mxu1 }
 0x9f2   :  { %v4673_v11 = vpop.f32.mrb[15].mxu1 }
 0x9f6   :  { %v1274_v12 = vpop.f32.mrb[40].mxu0 }
 0x9f7   :  { %v4911_v13 = vpack.i.bf16 %v1274_v12, %v1226_v1  ;;  %v4678_v15 = vpop.f32.mrb[41].mxu0 }
 0x9f8   :  { %v1277_v16 = vpop.f32.mrb[42].mxu0 }
 0x9f9   :  { %v4679_v17 = vpop.f32.mrb[43].mxu0 }
 0x9fc   :  { %v1324_v19 = vpop.f32.mrb[16].mxu1 }
 0x9fd   :  { %v1325_v22 = vadd.f32 %v1324_v19, %v5999_v18  ;;  %v4684_v23 = vpop.f32.mrb[17].mxu1 }
 0x9fe   :  { %v1327_v24 = vpop.f32.mrb[18].mxu1  ;;  %v1374_v26 = vpop.f32.mrb[44].mxu0 }
 0x9ff   :  { %v1375_v27 = vadd.f32 %v1374_v26, %v6006_v25  ;;  %v4685_v28 = vpop.f32.mrb[19].mxu1  ;;  %v4690_v29 = vpop.f32.mrb[45].mxu0  ;;  %v1380_v30 = vsel %vm299_vm0, %v1325_v22, -inf }
 0xa00   :  { %1381 = vmax.xlane.f32.xlu0 %v1380_v30  ;;  %v1377_v31 = vpop.f32.mrb[46].mxu0 }
 0xa01   :  { %v4691_v32 = vpop.f32.mrb[47].mxu0  ;;  %v1383_v34 = vsel %vm299_vm0, %v1375_v27, -inf }
 0xa02   :  { %1384 = vmax.xlane.f32.xlu1 %v1383_v34 }
 0xa13   :  { %1452 = vrot.lane.b32.xlu1 %v6020_v48, %s5523_s7 }
 0xa17   :  { %4907 = vrot.lane.b32.xlu1 %v4906_v21, %s5523_s7 }
 0xa1b   :  { %4912 = vrot.lane.b32.xlu1 %v4911_v13, %s5517_s0 }
 0xa8d   :  { %v1382_v18 = vpop.xlane.xlu0 %1381 }
 0xa8e   :  { %v1386_v25 = vsub.f32 %v1325_v22, %v1382_v18 }
 0xa8f   :  { %v1385_v35 = vpop.xlane.xlu1 %1384 }
 0xa90   :  { %v1388_v36 = vmul.f32 1.442695, %v1386_v25  ;;  %v1387_v37 = vsub.f32 %v1375_v27, %v1385_v35  ;;  %v4215_v25 = vld [vmem:[#allocation7] ss:$0 sm:$0xff] }
 0xa92   :  { %5161 = vpow2.f32 %v1388_v36  ;;  %v1390_v40 = vmul.f32 1.442695, %v1387_v37 }
 0xa93   :  { %v1453_v41 = vpop.permute.xlu1 %1452 }
 0xa94   :  { %5163 = vpow2.f32 %v1390_v40  ;;  %v1458_v42 = vsel %vm303_vm1, %v1453_v41, 0 }
 0xa95   :  { %4699 = vmatpush3.bf16.msra.mxu0 %v1458_v42 }
 0xa97   :  { %v4908_v15 = vpop.permute.xlu1 %4907 }
 0xa98   :  { %v4910_v17 = vunpack.i.h.bf16 %v4908_v15  ;;  %v4909_v19 = vunpack.i.l.bf16 %v4908_v15 }
 0xa9a   :  { %v1525_v26 = vsel %vm631_vm3, %v6043_v10, %v4910_v17  ;;  %v1524_v27 = vsel %vm631_vm3, %v6041_v2, %v4909_v19 }
 0xa9b   :  { %v4913_v16 = vpop.permute.xlu1 %4912 }
 0xa9c   :  { %v5162_v48 = vpop.eup %5161  ;;  %v4915_v22 = vunpack.i.h.bf16 %v4913_v16  ;;  %v4914_v23 = vunpack.i.l.bf16 %v4913_v16 }
 0xa9d   :  { %v1392_v43 = vsel %vm299_vm0, %v5162_v48, 0.0 }
 0xa9e   :  { %v5164_v62 = vpop.eup %5163  ;;  %1393 = vadd.xlane.f32.xlu0 %v1392_v43  ;;  %v1527_v30 = vsel %vm1526_vm4, %v1524_v27, %v4914_v23  ;;  %v1528_v31 = vsel %vm1526_vm4, %v1525_v26, %v4915_v22  ;;  %v4993_v27 = vld [vmem:[%s6680_s10 + $0x24] ss:$8 sps:$4 sm:$0xff]  }
 0xa9f   :  { %v1395_v5 = vsel %vm299_vm0, %v5164_v62, 0.0 }
 0xaa2   :  { %1396 = vadd.xlane.f32.xlu0 %v1395_v5 }
 0xab8   :  { %1404 = vrot.lane.b32.xlu0 %v5991_v14, %s5523_s7 }
 0xb2b   :  { %v1394_v20 = vpop.xlane.xlu0 %1393 }
 0xb2c   :  { %5165 = vrcp.f32 %v1394_v20 }
 0xb2f   :  { %v1397_v21 = vpop.xlane.xlu0 %1396 }
 0xb30   :  { %5167 = vrcp.f32 %v1397_v21 }
 0xb33   :  { %v1405_v3 = vpop.permute.xlu0 %1404 }
 0xb34   :  { %v1410_v7 = vsel %vm303_vm1, %v1405_v3, 0 }
 0xb35   :  { %4693 = vmatpush3.bf16.msra.mxu1 %v1410_v7 }
 0xb36   :  { %v5166_v44 = vpop.eup %5165  ;;  %4704 = vmatprep.subr.bf16.mxu1 %v5532_v33 }
 0xb37   :  { %v1400_v45 = vmul.f32 %v5166_v44, %v5162_v48 }
 0xb39   :  { %v1402_v46 = vpack.c.bf16 %v1400_v45, %v1400_v45 }
 0xb3a   :  { %v5168_v47 = vpop.eup %5167 }
 0xb3b   :  { %v1401_v49 = vmul.f32 %v5168_v47, %v5164_v62  ;;  %4695 = vmatmul.mubr.msk.bf16.vlgmr.msra.gmra.mrb[20].mxu1 %vm299_vm0, %v1402_v46 }
 0xb3c   :  { %4720 = vmatprep.mubr.msk.bf16.mxu1 %vm5533_vm2, %v5532_v33  ;;  %4705 = vmatpush3.bf16.msra.mxu1 %v4977_v50 }
 0xb3d   :  { %v1403_v14 = vpack.c.bf16 %v1401_v49, %v1401_v49  ;;  %4706 = vmatprep.subr.bf16.mxu1 %v5532_v33 }
 0xb3f   :  { %4701 = vmatmul.mubr.msk.bf16.vlgmr.msra.gmra.mrb[48].mxu0 %vm299_vm0, %v1403_v14 }
 0xb40   :  { %1861 = vmatprep.mubr.bf16.mxu0 %v5531_v0  ;;  %4707 = vmatpush3.bf16.msra.mxu1 %v4978_v53 }
 0xb41   :  { %4708 = vmatprep.subr.bf16.mxu1 %v5532_v33 }
 0xb44   :  { %4709 = vmatpush3.bf16.msra.mxu1 %v4979_v54 }
 0xb45   :  { %4710 = vmatprep.subr.bf16.mxu1 %v5532_v33 }
 0xb48   :  { %4711 = vmatpush3.bf16.msra.mxu1 %v4980_v4 }
 0xb49   :  { %4712 = vmatprep.subr.bf16.mxu1 %v5532_v33 }
 0xb4c   :  { %4713 = vmatpush3.bf16.msra.mxu1 %v4981_v56 }
 0xb4d   :  { %4714 = vmatprep.subr.bf16.mxu1 %v5532_v33 }
 0xb50   :  { %4715 = vmatpush3.bf16.msra.mxu1 %v4982_v57  ;;  %v1682_v57 = vld [vmem:[%s6701_s14] sm:$0xff] }
 0xb51   :  { %4716 = vmatprep.subr.bf16.mxu1 %v5532_v33 }
 0xb54   :  { %4717 = vmatpush3.bf16.msra.mxu1 %v4983_v58 }
 0xb55   :  { %4718 = vmatprep.subr.bf16.mxu1 %v5532_v33 }
 0xb58   :  { %4719 = vmatpush3.bf16.msra.mxu1 %v4984_v59 }
 0xc0e   :  { %v1446_v60 = vpop.f32.mrb[20].mxu1 }
 0xc0f   :  { %v4696_v61 = vpop.f32.mrb[21].mxu1 }
 0xc10   :  { %v1449_v63 = vpop.f32.mrb[22].mxu1 }
 0xc11   :  { %v4697_v1 = vpop.f32.mrb[23].mxu1  ;;  %v1683_v63 = vld [vmem:[%s6701_s14 + $0x8] sm:$0xff] }
 0xc12   :  { %v1494_v6 = vpop.f32.mrb[48].mxu0 }
 0xc13   :  { %v4916_v9 = vpack.i.bf16 %v1494_v6, %v1446_v60  ;;  %v4702_v11 = vpop.f32.mrb[49].mxu0 }
 0xc14   :  { %v1497_v12 = vpop.f32.mrb[50].mxu0  ;;  %v4987_v11 = vld [vmem:[%s6680_s10 + $0x4] ss:$8 sps:$4 sm:$0xff]  }
 0xc15   :  { %4917 = vrot.lane.b32.xlu0 %v4916_v9, %s5534_s24  ;;  %v4703_v13 = vpop.f32.mrb[51].mxu0  ;;  %v4985_v9 = vld [vmem:[%s6680_s10] ss:$8 sps:$4 sm:$0xff]   ;;  %v4990_v12 = vld [vmem:[%s6680_s10 + $0x14] ss:$8 sps:$4 sm:$0xff]   ;;  %1829 = vmatprep.subr.bf16.mxu0 %v4987_v11 }
 0xc16   :  { %1830 = vmatpush1.bf16.msra.mxu0 %v4985_v9  ;;  %v4988_v13 = vld [vmem:[%s6680_s10 + $0x10] ss:$8 sps:$4 sm:$0xff]   ;;  %v5024_v9 = vld [vmem:[#allocation10 + $0x38] sm:$0xff]  }
 0xc17   :  { %1831 = vmatprep.subr.bf16.mxu0 %v4990_v12  ;;  %v1737_v11 = vld [vmem:[#allocation9] sm:$0x3] }
 0xc18   :  { %v1742_v12 = vrot.slane %v1737_v11, %v5962_v55 }
 0xc1a   :  { %1832 = vmatpush1.bf16.msra.mxu0 %v4988_v13  ;;  %v1746_v13 = vrot.slane %v1737_v11, %v5958_v52  ;;  %v5052_v11 = vld [vmem:[%s6675_s5 + $0x158] ss:$12 sps:$4 sm:$0xff]  }
 0xc1b   :  { %1833 = vmatprep.subr.bf16.mxu0 %v4993_v27 }
 0xc87   :  { %v4918_v24 = vpop.permute.xlu0 %4917 }
 0xc88   :  { %v4920_v28 = vunpack.i.h.bf16 %v4918_v24  ;;  %v4919_v29 = vunpack.i.l.bf16 %v4918_v24 }
 0xc8a   :  { %v1531_v32 = vsel %vm1529_vm5, %v1528_v31, %v4920_v28  ;;  %v1530_v34 = vsel %vm1529_vm5, %v1527_v30, %v4919_v29  ;;  %v4991_v28 = vld [vmem:[%s6680_s10 + $0x20] ss:$8 sps:$4 sm:$0xff]   ;;  %v4996_v29 = vld [vmem:[%s6680_s10 + $0x34] ss:$8 sps:$4 sm:$0xff]   ;;  %v4994_v30 = vld [vmem:[%s6680_s10 + $0x30] ss:$8 sps:$4 sm:$0xff]  }
 0xc8b   :  { %v1548_v18 = vpack.c.bf16 %v1531_v32, %v1530_v34  ;;  %1834 = vmatpush1.bf16.msra.mxu0 %v4991_v28  ;;  %v4999_v31 = vld [vmem:[%s6680_s10 + $0x44] ss:$8 sps:$4 sm:$0xff]   ;;  %v4997_v32 = vld [vmem:[%s6680_s10 + $0x40] ss:$8 sps:$4 sm:$0xff]   ;;  %v5002_v34 = vld [vmem:[%s6680_s10 + $0x54] ss:$8 sps:$4 sm:$0xff]  }
 0xc8c   :  { %1835 = vmatprep.subr.bf16.mxu0 %v4996_v29 }
 0xc8d   :  { %4721 = vmatmul.mubr.bf16.vlgmr.msra.gmra.mrb[24].mxu1 %v1548_v18  ;;  %v5000_v18 = vld [vmem:[%s6680_s10 + $0x50] ss:$8 sps:$4 sm:$0xff]  }
 0xc8f   :  { %1836 = vmatpush1.bf16.msra.mxu0 %v4994_v30 }
 0xc90   :  { %1837 = vmatprep.subr.bf16.mxu0 %v4999_v31 }
 0xc93   :  { %1838 = vmatpush1.bf16.msra.mxu0 %v4997_v32 }
 0xc94   :  { %1839 = vmatprep.subr.bf16.mxu0 %v5002_v34 }
 0xc97   :  { %1840 = vmatpush1.bf16.msra.mxu0 %v5000_v18  ;;  %v4240_v18 = vld [vmem:[#allocation12] ss:$0 sm:$0xff] }
 0xd60   :  { %v1638_v35 = vpop.f32.mrb[24].mxu1 }
 0xd61   :  { %v1639_v36 = vadd.f32 %v4215_v25, %v1638_v35  ;;  %v4722_v37 = vpop.f32.mrb[25].mxu1  ;;  %v5003_v35 = vld [vmem:[%s6680_s10 + $0x60] ss:$8 sps:$4 sm:$0xff]  }
 0xd62   :  { %v1641_v10 = vpop.f32.mrb[26].mxu1  ;;  %v5006_v37 = vld [vmem:[%s6680_s10 + $0x70] ss:$8 sps:$4 sm:$0xff]  }
 0xd63   :  { %v1642_v40 = vadd.f32 %v4215_v25, %v1641_v10  ;;  %v4723_v41 = vpop.f32.mrb[27].mxu1  ;;  %v1645_v2 = vadd.f32 %v1639_v36, %v5913_v38  ;;  %v5005_v25 = vld [vmem:[%s6680_s10 + $0x64] ss:$8 sps:$4 sm:$0xff]   ;;  %v5008_v36 = vld [vmem:[%s6680_s10 + $0x74] ss:$8 sps:$4 sm:$0xff]  }
 0xd64   :  { %1841 = vmatprep.subr.bf16.mxu0 %v5005_v25  ;;  %v5009_v10 = vld [vmem:[#allocation10 + $0x40] sm:$0xff]   ;;  %v5011_v41 = vld [vmem:[#allocation10 + $0x48] sm:$0xff]  }
 0xd65   :  { %1647 = vadd.xlane.f32.xlu1 %v1645_v2  ;;  %v1646_v42 = vadd.f32 %v1642_v40, %v5915_v39  ;;  %v6171_v39 = vld [vmem:[%s6679_s9] sm:$0x3f]  ;;  %1842 = vmatpush1.bf16.msra.mxu0 %v5003_v35  ;;  %v5010_v40 = vld [vmem:[#allocation10] sm:$0xff]  }
 0xd66   :  { %v1673_v14 = vrot.slane %v6171_v39, %v5962_v55  ;;  %v1679_v54 = vrot.slane %v6171_v39, %v5958_v52  ;;  %1843 = vmatprep.subr.bf16.mxu0 %v5008_v36  ;;  %4485 = vmatprep.subr.bf16.mxu1 %v5009_v10 }
 0xd67   :  { %1649 = vadd.xlane.f32.xlu0 %v1646_v42  ;;  %4486 = vmatpush3.bf16.msra.mxu1 %v5010_v40 }
 0xd68   :  { %4487 = vmatprep.subr.bf16.mxu1 %v5011_v41 }
 0xd69   :  { %1844 = vmatpush1.bf16.msra.mxu0 %v5006_v37 }
 0xdf2   :  { %v1648_v48 = vpop.xlane.xlu1 %1647 }
 0xdf3   :  { %v1652_v43 = vmul.f32 0.0078125, %v1648_v48  ;;  %v5014_v48 = vld [vmem:[#allocation10 + $0x10] sm:$0xff]  }
 0xdf4   :  { %v1650_v62 = vpop.xlane.xlu0 %1649 }
 0xdf5   :  { %v1654_v5 = vsub.f32 %v1645_v2, %v1652_v43  ;;  %v1653_v20 = vmul.f32 0.0078125, %v1650_v62  ;;  %v5012_v2 = vld [vmem:[#allocation10 + $0x8] sm:$0xff]   ;;  %v5015_v43 = vld [vmem:[#allocation10 + $0x58] sm:$0xff]  }
 0xdf6   :  { %4488 = vmatpush3.bf16.msra.mxu1 %v5012_v2  ;;  %v5016_v62 = vld [vmem:[#allocation10 + $0x18] sm:$0xff]  }
 0xdf7   :  { %v1655_v21 = vsub.f32 %v1646_v42, %v1653_v20  ;;  %v1656_v3 = vmul.f32 %v1654_v5, %v1654_v5  ;;  %v5013_v42 = vld [vmem:[#allocation10 + $0x50] sm:$0xff]   ;;  %v5018_v20 = vld [vmem:[#allocation10 + $0x20] sm:$0xff]  }
 0xdf8   :  { %4489 = vmatprep.subr.bf16.mxu1 %v5013_v42 }
 0xdf9   :  { %1658 = vadd.xlane.f32.xlu0 %v1656_v3  ;;  %v1657_v7 = vmul.f32 %v1655_v21, %v1655_v21 }
 0xdfa   :  { %4490 = vmatpush3.bf16.msra.mxu1 %v5014_v48  ;;  %v5025_v48 = vld [vmem:[%s6675_s5 + $0xc0] ss:$12 sps:$4 sm:$0xff]  }
 0xdfb   :  { %4491 = vmatprep.subr.bf16.mxu1 %v5015_v43  ;;  %v5027_v43 = vld [vmem:[%s6675_s5 + $0xc4] ss:$12 sps:$4 sm:$0xff]  }
 0xdfc   :  { %2272 = vmatprep.subr.bf16.mxu0 %v5027_v43 }
 0xdfd   :  { %1660 = vadd.xlane.f32.xlu0 %v1657_v7 }
 0xdfe   :  { %4492 = vmatpush3.bf16.msra.mxu1 %v5016_v62  ;;  %v5028_v62 = vld [vmem:[%s6675_s5 + $0xc8] ss:$12 sps:$4 sm:$0xff]  }
 0xe86   :  { %v1659_v44 = vpop.xlane.xlu0 %1658 }
 0xe87   :  { %v1662_v45 = vmul.f32 0.0078125, %v1659_v44 }
 0xe89   :  { %v1664_v46 = vadd.f32 1e-05, %v1662_v45 }
 0xe8a   :  { %v1661_v47 = vpop.xlane.xlu0 %1660 }
 0xe8b   :  { %5169 = vrsqrt.f32 %v1664_v46  ;;  %v1663_v38 = vmul.f32 0.0078125, %v1661_v47 }
 0xe8d   :  { %v1665_v49 = vadd.f32 1e-05, %v1663_v38 }
 0xe8f   :  { %5171 = vrsqrt.f32 %v1665_v49 }
 0xe95   :  { %v5170_v50 = vpop.eup %5169 }
 0xe96   :  { %v1668_v53 = vmul.f32 %v5170_v50, %v1654_v5  ;;  %v5017_v5 = vld [vmem:[#allocation10 + $0x60] sm:$0xff]   ;;  %v1716_v50 = vsub.s32 3, %v5955_v51 }
 0xe97   :  { %4493 = vmatprep.subr.bf16.mxu1 %v5017_v5  ;;  %v5031_v5 = vld [vmem:[%s6675_s5 + $0xdc] ss:$12 sps:$4 sm:$0xff]  }
 0xe98   :  { %v1674_v4 = vmul.f32 %v1673_v14, %v1668_v53  ;;  %4494 = vmatpush3.bf16.msra.mxu1 %v5018_v20  ;;  %v5032_v20 = vld [vmem:[%s6675_s5 + $0xe0] ss:$12 sps:$4 sm:$0xff]  }
 0xe99   :  { %v5172_v56 = vpop.eup %5171 }
 0xe9a   :  { %v1680_v58 = vadd.f32 %v1679_v54, %v1674_v4  ;;  %v1669_v59 = vmul.f32 %v5172_v56, %v1655_v21  ;;  %v5019_v21 = vld [vmem:[#allocation10 + $0x68] sm:$0xff]   ;;  %v1717_v56 = vrot.slane %v6171_v39, %v1716_v50 }
 0xe9b   :  { %4495 = vmatprep.subr.bf16.mxu1 %v5019_v21  ;;  %v5029_v21 = vld [vmem:[%s6675_s5 + $0xd8] ss:$12 sps:$4 sm:$0xff]  }
 0xe9c   :  { %v1684_v60 = vadd.f32 %v1682_v57, %v1680_v58  ;;  %v1675_v61 = vmul.f32 %v1673_v14, %v1669_v59  ;;  %v1711_v14 = vrot.slane %v6171_v39, %v5988_v8 }
 0xe9e   :  { %1686 = vadd.xlane.f32.xlu1 %v1684_v60  ;;  %v1681_v1 = vadd.f32 %v1679_v54, %v1675_v61  ;;  %v5020_v61 = vld [vmem:[#allocation10 + $0x28] sm:$0xff]  }
 0xe9f   :  { %4496 = vmatpush3.bf16.msra.mxu1 %v5020_v61  ;;  %v5047_v61 = vld [vmem:[%s6675_s5 + $0x13c] ss:$12 sps:$4 sm:$0xff]  }
 0xea0   :  { %v1685_v6 = vadd.f32 %v1683_v63, %v1681_v1  ;;  %v5021_v63 = vld [vmem:[#allocation10 + $0x70] sm:$0xff]  }
 0xea1   :  { %v5022_v1 = vld [vmem:[#allocation10 + $0x30] sm:$0xff]   ;;  %4497 = vmatprep.subr.bf16.mxu1 %v5021_v63 }
 0xea2   :  { %1688 = vadd.xlane.f32.xlu0 %v1685_v6  ;;  %v5045_v63 = vld [vmem:[%s6675_s5 + $0x138] ss:$12 sps:$4 sm:$0xff]  }
 0xea3   :  { %4498 = vmatpush3.bf16.msra.mxu1 %v5022_v1  ;;  %v5048_v1 = vld [vmem:[%s6675_s5 + $0x140] ss:$12 sps:$4 sm:$0xff]  }
 0xf2b   :  { %v1687_v15 = vpop.xlane.xlu1 %1686 }
 0xf2c   :  { %v1690_v16 = vmul.f32 0.0078125, %v1687_v15 }
 0xf2e   :  { %v6195_v17 = vsub.f32 %v1684_v60, %v1690_v16 }
 0xf2f   :  { %v1689_v19 = vpop.xlane.xlu0 %1688 }
 0xf30   :  { %v1691_v22 = vmul.f32 0.0078125, %v1689_v19  ;;  %v1694_v23 = vmul.f32 %v6195_v17, %v6195_v17 }
 0xf32   :  { %v6199_v24 = vsub.f32 %v1685_v6, %v1691_v22  ;;  %1696 = vadd.xlane.f32.xlu1 %v1694_v23  ;;  %v5023_v6 = vld [vmem:[#allocation10 + $0x78] sm:$0xff]  }
 0xf33   :  { %4499 = vmatprep.subr.bf16.mxu1 %v5023_v6  ;;  %v5051_v6 = vld [vmem:[%s6675_s5 + $0x154] ss:$12 sps:$4 sm:$0xff]  }
 0xf34   :  { %v1695_v26 = vmul.f32 %v6199_v24, %v6199_v24  ;;  %4500 = vmatpush3.bf16.msra.mxu1 %v5024_v9  ;;  %v5049_v9 = vld [vmem:[%s6675_s5 + $0x150] ss:$12 sps:$4 sm:$0xff]  }
 0xf35   :  { %4724 = vmatprep.subr.bf16.mxu1 %v5532_v33 }
 0xf36   :  { %1698 = vadd.xlane.f32.xlu0 %v1695_v26 }
 0xfbf   :  { %v1697_v3 = vpop.xlane.xlu1 %1696 }
 0xfc0   :  { %v1700_v7 = vmul.f32 0.0078125, %v1697_v3 }
 0xfc2   :  { %v1702_v44 = vadd.f32 1e-05, %v1700_v7 }
 0xfc3   :  { %v1699_v45 = vpop.xlane.xlu0 %1698 }
 0xfc4   :  { %5173 = vrsqrt.f32 %v1702_v44  ;;  %v1701_v46 = vmul.f32 0.0078125, %v1699_v45 }
 0xfc6   :  { %v1703_v47 = vadd.f32 1e-05, %v1701_v46 }
 0xfc8   :  { %5175 = vrsqrt.f32 %v1703_v47 }
 0xfce   :  { %v5174_v38 = vpop.eup %5173 }
 0xfcf   :  { %v1706_v49 = vmul.f32 %v5174_v38, %v6195_v17 }
 0xfd1   :  { %v1712_v4 = vmul.f32 %v1711_v14, %v1706_v49 }
 0xfd2   :  { %v5176_v53 = vpop.eup %5175 }
 0xfd3   :  { %v1707_v54 = vmul.f32 %v5176_v53, %v6199_v24  ;;  %v1718_v58 = vadd.f32 %v1717_v56, %v1712_v4  ;;  %v5033_v53 = vld [vmem:[%s6675_s5 + $0xf0] ss:$12 sps:$4 sm:$0xff]   ;;  %v5039_v4 = vld [vmem:[%s6675_s5 + $0x10c] ss:$12 sps:$4 sm:$0xff]  }
 0xfd5   :  { %v1713_v57 = vmul.f32 %v1711_v14, %v1707_v54  ;;  %v5035_v14 = vld [vmem:[%s6675_s5 + $0xf4] ss:$12 sps:$4 sm:$0xff]   ;;  %v5036_v54 = vld [vmem:[%s6675_s5 + $0xf8] ss:$12 sps:$4 sm:$0xff]  }
 0xfd7   :  { %v1719_v59 = vadd.f32 %v1717_v56, %v1713_v57  ;;  %v5037_v56 = vld [vmem:[%s6675_s5 + $0x108] ss:$12 sps:$4 sm:$0xff]   ;;  %v5040_v57 = vld [vmem:[%s6675_s5 + $0x110] ss:$12 sps:$4 sm:$0xff]  }
 0xfd9   :  { %v1736_v60 = vpack.c.bf16 %v1719_v59, %v1718_v58 }
 0xfdb   :  { %1862 = vmatmul.mubr.bf16.vlgmr.msra.gmra.mrb[52].mxu0 %v1736_v60  ;;  %v5044_v60 = vld [vmem:[%s6675_s5 + $0x128] ss:$12 sps:$4 sm:$0xff]  }
 0xfdc   :  { %2304 = vmatprep.mubr.bf16.mxu0 %v5531_v0  ;;  %2273 = vmatpush1.bf16.msra.mxu0 %v5025_v48 }
 0xfdd   :  { %2274 = vmatprep.subr.bf16.mxu0 %v5031_v5 }
 0xfe0   :  { %2275 = vmatpush1.bf16.msra.mxu0 %v5029_v21 }
 0xfe1   :  { %2276 = vmatprep.subr.bf16.mxu0 %v5035_v14 }
 0xfe4   :  { %2277 = vmatpush1.bf16.msra.mxu0 %v5033_v53 }
 0xfe5   :  { %2278 = vmatprep.subr.bf16.mxu0 %v5039_v4 }
 0xfe8   :  { %2279 = vmatpush1.bf16.msra.mxu0 %v5037_v56 }
0x10ae   :  { %v1863_v15 = vpop.f32.mrb[52].mxu0 }
0x10af   :  { %v1864_v16 = vadd.f32 %v1863_v15, %v1742_v12  ;;  %v1865_v17 = vpop.f32.mrb[53].mxu0  ;;  %v5056_v15 = vld [vmem:[%s6675_s5 + $0x170] ss:$12 sps:$4 sm:$0xff]  }
0x10b0   :  { %v1866_v19 = vadd.f32 %v1865_v17, %v1746_v13  ;;  %v1867_v22 = vpop.f32.mrb[54].mxu0 }
0x10b1   :  { %v1868_v23 = vadd.f32 %v1867_v22, %v1742_v12  ;;  %v1869_v24 = vpop.f32.mrb[55].mxu0  ;;  %v1872_v27 = vmax.f32 %v1864_v16, 0.0  ;;  %v5055_v12 = vld [vmem:[%s6675_s5 + $0x16c] ss:$12 sps:$4 sm:$0xff]  }
0x10b2   :  { %v1870_v26 = vadd.f32 %v1869_v24, %v1746_v13  ;;  %v1873_v29 = vmax.f32 %v1866_v19, 0.0  ;;  %v5053_v13 = vld [vmem:[%s6675_s5 + $0x168] ss:$12 sps:$4 sm:$0xff]  }
0x10b3   :  { %v1874_v28 = vmax.f32 %v1868_v23, 0.0 }
0x10b4   :  { %v1875_v30 = vmax.f32 %v1870_v26, 0.0  ;;  %v2080_v26 = vsub.s32 4, %v5955_v51 }
0x10b5   :  { %v1908_v31 = vpack.c.bf16 %v1874_v28, %v1872_v27  ;;  %v2086_v28 = vsub.s32 5, %v5955_v51 }
0x10b6   :  { %v1909_v32 = vpack.c.bf16 %v1875_v30, %v1873_v29  ;;  %v2081_v27 = vrot.slane %v6171_v39, %v2080_v26 }
0x10b8   :  { %2045 = vmatprep.mubr.bf16.mxu1 %v1909_v32 }
0x10b9   :  { %2046 = vmatmul.mubr.bf16.vlgmr.msra.gmra.mrb[28].mxu1 %v1908_v31 }
0x10ba   :  { %4740 = vmatprep.mubr.msk.bf16.mxu1 %vm5533_vm2, %v5532_v33  ;;  %4725 = vmatpush3.bf16.msra.mxu1 %v5028_v62 }
0x10bb   :  { %4726 = vmatprep.subr.bf16.mxu1 %v5532_v33 }
0x10be   :  { %4727 = vmatpush3.bf16.msra.mxu1 %v5032_v20 }
0x10bf   :  { %4728 = vmatprep.subr.bf16.mxu1 %v5532_v33 }
0x10c2   :  { %4729 = vmatpush3.bf16.msra.mxu1 %v5036_v54 }
0x10c3   :  { %4730 = vmatprep.subr.bf16.mxu1 %v5532_v33 }
0x10c6   :  { %4731 = vmatpush3.bf16.msra.mxu1 %v5040_v57 }
0x10c7   :  { %4732 = vmatprep.subr.bf16.mxu1 %v5532_v33 }
0x10ca   :  { %4733 = vmatpush3.bf16.msra.mxu1 %v5044_v60 }
0x10cb   :  { %4734 = vmatprep.subr.bf16.mxu1 %v5532_v33 }
0x10ce   :  { %4735 = vmatpush3.bf16.msra.mxu1 %v5048_v1 }
0x10cf   :  { %4736 = vmatprep.subr.bf16.mxu1 %v5532_v33 }
0x10d2   :  { %4737 = vmatpush3.bf16.msra.mxu1 %v5052_v11  ;;  %v6394_v11 = vld [vmem:[%s6674_s4 + $0x8] sm:$0xff] }
0x10d3   :  { %4738 = vmatprep.subr.bf16.mxu1 %v5532_v33 }
0x10d6   :  { %4739 = vmatpush3.bf16.msra.mxu1 %v5056_v15 }
0x10d7   :  { %4768 = vmatprep.subr.bf16.mxu1 %v5532_v33 }
0x118c   :  { %v4501_v34 = vpop.f32.mrb[28].mxu1 }
0x118d   :  { %v4502_v25 = vpop.f32.mrb[29].mxu1 }
0x118e   :  { %v4503_v35 = vadd.f32 %v4502_v25, %v4501_v34  ;;  %v4504_v36 = vpop.f32.mrb[30].mxu1 }
0x118f   :  { %v4505_v37 = vpop.f32.mrb[31].mxu1 }
0x1190   :  { %v2048_v10 = vadd.f32 %v4503_v35, %v4240_v18  ;;  %v4506_v40 = vadd.f32 %v4505_v37, %v4504_v36 }
0x1192   :  { %v2051_v41 = vadd.f32 %v4506_v40, %v4240_v18  ;;  %v2054_v2 = vadd.f32 %v2048_v10, %v1718_v58  ;;  %v5043_v58 = vld [vmem:[%s6675_s5 + $0x124] ss:$12 sps:$4 sm:$0xff]   ;;  %v2087_v18 = vrot.slane %v6171_v39, %v2086_v28 }
0x1193   :  { %2280 = vmatprep.subr.bf16.mxu0 %v5043_v58  ;;  %v2127_v10 = vld [vmem:[#allocation4 + $0x3] sm:$0x7] }
0x1194   :  { %2056 = vadd.xlane.f32.xlu1 %v2054_v2  ;;  %v2055_v42 = vadd.f32 %v2051_v41, %v1719_v59  ;;  %v5041_v59 = vld [vmem:[%s6675_s5 + $0x120] ss:$12 sps:$4 sm:$0xff]   ;;  %v2136_v40 = vrot.slane %v2127_v10, %v5958_v52 }
0x1195   :  { %2281 = vmatpush1.bf16.msra.mxu0 %v5041_v59  ;;  %v6387_v59 = vld [vmem:[%s6674_s4] sm:$0xff] }
0x1196   :  { %2058 = vadd.xlane.f32.xlu0 %v2055_v42  ;;  %2282 = vmatprep.subr.bf16.mxu0 %v5047_v61 }
0x1199   :  { %2283 = vmatpush1.bf16.msra.mxu0 %v5045_v63 }
0x119a   :  { %2284 = vmatprep.subr.bf16.mxu0 %v5051_v6 }
0x119d   :  { %2285 = vmatpush1.bf16.msra.mxu0 %v5049_v9 }
0x119e   :  { %2286 = vmatprep.subr.bf16.mxu0 %v5055_v12 }
0x11a1   :  { %2287 = vmatpush1.bf16.msra.mxu0 %v5053_v13 }
0x11a2   :  { %4744 = vmatprep.subr.bf16.mxu0 %v5532_v33 }
0x1221   :  { %v2057_v3 = vpop.xlane.xlu1 %2056 }
0x1222   :  { %v2060_v7 = vmul.f32 0.0078125, %v2057_v3 }
0x1223   :  { %v2059_v44 = vpop.xlane.xlu0 %2058 }
0x1224   :  { %v2062_v45 = vsub.f32 %v2054_v2, %v2060_v7  ;;  %v2061_v46 = vmul.f32 0.0078125, %v2059_v44  ;;  %v2140_v2 = vrot.slane %v2127_v10, %v5988_v8  ;;  %v2132_v7 = vrot.slane %v2127_v10, %v5962_v55 }
0x1226   :  { %v2063_v47 = vsub.f32 %v2055_v42, %v2061_v46  ;;  %v2064_v38 = vmul.f32 %v2062_v45, %v2062_v45 }
0x1228   :  { %2066 = vadd.xlane.f32.xlu1 %v2064_v38  ;;  %v2065_v49 = vmul.f32 %v2063_v47, %v2063_v47 }
0x122a   :  { %2068 = vadd.xlane.f32.xlu0 %v2065_v49 }
0x12b5   :  { %v2067_v16 = vpop.xlane.xlu1 %2066 }
0x12b6   :  { %v2070_v17 = vmul.f32 0.0078125, %v2067_v16 }
0x12b7   :  { %v2069_v19 = vpop.xlane.xlu0 %2068 }
0x12b8   :  { %v2072_v22 = vadd.f32 1e-05, %v2070_v17  ;;  %v2071_v23 = vmul.f32 0.0078125, %v2069_v19 }
0x12ba   :  { %5177 = vrsqrt.f32 %v2072_v22  ;;  %v2073_v24 = vadd.f32 1e-05, %v2071_v23 }
0x12bc   :  { %5179 = vrsqrt.f32 %v2073_v24 }
0x12c4   :  { %v5178_v29 = vpop.eup %5177 }
0x12c5   :  { %v2076_v30 = vmul.f32 %v5178_v29, %v2062_v45 }
0x12c6   :  { %v5180_v31 = vpop.eup %5179 }
0x12c7   :  { %v2077_v32 = vmul.f32 %v5180_v31, %v2063_v47  ;;  %v2082_v34 = vmul.f32 %v2081_v27, %v2076_v30 }
0x12c9   :  { %v2083_v25 = vmul.f32 %v2081_v27, %v2077_v32  ;;  %v6342_v35 = vadd.f32 %v2087_v18, %v2082_v34 }
0x12cb   :  { %v6344_v36 = vadd.f32 %v2087_v18, %v2083_v25 }
0x12cd   :  { %v2125_v37 = vpack.c.bf16 %v6344_v36, %v6342_v35 }
0x12cf   :  { %2305 = vmatmul.mubr.bf16.vlgmr.msra.gmra.mrb[56].mxu0 %v2125_v37  ;;  %4741 = vmatmul.mubr.bf16.vlgmr.msra.gmra.mrb[32].mxu1 %v2125_v37 }
0x12d0   :  { %4746 = vmatprep.mubr.msk.bf16.mxu0 %vm5533_vm2, %v5532_v33  ;;  %4770 = vmatprep.mubr.msk.bf16.mxu1 %vm5533_vm2, %v5532_v33 }
0x13a2   :  { %v2306_v39 = vpop.f32.mrb[56].mxu0  ;;  %v2349_v41 = vpop.f32.mrb[32].mxu1 }
0x13a3   :  { %v2308_v42 = vpop.f32.mrb[57].mxu0  ;;  %v4742_v48 = vpop.f32.mrb[33].mxu1  ;;  %v2307_v47 = vadd.f32 %v2306_v39, %v2132_v7  ;;  %v2350_v14 = vadd.f32 %v2349_v41, %v2140_v2 }
0x13a4   :  { %v2309_v43 = vadd.f32 %v2308_v42, %v2136_v40  ;;  %v2310_v62 = vpop.f32.mrb[58].mxu0  ;;  %v2352_v5 = vpop.f32.mrb[34].mxu1 }
0x13a5   :  { %v6354_v20 = vadd.f32 %v2352_v5, %v2140_v2  ;;  %v2312_v21 = vpop.f32.mrb[59].mxu0  ;;  %v4743_v3 = vpop.f32.mrb[35].mxu1  ;;  %v6364_v49 = vpack.c.bf16 %v2307_v47, %v2307_v47  ;;  %v2311_v54 = vadd.f32 %v2310_v62, %v2132_v7  ;;  %v6373_v4 = vpack.c.bf16 %v2350_v14, %v2350_v14 }
0x13a6   :  { %v6357_v44 = vpack.c.bf16 %v2309_v43, %v2309_v43  ;;  %v2313_v45 = vadd.f32 %v2312_v21, %v2136_v40 }
0x13a7   :  { %v6375_v56 = vpack.c.bf16 %v2311_v54, %v2311_v54  ;;  %v2494_v57 = vsel %vm303_vm1, %v6373_v4, 0  ;;  %v6412_v39 = vpack.c.bf16 %v6354_v20, %v6354_v20 }
0x13a8   :  { %v2378_v46 = vsel %vm631_vm3, %v6357_v44, 0  ;;  %v6362_v38 = vpack.c.bf16 %v2313_v45, %v2313_v45 }
0x13a9   :  { %4745 = vmatpush3.bf16.xpose.msra.mxu0 %v2378_v46  ;;  %v2540_v48 = vsel %vm303_vm1, %v6412_v39, 0 }
0x13aa   :  { %4750 = vmatprep.subr.bf16.mxu0 %v5532_v33  ;;  %v2424_v53 = vsel %vm631_vm3, %v6362_v38, 0 }
0x13b0   :  { %4747 = vmatmul.mubr.msk.bf16.vlgmr.msra.gmra.mrb[60].mxu0 %vm631_vm3, %v6364_v49 }
0x13b1   :  { %4751 = vmatpush3.bf16.xpose.msra.mxu0 %v2424_v53  ;;  %4752 = vmatprep.mubr.msk.bf16.mxu0 %vm5533_vm2, %v5532_v33 }
0x13b2   :  { %4756 = vmatprep.subr.bf16.mxu0 %v5532_v33 }
0x13b8   :  { %4753 = vmatmul.mubr.msk.bf16.vlgmr.msra.gmra.mrb[64].mxu0 %vm631_vm3, %v6375_v56 }
0x13b9   :  { %4757 = vmatpush3.bf16.msra.mxu0 %v2494_v57  ;;  %4758 = vmatprep.mubr.msk.bf16.mxu0 %vm5533_vm2, %v5532_v33 }
0x13ba   :  { %4762 = vmatprep.subr.bf16.mxu0 %v5532_v33 }
0x1483   :  { %v2414_v58 = vpop.f32.mrb[60].mxu0 }
0x1484   :  { %v2415_v60 = vadd.f32 %v6387_v59, %v2414_v58  ;;  %v4748_v61 = vpop.f32.mrb[61].mxu0 }
0x1485   :  { %v2417_v63 = vpop.f32.mrb[62].mxu0 }
0x1486   :  { %v4749_v1 = vpop.f32.mrb[63].mxu0  ;;  %v2466_v6 = vsel %vm299_vm0, %v2415_v60, -inf }
0x1487   :  { %2467 = vmax.xlane.f32.xlu1 %v2466_v6 }
0x148b   :  { %v2460_v9 = vpop.f32.mrb[64].mxu0 }
0x148c   :  { %v2461_v12 = vadd.f32 %v6394_v11, %v2460_v9  ;;  %v4754_v13 = vpop.f32.mrb[65].mxu0 }
0x148d   :  { %v2463_v15 = vpop.f32.mrb[66].mxu0 }
0x148e   :  { %v4755_v16 = vpop.f32.mrb[67].mxu0  ;;  %v2469_v17 = vsel %vm299_vm0, %v2461_v12, -inf }
0x148f   :  { %2470 = vmax.xlane.f32.xlu0 %v2469_v17 }
0x1514   :  { %v2468_v19 = vpop.xlane.xlu1 %2467 }
0x1515   :  { %v2472_v22 = vsub.f32 %v2415_v60, %v2468_v19 }
0x1517   :  { %v2474_v23 = vmul.f32 1.442695, %v2472_v22 }
0x1519   :  { %5181 = vpow2.f32 %v2474_v23 }
0x151c   :  { %v2471_v24 = vpop.xlane.xlu0 %2470 }
0x151d   :  { %v2473_v27 = vsub.f32 %v2461_v12, %v2471_v24 }
0x151f   :  { %v2476_v29 = vmul.f32 1.442695, %v2473_v27 }
0x1521   :  { %5183 = vpow2.f32 %v2476_v29 }
0x1523   :  { %v5182_v30 = vpop.eup %5181 }
0x1524   :  { %v2478_v31 = vsel %vm299_vm0, %v5182_v30, 0.0 }
0x1525   :  { %2479 = vadd.xlane.f32.xlu1 %v2478_v31 }
0x152b   :  { %v5184_v32 = vpop.eup %5183 }
0x152c   :  { %v2481_v34 = vsel %vm299_vm0, %v5184_v32, 0.0 }
0x152d   :  { %2482 = vadd.xlane.f32.xlu0 %v2481_v34 }
0x1536   :  { %2584 = vrot.lane.b32.xlu1 %v6357_v44, %s5534_s24 }
0x153a   :  { %2582 = vrot.lane.b32.xlu1 %v6364_v49, %s5534_s24 }
0x153e   :  { %2632 = vrot.lane.b32.xlu1 %v6375_v56, %s5534_s24 }
0x1543   :  { %2634 = vrot.lane.b32.xlu0 %v6362_v38, %s5534_s24 }
0x15b2   :  { %v2480_v18 = vpop.xlane.xlu1 %2479 }
0x15b3   :  { %5185 = vrcp.f32 %v2480_v18 }
0x15b6   :  { %v2585_v25 = vpop.permute.xlu1 %2584 }
0x15b7   :  { %v2590_v37 = vsel %vm631_vm3, %v2585_v25, 0 }
0x15b8   :  { %4769 = vmatpush3.bf16.xpose.msra.mxu1 %v2590_v37 }
0x15b9   :  { %4780 = vmatprep.subr.bf16.mxu1 %v5532_v33 }
0x15ba   :  { %v2483_v10 = vpop.xlane.xlu0 %2482  ;;  %v2583_v2 = vpop.permute.xlu1 %2582 }
0x15bb   :  { %5187 = vrcp.f32 %v2483_v10 }
0x15bd   :  { %v5186_v40 = vpop.eup %5185 }
0x15be   :  { %v2486_v41 = vmul.f32 %v5186_v40, %v5182_v30  ;;  %v2635_v5 = vpop.permute.xlu0 %2634  ;;  %v2633_v3 = vpop.permute.xlu1 %2632 }
0x15bf   :  { %4771 = vmatmul.mubr.msk.bf16.vlgmr.msra.gmra.mrb[36].mxu1 %vm631_vm3, %v2583_v2  ;;  %v2640_v21 = vsel %vm631_vm3, %v2635_v5, 0 }
0x15c0   :  { %v2488_v42 = vpack.c.bf16 %v2486_v41, %v2486_v41  ;;  %4782 = vmatprep.mubr.msk.bf16.mxu1 %vm5533_vm2, %v5532_v33 }
0x15c2   :  { %4759 = vmatmul.mubr.msk.bf16.vlgmr.msra.gmra.mrb[68].mxu0 %vm299_vm0, %v2488_v42 }
0x15c3   :  { %4763 = vmatpush3.bf16.msra.mxu0 %v2540_v48  ;;  %4764 = vmatprep.mubr.msk.bf16.mxu0 %vm5533_vm2, %v5532_v33 }
0x15c4   :  { %4774 = vmatprep.subr.bf16.mxu0 %v5532_v33 }
0x15c5   :  { %v5188_v43 = vpop.eup %5187 }
0x15c6   :  { %v2487_v62 = vmul.f32 %v5188_v43, %v5184_v32 }
0x15c8   :  { %v2489_v20 = vpack.c.bf16 %v2487_v62, %v2487_v62 }
0x15ca   :  { %4765 = vmatmul.mubr.msk.bf16.vlgmr.msra.gmra.mrb[72].mxu0 %vm299_vm0, %v2489_v20 }
0x15cb   :  { %4776 = vmatprep.mubr.msk.bf16.mxu0 %vm5533_vm2, %v5532_v33 }
0x15cc   :  { %4775 = vmatpush3.bf16.xpose.msra.mxu0 %v2640_v21 }
0x15cd   :  { %4786 = vmatprep.subr.bf16.mxu0 %v5532_v33 }
0x15d3   :  { %4777 = vmatmul.mubr.msk.bf16.vlgmr.msra.gmra.mrb[76].mxu0 %vm631_vm3, %v2633_v3 }
0x15d4   :  { %4788 = vmatprep.mubr.msk.bf16.mxu0 %vm5533_vm2, %v5532_v33 }
0x1692   :  { %v2626_v7 = vpop.f32.mrb[36].mxu1 }
0x1693   :  { %v2627_v45 = vadd.f32 %v6387_v59, %v2626_v7  ;;  %v4772_v46 = vpop.f32.mrb[37].mxu1 }
0x1694   :  { %v2629_v47 = vpop.f32.mrb[38].mxu1 }
0x1695   :  { %v6432_v14 = vpop.f32.mrb[68].mxu0  ;;  %v4773_v53 = vpop.f32.mrb[39].mxu1  ;;  %v2682_v54 = vsel %vm299_vm0, %v2627_v45, -inf }
0x1696   :  { %2683 = vmax.xlane.f32.xlu1 %v2682_v54  ;;  %v4760_v57 = vpop.f32.mrb[69].mxu0 }
0x1697   :  { %v2533_v58 = vpop.f32.mrb[70].mxu0 }
0x1698   :  { %v4761_v60 = vpop.f32.mrb[71].mxu0 }
0x169d   :  { %v6435_v61 = vpop.f32.mrb[72].mxu0 }
0x169e   :  { %v4766_v63 = vpop.f32.mrb[73].mxu0 }
0x169f   :  { %v2579_v1 = vpop.f32.mrb[74].mxu0 }
0x16a0   :  { %v4767_v6 = vpop.f32.mrb[75].mxu0 }
0x16a6   :  { %v2676_v9 = vpop.f32.mrb[76].mxu0 }
0x16a7   :  { %v2677_v12 = vadd.f32 %v6394_v11, %v2676_v9  ;;  %v4778_v13 = vpop.f32.mrb[77].mxu0  ;;  %2706 = vrot.lane.b32.xlu1 %v6373_v4, %s5534_s24 }
0x16a8   :  { %v2679_v15 = vpop.f32.mrb[78].mxu0 }
0x16a9   :  { %v4779_v16 = vpop.f32.mrb[79].mxu0  ;;  %v2685_v17 = vsel %vm299_vm0, %v2677_v12, -inf }
0x16aa   :  { %2686 = vmax.xlane.f32.xlu0 %v2685_v17 }
0x16ab   :  { %2804 = vrot.lane.b32.xlu1 %v6357_v44, %s5517_s0 }
0x16af   :  { %2854 = vrot.lane.b32.xlu1 %v6362_v38, %s5517_s0 }
0x16b3   :  { %2802 = vrot.lane.b32.xlu1 %v6364_v49, %s5517_s0 }
0x1723   :  { %v2684_v19 = vpop.xlane.xlu1 %2683 }
0x1724   :  { %v2688_v22 = vsub.f32 %v2627_v45, %v2684_v19 }
0x1726   :  { %v2690_v23 = vmul.f32 1.442695, %v2688_v22 }
0x1727   :  { %v2707_v24 = vpop.permute.xlu1 %2706 }
0x1728   :  { %5189 = vpow2.f32 %v2690_v23  ;;  %v2712_v27 = vsel %vm303_vm1, %v2707_v24, 0 }
0x1729   :  { %4781 = vmatpush3.bf16.msra.mxu1 %v2712_v27 }
0x172a   :  { %4792 = vmatprep.subr.bf16.mxu1 %v5532_v33 }
0x172b   :  { %v2805_v40 = vpop.permute.xlu1 %2804 }
0x172c   :  { %v2810_v42 = vsel %vm631_vm3, %v2805_v40, 0 }
0x172f   :  { %v2855_v48 = vpop.permute.xlu1 %2854 }
0x1730   :  { %v2860_v45 = vsel %vm631_vm3, %v2855_v48, 0 }
0x1732   :  { %v5190_v29 = vpop.eup %5189 }
0x1733   :  { %v2694_v30 = vsel %vm299_vm0, %v5190_v29, 0.0  ;;  %v2803_v62 = vpop.permute.xlu1 %2802 }
0x1734   :  { %2695 = vadd.xlane.f32.xlu0 %v2694_v30 }
0x1737   :  { %v2687_v31 = vpop.xlane.xlu0 %2686 }
0x1738   :  { %v2689_v32 = vsub.f32 %v2677_v12, %v2687_v31 }
0x173a   :  { %v2692_v34 = vmul.f32 1.442695, %v2689_v32 }
0x173c   :  { %5191 = vpow2.f32 %v2692_v34 }
0x1746   :  { %v5192_v18 = vpop.eup %5191 }
0x1747   :  { %v2697_v25 = vsel %vm299_vm0, %v5192_v18, 0.0 }
0x1748   :  { %2698 = vadd.xlane.f32.xlu0 %v2697_v25 }
0x175e   :  { %2754 = vrot.lane.b32.xlu0 %v6412_v39, %s5534_s24 }
0x1762   :  { %2852 = vrot.lane.b32.xlu0 %v6375_v56, %s5517_s0 }
0x17c1   :  { %v2696_v37 = vpop.xlane.xlu0 %2695 }
0x17c2   :  { %5193 = vrcp.f32 %v2696_v37 }
0x17cc   :  { %v5194_v10 = vpop.eup %5193 }
0x17cd   :  { %v2702_v41 = vmul.f32 %v5194_v10, %v5190_v29 }
0x17cf   :  { %v2704_v2 = vpack.c.bf16 %v2702_v41, %v2702_v41 }
0x17d1   :  { %4783 = vmatmul.mubr.msk.bf16.vlgmr.msra.gmra.mrb[40].mxu1 %vm299_vm0, %v2704_v2 }
0x17d2   :  { %4793 = vmatpush3.bf16.xpose.msra.mxu1 %v2810_v42  ;;  %4794 = vmatprep.mubr.msk.bf16.mxu1 %vm5533_vm2, %v5532_v33 }
0x17d3   :  { %4804 = vmatprep.subr.bf16.mxu1 %v5532_v33 }
0x17d5   :  { %v2699_v43 = vpop.xlane.xlu0 %2698 }
0x17d6   :  { %5195 = vrcp.f32 %v2699_v43 }
0x17d9   :  { %v2755_v5 = vpop.permute.xlu0 %2754  ;;  %4795 = vmatmul.mubr.msk.bf16.vlgmr.msra.gmra.mrb[44].mxu1 %vm631_vm3, %v2803_v62 }
0x17da   :  { %v2760_v20 = vsel %vm303_vm1, %v2755_v5, 0  ;;  %4806 = vmatprep.mubr.msk.bf16.mxu1 %vm5533_vm2, %v5532_v33 }
0x17db   :  { %4787 = vmatpush3.bf16.msra.mxu0 %v2760_v20 }
0x17dc   :  { %4798 = vmatprep.subr.bf16.mxu0 %v5532_v33 }
0x17dd   :  { %v2853_v46 = vpop.permute.xlu0 %2852 }
0x17e0   :  { %v5196_v21 = vpop.eup %5195 }
0x17e1   :  { %v2703_v3 = vmul.f32 %v5196_v21, %v5192_v18 }
0x17e3   :  { %v2705_v7 = vpack.c.bf16 %v2703_v3, %v2703_v3 }
0x17e5   :  { %4789 = vmatmul.mubr.msk.bf16.vlgmr.msra.gmra.mrb[80].mxu0 %vm299_vm0, %v2705_v7 }
0x17e6   :  { %4799 = vmatpush3.bf16.xpose.msra.mxu0 %v2860_v45  ;;  %4800 = vmatprep.mubr.msk.bf16.mxu0 %vm5533_vm2, %v5532_v33 }
0x17e7   :  { %4810 = vmatprep.subr.bf16.mxu0 %v5532_v33 }
0x17ed   :  { %4801 = vmatmul.mubr.msk.bf16.vlgmr.msra.gmra.mrb[84].mxu0 %vm631_vm3, %v2853_v46 }
0x17ee   :  { %4812 = vmatprep.mubr.msk.bf16.mxu0 %vm5533_vm2, %v5532_v33 }
0x18a4   :  { %v6473_v47 = vpop.f32.mrb[40].mxu1 }
0x18a5   :  { %v4784_v53 = vpop.f32.mrb[41].mxu1 }
0x18a6   :  { %v2751_v54 = vpop.f32.mrb[42].mxu1 }
0x18a7   :  { %v4785_v57 = vpop.f32.mrb[43].mxu1 }
0x18ac   :  { %v2846_v58 = vpop.f32.mrb[44].mxu1 }
0x18ad   :  { %v2847_v60 = vadd.f32 %v6387_v59, %v2846_v58  ;;  %v4796_v63 = vpop.f32.mrb[45].mxu1 }
0x18ae   :  { %v2849_v1 = vpop.f32.mrb[46].mxu1 }
0x18af   :  { %v4797_v6 = vpop.f32.mrb[47].mxu1  ;;  %v2902_v9 = vsel %vm299_vm0, %v2847_v60, -inf }
0x18b0   :  { %2903 = vmax.xlane.f32.xlu1 %v2902_v9 }
0x18b8   :  { %v6477_v12 = vpop.f32.mrb[80].mxu0 }
0x18b9   :  { %v4921_v13 = vpack.i.bf16 %v6477_v12, %v6473_v47  ;;  %v4790_v15 = vpop.f32.mrb[81].mxu0 }
0x18ba   :  { %v2799_v16 = vpop.f32.mrb[82].mxu0 }
0x18bb   :  { %v4791_v17 = vpop.f32.mrb[83].mxu0 }
0x18c0   :  { %v2896_v19 = vpop.f32.mrb[84].mxu0 }
0x18c1   :  { %v2897_v22 = vadd.f32 %v6394_v11, %v2896_v19  ;;  %v4802_v23 = vpop.f32.mrb[85].mxu0  ;;  %2926 = vrot.lane.b32.xlu1 %v6373_v4, %s5517_s0 }
0x18c2   :  { %v2899_v24 = vpop.f32.mrb[86].mxu0 }
0x18c3   :  { %v4803_v27 = vpop.f32.mrb[87].mxu0  ;;  %v2905_v29 = vsel %vm299_vm0, %v2897_v22, -inf }
0x18c4   :  { %2906 = vmax.xlane.f32.xlu0 %v2905_v29 }
0x18c5   :  { %3024 = vrot.lane.b32.xlu1 %v6357_v44, %s5523_s7 }
0x18c9   :  { %3074 = vrot.lane.b32.xlu1 %v6362_v38, %s5523_s7 }
0x18cd   :  { %3022 = vrot.lane.b32.xlu1 %v6364_v49, %s5523_s7 }
0x193d   :  { %v2904_v30 = vpop.xlane.xlu1 %2903 }
0x193e   :  { %v2908_v31 = vsub.f32 %v2847_v60, %v2904_v30 }
0x1940   :  { %v2910_v32 = vmul.f32 1.442695, %v2908_v31 }
0x1941   :  { %v2927_v34 = vpop.permute.xlu1 %2926 }
0x1942   :  { %5197 = vpow2.f32 %v2910_v32  ;;  %v2932_v18 = vsel %vm303_vm1, %v2927_v34, 0 }
0x1943   :  { %4805 = vmatpush3.bf16.msra.mxu1 %v2932_v18 }
0x1944   :  { %4816 = vmatprep.subr.bf16.mxu1 %v5532_v33 }
0x1945   :  { %v3025_v42 = vpop.permute.xlu1 %3024 }
0x1946   :  { %v3030_v62 = vsel %vm631_vm3, %v3025_v42, 0 }
0x1949   :  { %v3075_v5 = vpop.permute.xlu1 %3074 }
0x194a   :  { %v3080_v53 = vsel %vm631_vm3, %v3075_v5, 0 }
0x194c   :  { %v5198_v25 = vpop.eup %5197 }
0x194d   :  { %v2914_v37 = vsel %vm299_vm0, %v5198_v25, 0.0 }
0x194e   :  { %2915 = vadd.xlane.f32.xlu0 %v2914_v37 }
0x1951   :  { %v2907_v44 = vpop.xlane.xlu0 %2906 }
0x1952   :  { %v2909_v10 = vsub.f32 %v2897_v22, %v2907_v44 }
0x1954   :  { %v2912_v38 = vmul.f32 1.442695, %v2909_v10 }
0x1956   :  { %5199 = vpow2.f32 %v2912_v38 }
0x1960   :  { %v5200_v40 = vpop.eup %5199 }
0x1961   :  { %v2917_v49 = vsel %vm299_vm0, %v5200_v40, 0.0 }
0x1962   :  { %2918 = vadd.xlane.f32.xlu0 %v2917_v49 }
0x1978   :  { %2974 = vrot.lane.b32.xlu0 %v6412_v39, %s5517_s0 }
0x197c   :  { %3072 = vrot.lane.b32.xlu0 %v6375_v56, %s5523_s7  ;;  %v3023_v56 = vpop.permute.xlu1 %3022 }
0x19db   :  { %v2916_v41 = vpop.xlane.xlu0 %2915 }
0x19dc   :  { %5201 = vrcp.f32 %v2916_v41 }
0x19e6   :  { %v5202_v2 = vpop.eup %5201 }
0x19e7   :  { %v2922_v48 = vmul.f32 %v5202_v2, %v5198_v25 }
0x19e9   :  { %v2924_v43 = vpack.c.bf16 %v2922_v48, %v2922_v48 }
0x19eb   :  { %4807 = vmatmul.mubr.msk.bf16.vlgmr.msra.gmra.mrb[48].mxu1 %vm299_vm0, %v2924_v43 }
0x19ec   :  { %4817 = vmatpush3.bf16.xpose.msra.mxu1 %v3030_v62  ;;  %4818 = vmatprep.mubr.msk.bf16.mxu1 %vm5533_vm2, %v5532_v33 }
0x19ed   :  { %4828 = vmatprep.subr.bf16.mxu1 %v5532_v33 }
0x19ef   :  { %v2919_v20 = vpop.xlane.xlu0 %2918 }
0x19f0   :  { %5203 = vrcp.f32 %v2919_v20 }
0x19f3   :  { %v2975_v21 = vpop.permute.xlu0 %2974  ;;  %4819 = vmatmul.mubr.msk.bf16.vlgmr.msra.gmra.mrb[52].mxu1 %vm631_vm3, %v3023_v56 }
0x19f4   :  { %v2980_v3 = vsel %vm303_vm1, %v2975_v21, 0  ;;  %4830 = vmatprep.mubr.msk.bf16.mxu1 %vm5533_vm2, %v5532_v33  ;;  %v5058_v21 = vld [vmem:[#allocation6 + $0x48] sm:$0xff]  }
0x19f5   :  { %4811 = vmatpush3.bf16.msra.mxu0 %v2980_v3  ;;  %v5059_v3 = vld [vmem:[#allocation6 + $0x50] sm:$0xff]  }
0x19f6   :  { %4822 = vmatprep.subr.bf16.mxu0 %v5532_v33 }
0x19f7   :  { %v3073_v54 = vpop.permute.xlu0 %3072 }
0x19fa   :  { %v5204_v7 = vpop.eup %5203 }
0x19fb   :  { %v2923_v45 = vmul.f32 %v5204_v7, %v5200_v40  ;;  %v5060_v7 = vld [vmem:[#allocation6 + $0x58] sm:$0xff]  }
0x19fd   :  { %v2925_v46 = vpack.c.bf16 %v2923_v45, %v2923_v45  ;;  %v5061_v45 = vld [vmem:[#allocation6 + $0x60] sm:$0xff]  }
0x19ff   :  { %4813 = vmatmul.mubr.msk.bf16.vlgmr.msra.gmra.mrb[88].mxu0 %vm299_vm0, %v2925_v46  ;;  %v5062_v46 = vld [vmem:[#allocation6 + $0x68] sm:$0xff]  }
0x1a00   :  { %4823 = vmatpush3.bf16.xpose.msra.mxu0 %v3080_v53  ;;  %4824 = vmatprep.mubr.msk.bf16.mxu0 %vm5533_vm2, %v5532_v33  ;;  %v5063_v53 = vld [vmem:[#allocation6 + $0x70] sm:$0xff]  }
0x1a01   :  { %4834 = vmatprep.subr.bf16.mxu0 %v5532_v33 }
0x1a07   :  { %4825 = vmatmul.mubr.msk.bf16.vlgmr.msra.gmra.mrb[92].mxu0 %vm631_vm3, %v3073_v54 }
0x1a08   :  { %4836 = vmatprep.mubr.msk.bf16.mxu0 %vm5533_vm2, %v5532_v33 }
0x1abe   :  { %v2968_v57 = vpop.f32.mrb[48].mxu1 }
0x1abf   :  { %v4808_v58 = vpop.f32.mrb[49].mxu1 }
0x1ac0   :  { %v2971_v60 = vpop.f32.mrb[50].mxu1 }
0x1ac1   :  { %v4809_v63 = vpop.f32.mrb[51].mxu1 }
0x1ac2   :  { %v5064_v63 = vld [vmem:[#allocation6 + $0x78] sm:$0xff]  }
0x1ac6   :  { %v3066_v1 = vpop.f32.mrb[52].mxu1 }
0x1ac7   :  { %v3067_v6 = vadd.f32 %v6387_v59, %v3066_v1  ;;  %v4820_v9 = vpop.f32.mrb[53].mxu1 }
0x1ac8   :  { %v3069_v15 = vpop.f32.mrb[54].mxu1 }
0x1ac9   :  { %v4821_v16 = vpop.f32.mrb[55].mxu1  ;;  %v3122_v17 = vsel %vm299_vm0, %v3067_v6, -inf }
0x1aca   :  { %3123 = vmax.xlane.f32.xlu1 %v3122_v17 }
0x1ad2   :  { %v3016_v19 = vpop.f32.mrb[88].mxu0 }
0x1ad3   :  { %v4926_v22 = vpack.i.bf16 %v3016_v19, %v2968_v57  ;;  %v4814_v23 = vpop.f32.mrb[89].mxu0 }
0x1ad4   :  { %v3019_v24 = vpop.f32.mrb[90].mxu0 }
0x1ad5   :  { %v4815_v27 = vpop.f32.mrb[91].mxu0 }
0x1ada   :  { %v3116_v29 = vpop.f32.mrb[92].mxu0 }
0x1adb   :  { %v3117_v30 = vadd.f32 %v6394_v11, %v3116_v29  ;;  %v4826_v31 = vpop.f32.mrb[93].mxu0  ;;  %3146 = vrot.lane.b32.xlu1 %v6373_v4, %s5523_s7 }
0x1adc   :  { %v3119_v32 = vpop.f32.mrb[94].mxu0 }
0x1add   :  { %v4827_v59 = vpop.f32.mrb[95].mxu0  ;;  %v3125_v34 = vsel %vm299_vm0, %v3117_v30, -inf }
0x1ade   :  { %3126 = vmax.xlane.f32.xlu0 %v3125_v34 }
0x1adf   :  { %4922 = vrot.lane.b32.xlu1 %v4921_v13, %s5523_s7 }
0x1ae3   :  { %4927 = vrot.lane.b32.xlu1 %v4926_v22, %s5517_s0 }
0x1b57   :  { %v3124_v18 = vpop.xlane.xlu1 %3123 }
0x1b58   :  { %v3128_v25 = vsub.f32 %v3067_v6, %v3124_v18 }
0x1b5a   :  { %v3130_v37 = vmul.f32 1.442695, %v3128_v25 }
0x1b5b   :  { %v3147_v11 = vpop.permute.xlu1 %3146 }
0x1b5c   :  { %5205 = vpow2.f32 %v3130_v37  ;;  %v3152_v44 = vsel %vm303_vm1, %v3147_v11, 0 }
0x1b5d   :  { %4829 = vmatpush3.bf16.msra.mxu1 %v3152_v44  ;;  %v4336_v44 = vld [vmem:[#allocation7 + $0x1] ss:$0 sm:$0xff] }
0x1b5e   :  { %4840 = vmatprep.subr.bf16.mxu1 %v5532_v33 }
0x1b5f   :  { %v4923_v17 = vpop.permute.xlu1 %4922 }
0x1b60   :  { %v4925_v22 = vunpack.i.h.bf16 %v4923_v17  ;;  %v4924_v23 = vunpack.i.l.bf16 %v4923_v17  ;;  %v5067_v17 = vld [vmem:[%s6680_s10 + $0x84] ss:$8 sps:$4 sm:$0xff]  }
0x1b62   :  { %v3266_v31 = vsel %vm631_vm3, %v6432_v14, %v4924_v23 }
0x1b63   :  { %v4928_v19 = vpop.permute.xlu1 %4927 }
0x1b64   :  { %v4930_v24 = vunpack.i.h.bf16 %v4928_v19  ;;  %v4929_v27 = vunpack.i.l.bf16 %v4928_v19  ;;  %v5070_v19 = vld [vmem:[%s6680_s10 + $0x94] ss:$8 sps:$4 sm:$0xff]  }
0x1b66   :  { %v5206_v4 = vpop.eup %5205  ;;  %v3268_v18 = vsel %vm1526_vm4, %v3266_v31, %v4929_v27 }
0x1b67   :  { %v3134_v10 = vsel %vm299_vm0, %v5206_v4, 0.0 }
0x1b68   :  { %3135 = vadd.xlane.f32.xlu0 %v3134_v10 }
0x1b6b   :  { %v3127_v38 = vpop.xlane.xlu0 %3126 }
0x1b6c   :  { %v3129_v40 = vsub.f32 %v3117_v30, %v3127_v38  ;;  %v3267_v30 = vsel %vm631_vm3, %v6435_v61, %v4925_v22  ;;  %v5068_v22 = vld [vmem:[%s6680_s10 + $0x90] ss:$8 sps:$4 sm:$0xff]  }
0x1b6d   :  { %v3269_v34 = vsel %vm1526_vm4, %v3267_v30, %v4930_v24 }
0x1b6e   :  { %v3132_v47 = vmul.f32 1.442695, %v3129_v40 }
0x1b70   :  { %5207 = vpow2.f32 %v3132_v47 }
0x1b7a   :  { %v5208_v12 = vpop.eup %5207 }
0x1b7b   :  { %v3137_v13 = vsel %vm299_vm0, %v5208_v12, 0.0 }
0x1b7c   :  { %3138 = vadd.xlane.f32.xlu0 %v3137_v13 }
0x1b92   :  { %3194 = vrot.lane.b32.xlu0 %v6412_v39, %s5523_s7  ;;  %v5057_v39 = vld [vmem:[#allocation6 + $0x40] sm:$0xff]  }
0x1bf5   :  { %v3136_v49 = vpop.xlane.xlu0 %3135 }
0x1bf6   :  { %5209 = vrcp.f32 %v3136_v49 }
0x1c00   :  { %v5210_v41 = vpop.eup %5209 }
0x1c01   :  { %v3142_v2 = vmul.f32 %v5210_v41, %v5206_v4 }
0x1c03   :  { %v3144_v42 = vpack.c.bf16 %v3142_v2, %v3142_v2 }
0x1c05   :  { %4831 = vmatmul.mubr.msk.bf16.vlgmr.msra.gmra.mrb[56].mxu1 %vm299_vm0, %v3144_v42 }
0x1c06   :  { %4856 = vmatprep.mubr.msk.bf16.mxu1 %vm5533_vm2, %v5532_v33  ;;  %4841 = vmatpush3.bf16.msra.mxu1 %v5057_v39 }
0x1c07   :  { %4842 = vmatprep.subr.bf16.mxu1 %v5532_v33 }
0x1c09   :  { %v3139_v48 = vpop.xlane.xlu0 %3138 }
0x1c0a   :  { %5211 = vrcp.f32 %v3139_v48  ;;  %4843 = vmatpush3.bf16.msra.mxu1 %v5058_v21 }
0x1c0b   :  { %4844 = vmatprep.subr.bf16.mxu1 %v5532_v33 }
0x1c0d   :  { %v3195_v43 = vpop.permute.xlu0 %3194 }
0x1c0e   :  { %v3200_v62 = vsel %vm303_vm1, %v3195_v43, 0  ;;  %4845 = vmatpush3.bf16.msra.mxu1 %v5059_v3 }
0x1c0f   :  { %4835 = vmatpush3.bf16.msra.mxu0 %v3200_v62  ;;  %4846 = vmatprep.subr.bf16.mxu1 %v5532_v33 }
0x1c10   :  { %3573 = vmatprep.subr.bf16.mxu0 %v5067_v17  ;;  %v5104_v17 = vld [vmem:[#allocation10 + $0xb8] sm:$0xff]  }
0x1c12   :  { %4847 = vmatpush3.bf16.msra.mxu1 %v5060_v7 }
0x1c13   :  { %4848 = vmatprep.subr.bf16.mxu1 %v5532_v33 }
0x1c14   :  { %v5212_v5 = vpop.eup %5211 }
0x1c15   :  { %v3143_v20 = vmul.f32 %v5212_v5, %v5208_v12 }
0x1c16   :  { %4849 = vmatpush3.bf16.msra.mxu1 %v5061_v45 }
0x1c17   :  { %v3145_v56 = vpack.c.bf16 %v3143_v20, %v3143_v20  ;;  %4850 = vmatprep.subr.bf16.mxu1 %v5532_v33 }
0x1c19   :  { %4837 = vmatmul.mubr.msk.bf16.vlgmr.msra.gmra.mrb[96].mxu0 %vm299_vm0, %v3145_v56 }
0x1c1a   :  { %3605 = vmatprep.mubr.bf16.mxu0 %v5531_v0  ;;  %4851 = vmatpush3.bf16.msra.mxu1 %v5062_v46 }
0x1c1b   :  { %4852 = vmatprep.subr.bf16.mxu1 %v5532_v33 }
0x1c1e   :  { %4853 = vmatpush3.bf16.msra.mxu1 %v5063_v53 }
0x1c1f   :  { %4854 = vmatprep.subr.bf16.mxu1 %v5532_v33 }
0x1c22   :  { %4855 = vmatpush3.bf16.msra.mxu1 %v5064_v63 }
0x1cd8   :  { %v3188_v54 = vpop.f32.mrb[56].mxu1 }
0x1cd9   :  { %v4832_v57 = vpop.f32.mrb[57].mxu1 }
0x1cda   :  { %v3191_v58 = vpop.f32.mrb[58].mxu1  ;;  %v4345_v57 = vld [vmem:[%s6701_s14 + $0x10] sm:$0xff] }
0x1cdb   :  { %v4833_v60 = vpop.f32.mrb[59].mxu1 }
0x1cec   :  { %v3236_v1 = vpop.f32.mrb[96].mxu0 }
0x1ced   :  { %v4931_v6 = vpack.i.bf16 %v3236_v1, %v3188_v54  ;;  %v4838_v9 = vpop.f32.mrb[97].mxu0 }
0x1cee   :  { %v3239_v15 = vpop.f32.mrb[98].mxu0 }
0x1cef   :  { %4932 = vrot.lane.b32.xlu1 %v4931_v6, %s5534_s24  ;;  %v4839_v16 = vpop.f32.mrb[99].mxu0  ;;  %v4346_v6 = vld [vmem:[%s6701_s14 + $0x18] sm:$0xff] }
0x1cf0   :  { %v5065_v16 = vld [vmem:[%s6680_s10 + $0x80] ss:$8 sps:$4 sm:$0xff]  }
0x1cf1   :  { %3574 = vmatpush1.bf16.msra.mxu0 %v5065_v16  ;;  %v5102_v16 = vld [vmem:[#allocation10 + $0xb0] sm:$0xff]  }
0x1cf2   :  { %3575 = vmatprep.subr.bf16.mxu0 %v5070_v19 }
0x1cf5   :  { %3576 = vmatpush1.bf16.msra.mxu0 %v5068_v22 }
0x1d61   :  { %v4933_v29 = vpop.permute.xlu1 %4932 }
0x1d62   :  { %v4935_v32 = vunpack.i.h.bf16 %v4933_v29  ;;  %v4934_v59 = vunpack.i.l.bf16 %v4933_v29 }
0x1d64   :  { %v3271_v25 = vsel %vm1529_vm5, %v3269_v34, %v4935_v32  ;;  %v3270_v37 = vsel %vm1529_vm5, %v3268_v18, %v4934_v59  ;;  %v5073_v34 = vld [vmem:[%s6680_s10 + $0xa4] ss:$8 sps:$4 sm:$0xff]   ;;  %v5071_v18 = vld [vmem:[%s6680_s10 + $0xa0] ss:$8 sps:$4 sm:$0xff]  }
0x1d65   :  { %v3289_v11 = vpack.c.bf16 %v3271_v25, %v3270_v37  ;;  %3577 = vmatprep.subr.bf16.mxu0 %v5073_v34  ;;  %v5076_v25 = vld [vmem:[%s6680_s10 + $0xb4] ss:$8 sps:$4 sm:$0xff]   ;;  %v5074_v37 = vld [vmem:[%s6680_s10 + $0xb0] ss:$8 sps:$4 sm:$0xff]  }
0x1d66   :  { %3578 = vmatpush1.bf16.msra.mxu0 %v5071_v18 }
0x1d67   :  { %4857 = vmatmul.mubr.bf16.vlgmr.msra.gmra.mrb[60].mxu1 %v3289_v11  ;;  %3579 = vmatprep.subr.bf16.mxu0 %v5076_v25  ;;  %v5079_v11 = vld [vmem:[%s6680_s10 + $0xc4] ss:$8 sps:$4 sm:$0xff]  }
0x1d6a   :  { %3580 = vmatpush1.bf16.msra.mxu0 %v5074_v37 }
0x1d6b   :  { %3581 = vmatprep.subr.bf16.mxu0 %v5079_v11 }
0x1e3a   :  { %v3380_v4 = vpop.f32.mrb[60].mxu1 }
0x1e3b   :  { %v3381_v10 = vadd.f32 %v4336_v44, %v3380_v4  ;;  %v4858_v38 = vpop.f32.mrb[61].mxu1  ;;  %v5082_v4 = vld [vmem:[%s6680_s10 + $0xd4] ss:$8 sps:$4 sm:$0xff]  }
0x1e3c   :  { %v3383_v61 = vpop.f32.mrb[62].mxu1  ;;  %v5085_v38 = vld [vmem:[%s6680_s10 + $0xe4] ss:$8 sps:$4 sm:$0xff]  }
0x1e3d   :  { %v3384_v40 = vadd.f32 %v4336_v44, %v3383_v61  ;;  %v4859_v47 = vpop.f32.mrb[63].mxu1  ;;  %v3387_v14 = vadd.f32 %v3381_v10, %v6342_v35  ;;  %v5077_v44 = vld [vmem:[%s6680_s10 + $0xc0] ss:$8 sps:$4 sm:$0xff]   ;;  %v5080_v10 = vld [vmem:[%s6680_s10 + $0xd0] ss:$8 sps:$4 sm:$0xff]  }
0x1e3e   :  { %3582 = vmatpush1.bf16.msra.mxu0 %v5077_v44  ;;  %v5083_v61 = vld [vmem:[%s6680_s10 + $0xe0] ss:$8 sps:$4 sm:$0xff]   ;;  %v5086_v47 = vld [vmem:[%s6680_s10 + $0xf0] ss:$8 sps:$4 sm:$0xff]  }
0x1e3f   :  { %3389 = vadd.xlane.f32.xlu0 %v3387_v14  ;;  %v3388_v12 = vadd.f32 %v3384_v40, %v6344_v36  ;;  %v6561_v36 = vld [vmem:[%s6679_s9 + $0x8] sm:$0x3f]  ;;  %3583 = vmatprep.subr.bf16.mxu0 %v5082_v4  ;;  %v5088_v40 = vld [vmem:[%s6680_s10 + $0xf4] ss:$8 sps:$4 sm:$0xff]   ;;  %v4379_v4 = vld [vmem:[#allocation12 + $0x1] ss:$0 sm:$0xff] }
0x1e40   :  { %v3414_v3 = vrot.slane %v6561_v36, %v5962_v55  ;;  %v3420_v46 = vrot.slane %v6561_v36, %v5958_v52 }
0x1e41   :  { %3391 = vadd.xlane.f32.xlu1 %v3388_v12 }
0x1e42   :  { %3584 = vmatpush1.bf16.msra.mxu0 %v5080_v10 }
0x1e43   :  { %3585 = vmatprep.subr.bf16.mxu0 %v5085_v38 }
0x1e46   :  { %3586 = vmatpush1.bf16.msra.mxu0 %v5083_v61 }
0x1e47   :  { %3587 = vmatprep.subr.bf16.mxu0 %v5088_v40 }
0x1e4a   :  { %3588 = vmatpush1.bf16.msra.mxu0 %v5086_v47 }
0x1ecc   :  { %v3390_v13 = vpop.xlane.xlu0 %3389 }
0x1ecd   :  { %v3393_v49 = vmul.f32 0.0078125, %v3390_v13  ;;  %v5091_v13 = vld [vmem:[#allocation10 + $0xc8] sm:$0xff]  }
0x1ece   :  { %v3392_v41 = vpop.xlane.xlu1 %3391 }
0x1ecf   :  { %v3395_v2 = vsub.f32 %v3387_v14, %v3393_v49  ;;  %v3394_v42 = vmul.f32 0.0078125, %v3392_v41  ;;  %v5089_v14 = vld [vmem:[#allocation10 + $0xc0] sm:$0xff]   ;;  %v5092_v49 = vld [vmem:[#allocation10 + $0x88] sm:$0xff]   ;;  %v5093_v41 = vld [vmem:[#allocation10 + $0xd0] sm:$0xff]  }
0x1ed0   :  { %4557 = vmatprep.subr.bf16.mxu1 %v5089_v14 }
0x1ed1   :  { %v3396_v48 = vsub.f32 %v3388_v12, %v3394_v42  ;;  %v3397_v43 = vmul.f32 %v3395_v2, %v3395_v2  ;;  %v5090_v12 = vld [vmem:[#allocation10 + $0x80] sm:$0xff]   ;;  %v5095_v42 = vld [vmem:[#allocation10 + $0xd8] sm:$0xff]  }
0x1ed2   :  { %4558 = vmatpush3.bf16.msra.mxu1 %v5090_v12 }
0x1ed3   :  { %3399 = vadd.xlane.f32.xlu0 %v3397_v43  ;;  %v3398_v62 = vmul.f32 %v3396_v48, %v3396_v48  ;;  %4559 = vmatprep.subr.bf16.mxu1 %v5091_v13  ;;  %v5097_v43 = vld [vmem:[#allocation10 + $0xe0] sm:$0xff]  }
0x1ed6   :  { %4560 = vmatpush3.bf16.msra.mxu1 %v5092_v49 }
0x1ed7   :  { %3401 = vadd.xlane.f32.xlu0 %v3398_v62  ;;  %4561 = vmatprep.subr.bf16.mxu1 %v5093_v41  ;;  %v5098_v62 = vld [vmem:[#allocation10 + $0xa0] sm:$0xff]  }
0x1f60   :  { %v3400_v5 = vpop.xlane.xlu0 %3399 }
0x1f61   :  { %v3403_v20 = vmul.f32 0.0078125, %v3400_v5  ;;  %v5099_v5 = vld [vmem:[#allocation10 + $0xe8] sm:$0xff]  }
0x1f63   :  { %v3405_v56 = vadd.f32 1e-05, %v3403_v20 }
0x1f64   :  { %v3402_v39 = vpop.xlane.xlu0 %3401 }
0x1f65   :  { %5213 = vrsqrt.f32 %v3405_v56  ;;  %v3404_v35 = vmul.f32 0.0078125, %v3402_v39 }
0x1f67   :  { %v3406_v21 = vadd.f32 1e-05, %v3404_v35 }
0x1f69   :  { %5215 = vrsqrt.f32 %v3406_v21 }
0x1f6f   :  { %v5214_v7 = vpop.eup %5213 }
0x1f70   :  { %v3409_v45 = vmul.f32 %v5214_v7, %v3395_v2  ;;  %v5094_v2 = vld [vmem:[#allocation10 + $0x90] sm:$0xff]  }
0x1f71   :  { %4562 = vmatpush3.bf16.msra.mxu1 %v5094_v2 }
0x1f72   :  { %v3415_v53 = vmul.f32 %v3414_v3, %v3409_v45  ;;  %4563 = vmatprep.subr.bf16.mxu1 %v5095_v42 }
0x1f73   :  { %v5216_v54 = vpop.eup %5215 }
0x1f74   :  { %v3421_v58 = vadd.f32 %v3420_v46, %v3415_v53  ;;  %v3410_v60 = vmul.f32 %v5216_v54, %v3396_v48  ;;  %v5096_v48 = vld [vmem:[#allocation10 + $0x98] sm:$0xff]  }
0x1f75   :  { %4564 = vmatpush3.bf16.msra.mxu1 %v5096_v48 }
0x1f76   :  { %v3426_v63 = vadd.f32 %v4345_v57, %v3421_v58  ;;  %v3416_v1 = vmul.f32 %v3414_v3, %v3410_v60  ;;  %4565 = vmatprep.subr.bf16.mxu1 %v5097_v43  ;;  %v3459_v58 = vrot.slane %v6561_v36, %v1716_v50  ;;  %v3481_v50 = vld [vmem:[#allocation9 + $0x2] sm:$0x3] }
0x1f77   :  { %v3486_v19 = vrot.slane %v3481_v50, %v5962_v55  ;;  %v3490_v22 = vrot.slane %v3481_v50, %v5958_v52 }
0x1f78   :  { %3428 = vadd.xlane.f32.xlu0 %v3426_v63  ;;  %v3422_v9 = vadd.f32 %v3420_v46, %v3416_v1  ;;  %v3453_v46 = vrot.slane %v6561_v36, %v5988_v8  ;;  %v5103_v8 = vld [vmem:[#allocation10 + $0xf8] sm:$0xff]  }
0x1f79   :  { %4566 = vmatpush3.bf16.msra.mxu1 %v5098_v62 }
0x1f7a   :  { %v3427_v15 = vadd.f32 %v4346_v6, %v3422_v9  ;;  %4567 = vmatprep.subr.bf16.mxu1 %v5099_v5  ;;  %v5100_v9 = vld [vmem:[#allocation10 + $0xa8] sm:$0xff]  }
0x1f7c   :  { %3430 = vadd.xlane.f32.xlu1 %v3427_v15 }
0x1f7d   :  { %4568 = vmatpush3.bf16.msra.mxu1 %v5100_v9  ;;  %v5105_v9 = vld [vmem:[#allocation15] ss:$8 sps:$4 sm:$0xff]  }
0x2005   :  { %v3429_v23 = vpop.xlane.xlu0 %3428 }
0x2006   :  { %v3432_v24 = vmul.f32 0.0078125, %v3429_v23 }
0x2008   :  { %v6585_v27 = vsub.f32 %v3426_v63, %v3432_v24 }
0x2009   :  { %v3431_v29 = vpop.xlane.xlu1 %3430 }
0x200a   :  { %v3433_v30 = vmul.f32 0.0078125, %v3431_v29  ;;  %v3436_v31 = vmul.f32 %v6585_v27, %v6585_v27 }
0x200c   :  { %v3435_v32 = vsub.f32 %v3427_v15, %v3433_v30  ;;  %3438 = vadd.xlane.f32.xlu0 %v3436_v31  ;;  %v5101_v15 = vld [vmem:[#allocation10 + $0xf0] sm:$0xff]  }
0x200d   :  { %4569 = vmatprep.subr.bf16.mxu1 %v5101_v15  ;;  %v5107_v15 = vld [vmem:[#allocation15 + $0x4] ss:$8 sps:$4 sm:$0xff]  }
0x200e   :  { %v3437_v59 = vmul.f32 %v3435_v32, %v3435_v32  ;;  %4570 = vmatpush3.bf16.msra.mxu1 %v5102_v16  ;;  %v5110_v16 = vld [vmem:[#allocation15 + $0x14] ss:$8 sps:$4 sm:$0xff]   ;;  %3981 = vmatprep.subr.bf16.mxu0 %v5107_v15 }
0x200f   :  { %4571 = vmatprep.subr.bf16.mxu1 %v5103_v8 }
0x2010   :  { %3440 = vadd.xlane.f32.xlu1 %v3437_v59 }
0x2012   :  { %4572 = vmatpush3.bf16.msra.mxu1 %v5104_v17 }
0x2013   :  { %4860 = vmatprep.subr.bf16.mxu1 %v5532_v33 }
0x2099   :  { %v3439_v20 = vpop.xlane.xlu0 %3438 }
0x209a   :  { %v3442_v56 = vmul.f32 0.0078125, %v3439_v20 }
0x209c   :  { %v3444_v39 = vadd.f32 1e-05, %v3442_v56 }
0x209d   :  { %v3441_v35 = vpop.xlane.xlu1 %3440 }
0x209e   :  { %5217 = vrsqrt.f32 %v3444_v39  ;;  %v3443_v21 = vmul.f32 0.0078125, %v3441_v35 }
0x20a0   :  { %v3445_v3 = vadd.f32 1e-05, %v3443_v21 }
0x20a2   :  { %5219 = vrsqrt.f32 %v3445_v3 }
0x20a8   :  { %v5218_v7 = vpop.eup %5217 }
0x20a9   :  { %v3448_v45 = vmul.f32 %v5218_v7, %v6585_v27 }
0x20ab   :  { %v3454_v57 = vmul.f32 %v3453_v46, %v3448_v45  ;;  %v3827_v45 = vrot.slane %v6561_v36, %v2080_v26  ;;  %v5108_v26 = vld [vmem:[#allocation15 + $0x10] ss:$8 sps:$4 sm:$0xff]  }
0x20ac   :  { %v5220_v53 = vpop.eup %5219 }
0x20ad   :  { %v3449_v54 = vmul.f32 %v5220_v53, %v3435_v32  ;;  %v3460_v63 = vadd.f32 %v3459_v58, %v3454_v57 }
0x20af   :  { %v3455_v60 = vmul.f32 %v3453_v46, %v3449_v54  ;;  %v3833_v54 = vrot.slane %v6561_v36, %v2086_v28 }
0x20b1   :  { %v3461_v1 = vadd.f32 %v3459_v58, %v3455_v60 }
0x20b3   :  { %v3479_v6 = vpack.c.bf16 %v3461_v1, %v3460_v63 }
0x20b5   :  { %3606 = vmatmul.mubr.bf16.vlgmr.msra.gmra.mrb[100].mxu0 %v3479_v6 }
0x20b6   :  { %4013 = vmatprep.mubr.bf16.mxu0 %v5531_v0  ;;  %3982 = vmatpush1.bf16.msra.mxu0 %v5105_v9 }
0x20b7   :  { %3983 = vmatprep.subr.bf16.mxu0 %v5110_v16 }
0x20ba   :  { %3984 = vmatpush1.bf16.msra.mxu0 %v5108_v26 }
0x2188   :  { %v3607_v23 = vpop.f32.mrb[100].mxu0 }
0x2189   :  { %v3608_v24 = vadd.f32 %v3607_v23, %v3486_v19  ;;  %v3609_v0 = vpop.f32.mrb[101].mxu0  ;;  %v5113_v23 = vld [vmem:[#allocation15 + $0x24] ss:$8 sps:$4 sm:$0xff]  }
0x218a   :  { %v3610_v27 = vadd.f32 %v3609_v0, %v3490_v22  ;;  %v3611_v29 = vpop.f32.mrb[102].mxu0  ;;  %3985 = vmatprep.subr.bf16.mxu0 %v5113_v23  ;;  %v5116_v0 = vld [vmem:[#allocation15 + $0x34] ss:$8 sps:$4 sm:$0xff]  }
0x218b   :  { %v3612_v30 = vadd.f32 %v3611_v29, %v3486_v19  ;;  %v3613_v31 = vpop.f32.mrb[103].mxu0  ;;  %v3616_v59 = vmax.f32 %v3608_v24, 0.0  ;;  %v5111_v24 = vld [vmem:[#allocation15 + $0x20] ss:$8 sps:$4 sm:$0xff]   ;;  %v5119_v29 = vld [vmem:[#allocation15 + $0x44] ss:$8 sps:$4 sm:$0xff]  }
0x218c   :  { %v3614_v32 = vadd.f32 %v3613_v31, %v3490_v22  ;;  %v3617_v18 = vmax.f32 %v3610_v27, 0.0  ;;  %3986 = vmatpush1.bf16.msra.mxu0 %v5111_v24  ;;  %v5114_v27 = vld [vmem:[#allocation15 + $0x30] ss:$8 sps:$4 sm:$0xff]   ;;  %v5122_v31 = vld [vmem:[#allocation15 + $0x54] ss:$8 sps:$4 sm:$0xff]  }
0x218d   :  { %v3618_v34 = vmax.f32 %v3612_v30, 0.0  ;;  %3987 = vmatprep.subr.bf16.mxu0 %v5116_v0  ;;  %v5117_v30 = vld [vmem:[#allocation15 + $0x40] ss:$8 sps:$4 sm:$0xff]  }
0x218e   :  { %v3619_v25 = vmax.f32 %v3614_v32, 0.0  ;;  %v5120_v32 = vld [vmem:[#allocation15 + $0x50] ss:$8 sps:$4 sm:$0xff]  }
0x218f   :  { %v3653_v37 = vpack.c.bf16 %v3618_v34, %v3616_v59  ;;  %v5125_v59 = vld [vmem:[#allocation15 + $0x64] ss:$8 sps:$4 sm:$0xff]   ;;  %v5123_v34 = vld [vmem:[#allocation15 + $0x60] ss:$8 sps:$4 sm:$0xff]  }
0x2190   :  { %v3654_v11 = vpack.c.bf16 %v3619_v25, %v3617_v18  ;;  %3988 = vmatpush1.bf16.msra.mxu0 %v5114_v27  ;;  %v5128_v18 = vld [vmem:[#allocation15 + $0x74] ss:$8 sps:$4 sm:$0xff]   ;;  %v5126_v25 = vld [vmem:[#allocation15 + $0x70] ss:$8 sps:$4 sm:$0xff]  }
0x2191   :  { %3989 = vmatprep.subr.bf16.mxu0 %v5119_v29 }
0x2192   :  { %3791 = vmatprep.mubr.bf16.mxu1 %v3654_v11  ;;  %v5130_v11 = vld [vmem:[#allocation18 + $0x8] sm:$0xff]  }
0x2193   :  { %3792 = vmatmul.mubr.bf16.vlgmr.msra.gmra.mrb[64].mxu1 %v3653_v37  ;;  %v5129_v37 = vld [vmem:[#allocation18] sm:$0xff]  }
0x2194   :  { %4876 = vmatprep.mubr.msk.bf16.mxu1 %vm5533_vm2, %v5532_v33  ;;  %3990 = vmatpush1.bf16.msra.mxu0 %v5117_v30 }
0x2195   :  { %3991 = vmatprep.subr.bf16.mxu0 %v5122_v31  ;;  %4861 = vmatpush3.bf16.msra.mxu1 %v5129_v37 }
0x2196   :  { %4862 = vmatprep.subr.bf16.mxu1 %v5532_v33 }
0x2198   :  { %3992 = vmatpush1.bf16.msra.mxu0 %v5120_v32 }
0x2199   :  { %3993 = vmatprep.subr.bf16.mxu0 %v5125_v59  ;;  %4863 = vmatpush3.bf16.msra.mxu1 %v5130_v11 }
0x219a   :  { %4864 = vmatprep.subr.bf16.mxu1 %v5532_v33 }
0x219c   :  { %3994 = vmatpush1.bf16.msra.mxu0 %v5123_v34 }
0x219d   :  { %3995 = vmatprep.subr.bf16.mxu0 %v5128_v18 }
0x21a0   :  { %3996 = vmatpush1.bf16.msra.mxu0 %v5126_v25 }
0x2266   :  { %v4573_v44 = vpop.f32.mrb[64].mxu1 }
0x2267   :  { %v4574_v10 = vpop.f32.mrb[65].mxu1 }
0x2268   :  { %v4575_v38 = vadd.f32 %v4574_v10, %v4573_v44  ;;  %v4576_v61 = vpop.f32.mrb[66].mxu1  ;;  %v5131_v44 = vld [vmem:[#allocation18 + $0x10] sm:$0xff]   ;;  %v5133_v10 = vld [vmem:[#allocation18 + $0x20] sm:$0xff]  }
0x2269   :  { %v4577_v40 = vpop.f32.mrb[67].mxu1  ;;  %4865 = vmatpush3.bf16.msra.mxu1 %v5131_v44 }
0x226a   :  { %v3794_v47 = vadd.f32 %v4575_v38, %v4379_v4  ;;  %v4578_v14 = vadd.f32 %v4577_v40, %v4576_v61  ;;  %4866 = vmatprep.subr.bf16.mxu1 %v5532_v33  ;;  %v5134_v38 = vld [vmem:[#allocation18 + $0x28] sm:$0xff]  }
0x226c   :  { %v3797_v12 = vadd.f32 %v4578_v14, %v4379_v4  ;;  %v3800_v13 = vadd.f32 %v3794_v47, %v3460_v63  ;;  %v5132_v4 = vld [vmem:[#allocation18 + $0x18] sm:$0xff]  }
0x226d   :  { %4867 = vmatpush3.bf16.msra.mxu1 %v5132_v4 }
0x226e   :  { %3802 = vadd.xlane.f32.xlu0 %v3800_v13  ;;  %v3801_v49 = vadd.f32 %v3797_v12, %v3461_v1  ;;  %4868 = vmatprep.subr.bf16.mxu1 %v5532_v33 }
0x2270   :  { %3804 = vadd.xlane.f32.xlu1 %v3801_v49 }
0x2271   :  { %4869 = vmatpush3.bf16.msra.mxu1 %v5133_v10 }
0x2272   :  { %4870 = vmatprep.subr.bf16.mxu1 %v5532_v33 }
0x2275   :  { %4871 = vmatpush3.bf16.msra.mxu1 %v5134_v38 }
0x2276   :  { %4872 = vmatprep.subr.bf16.mxu1 %v5532_v33 }
0x22fb   :  { %v3803_v41 = vpop.xlane.xlu0 %3802 }
0x22fc   :  { %v3806_v2 = vmul.f32 0.0078125, %v3803_v41  ;;  %v4396_v41 = vld [vmem:[#allocation13] ss:$0 sm:$0xff] }
0x22fd   :  { %v3805_v42 = vpop.xlane.xlu1 %3804 }
0x22fe   :  { %v3808_v48 = vsub.f32 %v3800_v13, %v3806_v2  ;;  %v3807_v43 = vmul.f32 0.0078125, %v3805_v42 }
0x2300   :  { %v3809_v62 = vsub.f32 %v3801_v49, %v3807_v43  ;;  %v3810_v5 = vmul.f32 %v3808_v48, %v3808_v48 }
0x2302   :  { %3812 = vadd.xlane.f32.xlu0 %v3810_v5  ;;  %v3811_v20 = vmul.f32 %v3809_v62, %v3809_v62 }
0x2304   :  { %3814 = vadd.xlane.f32.xlu1 %v3811_v20 }
0x238f   :  { %v3813_v56 = vpop.xlane.xlu0 %3812 }
0x2390   :  { %v3816_v39 = vmul.f32 0.0078125, %v3813_v56 }
0x2391   :  { %v3815_v35 = vpop.xlane.xlu1 %3814 }
0x2392   :  { %v3818_v21 = vadd.f32 1e-05, %v3816_v39  ;;  %v3817_v3 = vmul.f32 0.0078125, %v3815_v35  ;;  %v5135_v35 = vld [vmem:[#allocation18 + $0x30] sm:$0xff]  }
0x2393   :  { %4873 = vmatpush3.bf16.msra.mxu1 %v5135_v35 }
0x2394   :  { %5221 = vrsqrt.f32 %v3818_v21  ;;  %v3819_v7 = vadd.f32 1e-05, %v3817_v3  ;;  %4874 = vmatprep.subr.bf16.mxu1 %v5532_v33  ;;  %v5136_v21 = vld [vmem:[#allocation18 + $0x38] sm:$0xff]  }
0x2395   :  { %v3889_v3 = vld [vmem:[#allocation16] sm:$0x3] }
0x2396   :  { %5223 = vrsqrt.f32 %v3819_v7  ;;  %v3894_v7 = vrot.slane %v3889_v3, %v5962_v55 }
0x2397   :  { %4875 = vmatpush3.bf16.msra.mxu1 %v5136_v21 }
0x239e   :  { %v5222_v46 = vpop.eup %5221 }
0x239f   :  { %v3822_v53 = vmul.f32 %v5222_v46, %v3808_v48  ;;  %v4397_v48 = vld [vmem:[#allocation13 + $0x1] ss:$0 sm:$0xff]  ;;  %v3898_v46 = vrot.slane %v3889_v3, %v5958_v52  ;;  %v4414_v52 = vld [vmem:[#allocation19] ss:$0 sm:$0xff] }
0x23a0   :  { %v5224_v57 = vpop.eup %5223 }
0x23a1   :  { %v3828_v58 = vmul.f32 %v3827_v45, %v3822_v53  ;;  %v3823_v60 = vmul.f32 %v5224_v57, %v3809_v62 }
0x23a3   :  { %v3834_v63 = vadd.f32 %v3833_v54, %v3828_v58  ;;  %v3829_v1 = vmul.f32 %v3827_v45, %v3823_v60 }
0x23a5   :  { %3838 = vadd.xlane.f32.xlu0 %v3834_v63  ;;  %v3835_v6 = vadd.f32 %v3833_v54, %v3829_v1 }
0x23a7   :  { %3840 = vadd.xlane.f32.xlu1 %v3835_v6 }
0x2432   :  { %v3839_v8 = vpop.xlane.xlu0 %3838 }
0x2433   :  { %v3842_v51 = vmul.f32 0.0078125, %v3839_v8 }
0x2434   :  { %v3841_v17 = vpop.xlane.xlu1 %3840 }
0x2435   :  { %v3844_v28 = vsub.f32 %v3834_v63, %v3842_v51  ;;  %v3843_v36 = vmul.f32 0.0078125, %v3841_v17 }
0x2437   :  { %v3845_v50 = vsub.f32 %v3835_v6, %v3843_v36  ;;  %v3846_v19 = vmul.f32 %v3844_v28, %v3844_v28 }
0x2439   :  { %3848 = vadd.xlane.f32.xlu0 %v3846_v19  ;;  %v3847_v22 = vmul.f32 %v3845_v50, %v3845_v50 }
0x243b   :  { %3850 = vadd.xlane.f32.xlu1 %v3847_v22 }
0x24c6   :  { %v3849_v61 = vpop.xlane.xlu0 %3848 }
0x24c7   :  { %v3852_v40 = vmul.f32 0.0078125, %v3849_v61 }
0x24c8   :  { %v3851_v47 = vpop.xlane.xlu1 %3850 }
0x24c9   :  { %v3854_v14 = vadd.f32 1e-05, %v3852_v40  ;;  %v3853_v12 = vmul.f32 0.0078125, %v3851_v47 }
0x24cb   :  { %5225 = vrsqrt.f32 %v3854_v14  ;;  %v3855_v13 = vadd.f32 1e-05, %v3853_v12 }
0x24cd   :  { %5227 = vrsqrt.f32 %v3855_v13 }
0x24d5   :  { %v5226_v49 = vpop.eup %5225 }
0x24d6   :  { %v3858_v2 = vmul.f32 %v5226_v49, %v3844_v28 }
0x24d7   :  { %v5228_v42 = vpop.eup %5227 }
0x24d8   :  { %v3859_v43 = vmul.f32 %v5228_v42, %v3845_v50  ;;  %v3864_v62 = vmul.f32 %v4396_v41, %v3858_v2 }
0x24da   :  { %v3865_v5 = vmul.f32 %v4396_v41, %v3859_v43  ;;  %v3870_v20 = vadd.f32 %v4397_v48, %v3864_v62 }
0x24dc   :  { %v3871_v56 = vadd.f32 %v4397_v48, %v3865_v5  ;;  %4141 = vst [vmem:[%s6689_s19] sm:$0xff] %v3870_v20 }
0x24de   :  { %v3888_v39 = vpack.c.bf16 %v3871_v56, %v3870_v20  ;;  %4142 = vst [vmem:[%s6689_s19 + $0x18] sm:$0xff] %v3871_v56 }
0x24e0   :  { %4014 = vmatmul.mubr.bf16.vlgmr.msra.gmra.mrb[104].mxu0 %v3888_v39 }
0x25b3   :  { %v4015_v45 = vpop.f32.mrb[104].mxu0 }
0x25b4   :  { %v4016_v53 = vadd.f32 %v4015_v45, %v3894_v7  ;;  %v4017_v54 = vpop.f32.mrb[105].mxu0 }
0x25b5   :  { %v4019_v57 = vpop.f32.mrb[106].mxu0  ;;  %v4018_v1 = vadd.f32 %v4017_v54, %v3898_v46 }
0x25b6   :  { %v4024_v58 = vmax.f32 %v4016_v53, 0.0  ;;  %v4020_v60 = vadd.f32 %v4019_v57, %v3894_v7  ;;  %v4021_v63 = vpop.f32.mrb[107].mxu0 }
0x25b7   :  { %v4022_v6 = vadd.f32 %v4021_v63, %v3898_v46 }
0x25b8   :  { %4143 = vst [vmem:[%s6689_s19 + $0x8] sm:$0xff] %v4024_v58  ;;  %v4025_v33 = vmax.f32 %v4020_v60, 0.0 }
0x25b9   :  { %v4042_v9 = vpack.c.bf16 %v4022_v6, %v4018_v1 }
0x25ba   :  { %4144 = vst [vmem:[%s6689_s19 + $0x20] sm:$0xff] %v4025_v33 }
0x25bb   :  { %4877 = vmatmul.mubr.bf16.vlgmr.msra.gmra.mrb[68].mxu1 %v4042_v9 }
0x268e   :  { %v4132_v55 = vpop.f32.mrb[68].mxu1 }
0x268f   :  { %v4133_v15 = vadd.f32 %v4414_v52, %v4132_v55  ;;  %v4878_v16 = vpop.f32.mrb[69].mxu1 }
0x2690   :  { %v4135_v26 = vpop.f32.mrb[70].mxu1 }
0x2691   :  { %v4139_v8 = vmax.f32 %v4133_v15, 0.0  ;;  %v4136_v51 = vadd.f32 %v4414_v52, %v4135_v26  ;;  %v4879_v17 = vpop.f32.mrb[71].mxu1 }
0x2693   :  { %4145 = vst [vmem:[%s6689_s19 + $0x10] sm:$0xff] %v4139_v8  ;;  %v4140_v28 = vmax.f32 %v4136_v51, 0.0 }
0x2695   :  { %4146 = vst [vmem:[%s6689_s19 + $0x28] sm:$0xff] %v4140_v28 }
0x2696   :  { %4151 = vsyncpa [#allocation3], 1 }
0x2697   :  { %4152 = vsyncpa [#allocation5], 1 }
0x2698   :  { %4153 = vsyncpa [#allocation8], 1 }
0x2699   :  { %4154 = vsyncpa [#allocation11], 1 }
0x269a   :  { %4155 = vsyncpa [#allocation14], 1 }
0x269b   :  { %4156 = vsyncpa [#allocation17], 1 }
0x269c   :  { %4157 = vsyncpa [#allocation20], 1 }

</bundles_post_ra>
